<compile_context>
chip_gen: v6e
topology: v6e:2x2x1
jax: 0.10.0
libtpu: 0.0.40
codegen_flags: <defaults>
</compile_context>

<pallas_src>
import functools

import numpy as np
import jax
import jax.numpy as jnp
from jax.experimental import pallas as pl
from jax.experimental.pallas import tpu as pltpu

# Keep every matmul (kernel, interpreted fallback and pure-JAX reference) at
# full f32 precision so they agree bit-closely.
jax.config.update("jax_default_matmul_precision", "highest")

# Config (small, consistent with the module's forward)
N_EMBD = 32       # config.n_embd
N_HEAD = 4        # config.n_head
BLOCK_SIZE = 8    # config.block_size == T
N_LAYER = 2       # config.n_layer
BATCH = 2
EPS = 1e-5        # nn.LayerNorm default eps
NEG_BIG = -1e30   # finite "-inf" (exp underflows to exactly 0 in f32)

_HIGH = jax.lax.Precision.HIGHEST
_NT_DIMS = (((1,), (1,)), ((), ()))   # contract both operands on their last dim


def _layernorm(v, g, b):
    mu = jnp.mean(v, axis=-1, keepdims=True)
    var = jnp.mean((v - mu) ** 2, axis=-1, keepdims=True)
    return (v - mu) * jax.lax.rsqrt(var + EPS) * g + b


def transformer_stack_kernel(x_ref, wmat_ref, vec_ref, b1_ref,
                             addmask_ref, headblock_ref, kvmask_ref, emat_ref,
                             out_ref, *, n_layer, n_head, seq, n_embd):
    f32 = jnp.float32
    C = n_embd
    x = x_ref[...]                       # (B*T, C), rows r = b*T + t
    BT = x.shape[0]
    addmask = addmask_ref[...]           # (BT, H*BT)  additive 0 / NEG_BIG
    headblock = headblock_ref[...]       # (H*BT, H*BT) per-head block indicator
    kvmask = kvmask_ref[...]             # (H*BT, 2C)  block-diag head feature mask
    emat = emat_ref[...]                 # (H*BT, H*T) attention-weight extraction

    def mm(a, b):
        return jnp.dot(a, b, preferred_element_type=f32, precision=_HIGH)

    attn_packs = []
    for l in range(n_layer):             # static unroll: n_layer is small
        w = wmat_ref[l]                  # (C, 12C) = [wqkv(3C) | wp(C) | w1(4C) | w2^T(4C)]
        vec = vec_ref[l]                 # (6, C)  = ln1_g, ln1_b, bp, ln2_g, ln2_b, b2
        b1 = b1_ref[l]                   # (1, 4C)

        # ---- self-attention branch (pre-LN); 1/sqrt(hs) folded into wq ----
        xn = _layernorm(x, vec[0:1, :], vec[1:2, :])
        qkv = mm(xn, w[:, :3 * C])                                   # (BT, 3C)
        q = qkv[:, :C]
        # replicated + masked KV slab: row h*BT+c holds k[c] / v[c] restricted
        # to head h's feature block (no transpose, one mask multiply, one concat).
        kv_big = jnp.concatenate([qkv[:, C:]] * n_head, axis=0) * kvmask  # (H*BT, 2C)

        # folded-head scores: one wide NT matmul instead of B*H tiny ones.
        wei = jax.lax.dot_general(q, kv_big[:, :C], _NT_DIMS,
                                  preferred_element_type=f32,
                                  precision=_HIGH)                   # (BT, H*BT)
        wei = wei + addmask
        m = jnp.max(wei, axis=-1, keepdims=True)                     # shared row max
        p_un = jnp.exp(wei - m)            # masked / cross-batch entries -> exactly 0
        denom = mm(p_un, headblock)                                  # per-head row sums
        p = p_un / denom                                             # exact softmax

        sa = mm(p, kv_big[:, C:])                                    # (BT, C) heads packed
        sa = mm(sa, w[:, 3 * C:4 * C]) + vec[2:3, :]
        # TODO(synk): nn.Dropout is treated as inference-mode identity (no RNG drop).
        x = x + sa

        attn_packs.append(mm(p, emat))                               # (BT, H*T)

        # ---- feed-forward branch (pre-LN) ----
        xn2 = _layernorm(x, vec[3:4, :], vec[4:5, :])
        h1 = jnp.maximum(mm(xn2, w[:, 4 * C:8 * C]) + b1, 0.0)       # ReLU
        ff = jax.lax.dot_general(h1, w[:, 8 * C:12 * C], _NT_DIMS,   # h1 @ w2 (w2 stored ^T)
                                 preferred_element_type=f32, precision=_HIGH)
        x = x + ff + vec[5:6, :]

    # single lane-dense (multiple-of-128 wide) store: [x | attn_0 | attn_1 | pad]
    pad_w = out_ref.shape[1] - C - n_layer * n_head * seq
    pieces = [x] + attn_packs
    if pad_w:
        pieces.append(jnp.zeros((BT, pad_w), f32))
    out_ref[...] = jnp.concatenate(pieces, axis=1)


def transformer_sequence(x, all_layer_params):
    """x: (B, T, C) f32. Returns (y (B,T,C), [attn_l (B,H,T,T) per layer])."""
    B, T, C = x.shape
    H = N_HEAD
    hs = C // H
    L = len(all_layer_params)
    BT, HB, HT = B * T, H * B * T, H * T
    out_w = ((C + L * HT + 127) // 128) * 128        # lane-dense packed output width

    # ---- parameter packing (layout plumbing only; done once on host) ----
    scale = hs ** -0.5
    wmats, vecs, b1s = [], [], []
    for (ln1_g, ln1_b, wq, wk, wv, wp, bp,
         ln2_g, ln2_b, w1, b1, w2, b2) in all_layer_params:
        wmats.append(jnp.concatenate([wq * scale, wk, wv, wp, w1, w2.T], axis=1))
        vecs.append(jnp.concatenate([ln1_g, ln1_b, bp, ln2_g, ln2_b, b2], axis=0))
        b1s.append(b1)
    wmat = jnp.stack(wmats)                           # (L, C, 12C)
    vec = jnp.stack(vecs)                             # (L, 6, C)
    b1a = jnp.stack(b1s)                              # (L, 1, 4C)

    # ---- constant masks, built once on the host and passed as VMEM inputs ----
    r = np.arange(BT)[:, None]
    j = np.arange(HB)[None, :]
    c = j % BT                                        # key row index for score column j
    valid = (c // T == r // T) & (c % T <= r % T)     # same batch & causal
    addmask = np.where(valid, 0.0, NEG_BIG).astype(np.float32)               # (BT, HB)

    jb = np.arange(HB)
    headblock = (jb[:, None] // BT == jb[None, :] // BT).astype(np.float32)  # (HB, HB)

    f = np.arange(2 * C)[None, :]
    kvmask = ((f % C) // hs == jb[:, None] // BT).astype(np.float32)         # (HB, 2C)

    e = np.arange(HT)[None, :]
    emat = ((jb[:, None] // BT == e // T)
            & (jb[:, None] % T == e % T)).astype(np.float32)                 # (HB, HT)

    in_arrays = [x.reshape(BT, C), wmat, vec, b1a,
                 jnp.asarray(addmask), jnp.asarray(headblock),
                 jnp.asarray(kvmask), jnp.asarray(emat)]

    def full_spec(a):
        return pl.BlockSpec(a.shape, lambda i, _nd=a.ndim: (0,) * _nd)

    kernel = functools.partial(transformer_stack_kernel,
                               n_layer=L, n_head=H, seq=T, n_embd=C)

    out = pl.pallas_call(
        kernel,
        out_shape=jax.ShapeDtypeStruct((BT, out_w), jnp.float32),
        grid=(1,),
        in_specs=[full_spec(a) for a in in_arrays],
        out_specs=pl.BlockSpec((BT, out_w), lambda i: (0, 0)),
        compiler_params=pltpu.CompilerParams(
            dimension_semantics=("arbitrary",)),
    )(*in_arrays)

    # wrapper-side layout plumbing only.
    y = out[:, :C].reshape(B, T, C)
    attn = out[:, C:C + L * HT].reshape(B, T, L, H, T).transpose(2, 0, 3, 1, 4)
    return y, [attn[l] for l in range(L)]


def init_layer_params(key, C, H):
    ks = jax.random.split(key, 6)

    def lin(k, fan_in, fan_out):
        return (jax.random.normal(k, (fan_in, fan_out), jnp.float32)
                * (1.0 / jnp.sqrt(fan_in)))

    ln1_g = jnp.ones((1, C), jnp.float32)
    ln1_b = jnp.zeros((1, C), jnp.float32)
    wq = lin(ks[0], C, C)      # concatenated per-head query weights (bias=False)
    wk = lin(ks[1], C, C)
    wv = lin(ks[2], C, C)
    wp = lin(ks[3], C, C)      # MultiHeadAttention.proj
    bp = jnp.zeros((1, C), jnp.float32)
    ln2_g = jnp.ones((1, C), jnp.float32)
    ln2_b = jnp.zeros((1, C), jnp.float32)
    w1 = lin(ks[4], C, 4 * C)  # FeedForward expand
    b1 = jnp.zeros((1, 4 * C), jnp.float32)
    w2 = lin(ks[5], 4 * C, C)  # FeedForward contract
    b2 = jnp.zeros((1, C), jnp.float32)
    return (ln1_g, ln1_b, wq, wk, wv, wp, bp, ln2_g, ln2_b, w1, b1, w2, b2)


# ------------------------- pure-JAX reference -------------------------
def _ref_block(x, lp):
    (ln1_g, ln1_b, wq, wk, wv, wp, bp,
     ln2_g, ln2_b, w1, b1, w2, b2) = lp
    B, T, C = x.shape
    H = N_HEAD
    hs = C // H

    def ln(v, g, b):
        mu = v.mean(-1, keepdims=True)
        var = ((v - mu) ** 2).mean(-1, keepdims=True)
        return (v - mu) / jnp.sqrt(var + EPS) * g + b

    def mm(a, b):
        return jnp.matmul(a, b, precision=_HIGH)

    xn = ln(x, ln1_g, ln1_b)
    q = mm(xn, wq).reshape(B, T, H, hs).transpose(0, 2, 1, 3)
    k = mm(xn, wk).reshape(B, T, H, hs).transpose(0, 2, 1, 3)
    v = mm(xn, wv).reshape(B, T, H, hs).transpose(0, 2, 1, 3)
    wei = jnp.einsum('bhqd,bhkd->bhqk', q, k, precision=_HIGH) * (hs ** -0.5)
    causal = jnp.tril(jnp.ones((T, T), bool))
    wei = jnp.where(causal, wei, -jnp.inf)
    wei = jax.nn.softmax(wei, axis=-1)
    out = jnp.einsum('bhqk,bhkd->bhqd', wei, v, precision=_HIGH)
    out = out.transpose(0, 2, 1, 3).reshape(B, T, C)
    x1 = x + (mm(out, wp) + bp)
    xn2 = ln(x1, ln2_g, ln2_b)
    ff = mm(jnp.maximum(mm(xn2, w1) + b1, 0.0), w2) + b2
    return x1 + ff, wei


def _ref_sequence(x, params):
    attns = []
    for lp in params:
        x, a = _ref_block(x, lp)
        attns.append(a)
    return x, attns


if __name__ == "__main__":
    key = jax.random.PRNGKey(0)
    kx, kp = jax.random.split(key)
    x = jax.random.normal(kx, (BATCH, BLOCK_SIZE, N_EMBD), jnp.float32)
    layer_keys = jax.random.split(kp, N_LAYER)
    params = [init_layer_params(k, N_EMBD, N_HEAD) for k in layer_keys]

    y, attns = transformer_sequence(x, params)
    y = jax.block_until_ready(y)
    attns = [jax.block_until_ready(a) for a in attns]

    # sanity check against a plain-JAX reference of the same math
    y_ref, attns_ref = _ref_sequence(x, params)
    assert jnp.allclose(y, y_ref, atol=1e-3, rtol=1e-3), "output mismatch"
    for a, ar in zip(attns, attns_ref):
        assert jnp.allclose(a, ar, atol=1e-3, rtol=1e-3), "attn mismatch"

    print("KERNEL_OK")
</pallas_src>

<mosaic_0001>
module attributes {stable_mosaic.version = 11 : i64} {
  func.func @transformer_stack_kernel(%arg0: i32, %arg1: memref<16x32xf32, #tpu.memory_space<vmem>>, %arg2: memref<2x32x384xf32, #tpu.memory_space<vmem>>, %arg3: memref<2x6x32xf32, #tpu.memory_space<vmem>>, %arg4: memref<2x1x128xf32, #tpu.memory_space<vmem>>, %arg5: memref<16x64xf32, #tpu.memory_space<vmem>>, %arg6: memref<64x64xf32, #tpu.memory_space<vmem>>, %arg7: memref<64x64xf32, #tpu.memory_space<vmem>>, %arg8: memref<64x32xf32, #tpu.memory_space<vmem>>, %arg9: memref<16x128xf32, #tpu.memory_space<vmem>>) attributes {dimension_semantics = [#tpu.dimension_semantics<arbitrary>], iteration_bounds = array<i64: 1>, scalar_prefetch = 0 : i64, scratch_operands = 0 : i64, tpu.core_type = #tpu.core_type<tc>, window_params = [{pipeline_mode = #tpu.pipeline_mode<synchronous>, transform_indices = @transform_0, window_bounds = array<i64: 16, 32>}, {pipeline_mode = #tpu.pipeline_mode<synchronous>, transform_indices = @transform_1, window_bounds = array<i64: 2, 32, 384>}, {pipeline_mode = #tpu.pipeline_mode<synchronous>, transform_indices = @transform_2, window_bounds = array<i64: 2, 6, 32>}, {pipeline_mode = #tpu.pipeline_mode<synchronous>, transform_indices = @transform_3, window_bounds = array<i64: 2, 1, 128>}, {pipeline_mode = #tpu.pipeline_mode<synchronous>, transform_indices = @transform_4, window_bounds = array<i64: 16, 64>}, {pipeline_mode = #tpu.pipeline_mode<synchronous>, transform_indices = @transform_5, window_bounds = array<i64: 64, 64>}, {pipeline_mode = #tpu.pipeline_mode<synchronous>, transform_indices = @transform_6, window_bounds = array<i64: 64, 64>}, {pipeline_mode = #tpu.pipeline_mode<synchronous>, transform_indices = @transform_7, window_bounds = array<i64: 64, 32>}, {pipeline_mode = #tpu.pipeline_mode<synchronous>, transform_indices = @transform_8, window_bounds = array<i64: 16, 128>}]} {
    %c0 = arith.constant 0 : index
    %c0_0 = arith.constant 0 : index
    %0 = vector.load %arg1[%c0, %c0_0] : memref<16x32xf32, #tpu.memory_space<vmem>>, vector<16x32xf32>
    %c0_1 = arith.constant 0 : index
    %c0_2 = arith.constant 0 : index
    %1 = vector.load %arg5[%c0_1, %c0_2] : memref<16x64xf32, #tpu.memory_space<vmem>>, vector<16x64xf32>
    %c0_3 = arith.constant 0 : index
    %c0_4 = arith.constant 0 : index
    %2 = vector.load %arg6[%c0_3, %c0_4] : memref<64x64xf32, #tpu.memory_space<vmem>>, vector<64x64xf32>
    %c0_5 = arith.constant 0 : index
    %c0_6 = arith.constant 0 : index
    %3 = vector.load %arg7[%c0_5, %c0_6] : memref<64x64xf32, #tpu.memory_space<vmem>>, vector<64x64xf32>
    %c0_7 = arith.constant 0 : index
    %c0_8 = arith.constant 0 : index
    %4 = vector.load %arg8[%c0_7, %c0_8] : memref<64x32xf32, #tpu.memory_space<vmem>>, vector<64x32xf32>
    %c0_9 = arith.constant 0 : index
    %c0_10 = arith.constant 0 : index
    %c0_11 = arith.constant 0 : index
    %5 = vector.load %arg2[%c0_9, %c0_10, %c0_11] : memref<2x32x384xf32, #tpu.memory_space<vmem>>, vector<1x32x384xf32>
    %6 = vector.shape_cast %5 : vector<1x32x384xf32> to vector<32x384xf32>
    %c0_12 = arith.constant 0 : index
    %c0_13 = arith.constant 0 : index
    %c0_14 = arith.constant 0 : index
    %7 = vector.load %arg3[%c0_12, %c0_13, %c0_14] : memref<2x6x32xf32, #tpu.memory_space<vmem>>, vector<1x6x32xf32>
    %8 = vector.shape_cast %7 : vector<1x6x32xf32> to vector<6x32xf32>
    %c0_15 = arith.constant 0 : index
    %c0_16 = arith.constant 0 : index
    %c0_17 = arith.constant 0 : index
    %9 = vector.load %arg4[%c0_15, %c0_16, %c0_17] : memref<2x1x128xf32, #tpu.memory_space<vmem>>, vector<1x1x128xf32>
    %10 = vector.shape_cast %9 : vector<1x1x128xf32> to vector<1x128xf32>
    %11 = vector.extract_strided_slice %8 {offsets = [0, 0], sizes = [1, 32], strides = [1, 1]} : vector<6x32xf32> to vector<1x32xf32>
    %12 = vector.extract_strided_slice %8 {offsets = [1, 0], sizes = [1, 32], strides = [1, 1]} : vector<6x32xf32> to vector<1x32xf32>
    %cst = arith.constant dense<0.000000e+00> : vector<16xf32>
    %13 = vector.multi_reduction <add>, %0, %cst [1] : vector<16x32xf32> to vector<16xf32>
    %14 = vector.shape_cast %13 : vector<16xf32> to vector<16x1xf32>
    %cst_18 = arith.constant 3.200000e+01 : f32
    %15 = vector.broadcast %cst_18 : f32 to vector<16x1xf32>
    %16 = arith.divf %14, %15 : vector<16x1xf32>
    %17 = vector.broadcast %16 : vector<16x1xf32> to vector<16x32xf32>
    %18 = arith.subf %0, %17 : vector<16x32xf32>
    %19 = arith.mulf %18, %18 : vector<16x32xf32>
    %cst_19 = arith.constant dense<0.000000e+00> : vector<16xf32>
    %20 = vector.multi_reduction <add>, %19, %cst_19 [1] : vector<16x32xf32> to vector<16xf32>
    %21 = vector.shape_cast %20 : vector<16xf32> to vector<16x1xf32>
    %cst_20 = arith.constant 3.200000e+01 : f32
    %22 = vector.broadcast %cst_20 : f32 to vector<16x1xf32>
    %23 = arith.divf %21, %22 : vector<16x1xf32>
    %24 = vector.broadcast %16 : vector<16x1xf32> to vector<16x32xf32>
    %25 = arith.subf %0, %24 : vector<16x32xf32>
    %cst_21 = arith.constant 9.99999974E-6 : f32
    %26 = vector.broadcast %cst_21 : f32 to vector<16x1xf32>
    %27 = arith.addf %23, %26 : vector<16x1xf32>
    %28 = math.rsqrt %27 : vector<16x1xf32>
    %29 = vector.broadcast %28 : vector<16x1xf32> to vector<16x32xf32>
    %30 = arith.mulf %25, %29 : vector<16x32xf32>
    %31 = vector.broadcast %11 : vector<1x32xf32> to vector<16x32xf32>
    %32 = arith.mulf %30, %31 : vector<16x32xf32>
    %33 = vector.broadcast %12 : vector<1x32xf32> to vector<16x32xf32>
    %34 = arith.addf %32, %33 : vector<16x32xf32>
    %35 = vector.extract_strided_slice %6 {offsets = [0, 0], sizes = [32, 96], strides = [1, 1]} : vector<32x384xf32> to vector<32x96xf32>
    %cst_22 = arith.constant dense<0.000000e+00> : vector<16x96xf32>
    %36 = tpu.matmul %34, %35, %cst_22 {dimension_numbers = #tpu.dot_dimension_numbers<[1], [0], [0], [1], [0, 0, 1, 1], [], []>, precision = #tpu.contract_precision<fp32>} : vector<16x32xf32>, vector<32x96xf32>, vector<16x96xf32> -> vector<16x96xf32>
    %37 = vector.extract_strided_slice %36 {offsets = [0, 0], sizes = [16, 32], strides = [1, 1]} : vector<16x96xf32> to vector<16x32xf32>
    %38 = vector.extract_strided_slice %36 {offsets = [0, 32], sizes = [16, 64], strides = [1, 1]} : vector<16x96xf32> to vector<16x64xf32>
    %39 = tpu.concatenate %38, %38, %38, %38 in 0 : vector<16x64xf32>, vector<16x64xf32>, vector<16x64xf32>, vector<16x64xf32> -> vector<64x64xf32>
    %40 = arith.mulf %39, %3 : vector<64x64xf32>
    %41 = vector.extract_strided_slice %40 {offsets = [0, 0], sizes = [64, 32], strides = [1, 1]} : vector<64x64xf32> to vector<64x32xf32>
    %cst_23 = arith.constant dense<0.000000e+00> : vector<16x64xf32>
    %42 = tpu.matmul %37, %41, %cst_23 {dimension_numbers = #tpu.dot_dimension_numbers<[1], [1], [0], [0], [0, 0, 1, 0], [], []>, precision = #tpu.contract_precision<fp32>} : vector<16x32xf32>, vector<64x32xf32>, vector<16x64xf32> -> vector<16x64xf32>
    %43 = arith.addf %42, %1 : vector<16x64xf32>
    %cst_24 = arith.constant dense<0xFF800000> : vector<16xf32>
    %44 = vector.multi_reduction <maximumf>, %43, %cst_24 [1] : vector<16x64xf32> to vector<16xf32>
    %45 = vector.shape_cast %44 : vector<16xf32> to vector<16x1xf32>
    %46 = vector.broadcast %45 : vector<16x1xf32> to vector<16x64xf32>
    %47 = arith.subf %43, %46 : vector<16x64xf32>
    %48 = math.exp %47 : vector<16x64xf32>
    %cst_25 = arith.constant dense<0.000000e+00> : vector<16x64xf32>
    %49 = tpu.matmul %48, %2, %cst_25 {dimension_numbers = #tpu.dot_dimension_numbers<[1], [0], [0], [1], [0, 0, 1, 1], [], []>, precision = #tpu.contract_precision<fp32>} : vector<16x64xf32>, vector<64x64xf32>, vector<16x64xf32> -> vector<16x64xf32>
    %50 = arith.divf %48, %49 : vector<16x64xf32>
    %51 = vector.extract_strided_slice %40 {offsets = [0, 32], sizes = [64, 32], strides = [1, 1]} : vector<64x64xf32> to vector<64x32xf32>
    %cst_26 = arith.constant dense<0.000000e+00> : vector<16x32xf32>
    %52 = tpu.matmul %50, %51, %cst_26 {dimension_numbers = #tpu.dot_dimension_numbers<[1], [0], [0], [1], [0, 0, 1, 1], [], []>, precision = #tpu.contract_precision<fp32>} : vector<16x64xf32>, vector<64x32xf32>, vector<16x32xf32> -> vector<16x32xf32>
    %53 = vector.extract_strided_slice %6 {offsets = [0, 96], sizes = [32, 32], strides = [1, 1]} : vector<32x384xf32> to vector<32x32xf32>
    %cst_27 = arith.constant dense<0.000000e+00> : vector<16x32xf32>
    %54 = tpu.matmul %52, %53, %cst_27 {dimension_numbers = #tpu.dot_dimension_numbers<[1], [0], [0], [1], [0, 0, 1, 1], [], []>, precision = #tpu.contract_precision<fp32>} : vector<16x32xf32>, vector<32x32xf32>, vector<16x32xf32> -> vector<16x32xf32>
    %55 = vector.extract_strided_slice %8 {offsets = [2, 0], sizes = [1, 32], strides = [1, 1]} : vector<6x32xf32> to vector<1x32xf32>
    %56 = vector.broadcast %55 : vector<1x32xf32> to vector<16x32xf32>
    %57 = arith.addf %54, %56 : vector<16x32xf32>
    %58 = arith.addf %0, %57 : vector<16x32xf32>
    %cst_28 = arith.constant dense<0.000000e+00> : vector<16x32xf32>
    %59 = tpu.matmul %50, %4, %cst_28 {dimension_numbers = #tpu.dot_dimension_numbers<[1], [0], [0], [1], [0, 0, 1, 1], [], []>, precision = #tpu.contract_precision<fp32>} : vector<16x64xf32>, vector<64x32xf32>, vector<16x32xf32> -> vector<16x32xf32>
    %60 = vector.extract_strided_slice %8 {offsets = [3, 0], sizes = [1, 32], strides = [1, 1]} : vector<6x32xf32> to vector<1x32xf32>
    %61 = vector.extract_strided_slice %8 {offsets = [4, 0], sizes = [1, 32], strides = [1, 1]} : vector<6x32xf32> to vector<1x32xf32>
    %cst_29 = arith.constant dense<0.000000e+00> : vector<16xf32>
    %62 = vector.multi_reduction <add>, %58, %cst_29 [1] : vector<16x32xf32> to vector<16xf32>
    %63 = vector.shape_cast %62 : vector<16xf32> to vector<16x1xf32>
    %cst_30 = arith.constant 3.200000e+01 : f32
    %64 = vector.broadcast %cst_30 : f32 to vector<16x1xf32>
    %65 = arith.divf %63, %64 : vector<16x1xf32>
    %66 = vector.broadcast %65 : vector<16x1xf32> to vector<16x32xf32>
    %67 = arith.subf %58, %66 : vector<16x32xf32>
    %68 = arith.mulf %67, %67 : vector<16x32xf32>
    %cst_31 = arith.constant dense<0.000000e+00> : vector<16xf32>
    %69 = vector.multi_reduction <add>, %68, %cst_31 [1] : vector<16x32xf32> to vector<16xf32>
    %70 = vector.shape_cast %69 : vector<16xf32> to vector<16x1xf32>
    %cst_32 = arith.constant 3.200000e+01 : f32
    %71 = vector.broadcast %cst_32 : f32 to vector<16x1xf32>
    %72 = arith.divf %70, %71 : vector<16x1xf32>
    %73 = vector.broadcast %65 : vector<16x1xf32> to vector<16x32xf32>
    %74 = arith.subf %58, %73 : vector<16x32xf32>
    %cst_33 = arith.constant 9.99999974E-6 : f32
    %75 = vector.broadcast %cst_33 : f32 to vector<16x1xf32>
    %76 = arith.addf %72, %75 : vector<16x1xf32>
    %77 = math.rsqrt %76 : vector<16x1xf32>
    %78 = vector.broadcast %77 : vector<16x1xf32> to vector<16x32xf32>
    %79 = arith.mulf %74, %78 : vector<16x32xf32>
    %80 = vector.broadcast %60 : vector<1x32xf32> to vector<16x32xf32>
    %81 = arith.mulf %79, %80 : vector<16x32xf32>
    %82 = vector.broadcast %61 : vector<1x32xf32> to vector<16x32xf32>
    %83 = arith.addf %81, %82 : vector<16x32xf32>
    %84 = vector.extract_strided_slice %6 {offsets = [0, 128], sizes = [32, 128], strides = [1, 1]} : vector<32x384xf32> to vector<32x128xf32>
    %cst_34 = arith.constant dense<0.000000e+00> : vector<16x128xf32>
    %85 = tpu.matmul %83, %84, %cst_34 {dimension_numbers = #tpu.dot_dimension_numbers<[1], [0], [0], [1], [0, 0, 1, 1], [], []>, precision = #tpu.contract_precision<fp32>} : vector<16x32xf32>, vector<32x128xf32>, vector<16x128xf32> -> vector<16x128xf32>
    %86 = vector.broadcast %10 : vector<1x128xf32> to vector<16x128xf32>
    %87 = arith.addf %85, %86 : vector<16x128xf32>
    %cst_35 = arith.constant 0.000000e+00 : f32
    %88 = vector.broadcast %cst_35 : f32 to vector<16x128xf32>
    %89 = arith.maximumf %87, %88 : vector<16x128xf32>
    %90 = vector.extract_strided_slice %6 {offsets = [0, 256], sizes = [32, 128], strides = [1, 1]} : vector<32x384xf32> to vector<32x128xf32>
    %cst_36 = arith.constant dense<0.000000e+00> : vector<16x32xf32>
    %91 = tpu.matmul %89, %90, %cst_36 {dimension_numbers = #tpu.dot_dimension_numbers<[1], [1], [0], [0], [0, 0, 1, 0], [], []>, precision = #tpu.contract_precision<fp32>} : vector<16x128xf32>, vector<32x128xf32>, vector<16x32xf32> -> vector<16x32xf32>
    %92 = arith.addf %58, %91 : vector<16x32xf32>
    %93 = vector.extract_strided_slice %8 {offsets = [5, 0], sizes = [1, 32], strides = [1, 1]} : vector<6x32xf32> to vector<1x32xf32>
    %94 = vector.broadcast %93 : vector<1x32xf32> to vector<16x32xf32>
    %95 = arith.addf %92, %94 : vector<16x32xf32>
    %c1 = arith.constant 1 : index
    %c0_37 = arith.constant 0 : index
    %c0_38 = arith.constant 0 : index
    %96 = vector.load %arg2[%c1, %c0_37, %c0_38] : memref<2x32x384xf32, #tpu.memory_space<vmem>>, vector<1x32x384xf32>
    %97 = vector.shape_cast %96 : vector<1x32x384xf32> to vector<32x384xf32>
    %c1_39 = arith.constant 1 : index
    %c0_40 = arith.constant 0 : index
    %c0_41 = arith.constant 0 : index
    %98 = vector.load %arg3[%c1_39, %c0_40, %c0_41] : memref<2x6x32xf32, #tpu.memory_space<vmem>>, vector<1x6x32xf32>
    %99 = vector.shape_cast %98 : vector<1x6x32xf32> to vector<6x32xf32>
    %c1_42 = arith.constant 1 : index
    %c0_43 = arith.constant 0 : index
    %c0_44 = arith.constant 0 : index
    %100 = vector.load %arg4[%c1_42, %c0_43, %c0_44] : memref<2x1x128xf32, #tpu.memory_space<vmem>>, vector<1x1x128xf32>
    %101 = vector.shape_cast %100 : vector<1x1x128xf32> to vector<1x128xf32>
    %102 = vector.extract_strided_slice %99 {offsets = [0, 0], sizes = [1, 32], strides = [1, 1]} : vector<6x32xf32> to vector<1x32xf32>
    %103 = vector.extract_strided_slice %99 {offsets = [1, 0], sizes = [1, 32], strides = [1, 1]} : vector<6x32xf32> to vector<1x32xf32>
    %cst_45 = arith.constant dense<0.000000e+00> : vector<16xf32>
    %104 = vector.multi_reduction <add>, %95, %cst_45 [1] : vector<16x32xf32> to vector<16xf32>
    %105 = vector.shape_cast %104 : vector<16xf32> to vector<16x1xf32>
    %cst_46 = arith.constant 3.200000e+01 : f32
    %106 = vector.broadcast %cst_46 : f32 to vector<16x1xf32>
    %107 = arith.divf %105, %106 : vector<16x1xf32>
    %108 = vector.broadcast %107 : vector<16x1xf32> to vector<16x32xf32>
    %109 = arith.subf %95, %108 : vector<16x32xf32>
    %110 = arith.mulf %109, %109 : vector<16x32xf32>
    %cst_47 = arith.constant dense<0.000000e+00> : vector<16xf32>
    %111 = vector.multi_reduction <add>, %110, %cst_47 [1] : vector<16x32xf32> to vector<16xf32>
    %112 = vector.shape_cast %111 : vector<16xf32> to vector<16x1xf32>
    %cst_48 = arith.constant 3.200000e+01 : f32
    %113 = vector.broadcast %cst_48 : f32 to vector<16x1xf32>
    %114 = arith.divf %112, %113 : vector<16x1xf32>
    %115 = vector.broadcast %107 : vector<16x1xf32> to vector<16x32xf32>
    %116 = arith.subf %95, %115 : vector<16x32xf32>
    %cst_49 = arith.constant 9.99999974E-6 : f32
    %117 = vector.broadcast %cst_49 : f32 to vector<16x1xf32>
    %118 = arith.addf %114, %117 : vector<16x1xf32>
    %119 = math.rsqrt %118 : vector<16x1xf32>
    %120 = vector.broadcast %119 : vector<16x1xf32> to vector<16x32xf32>
    %121 = arith.mulf %116, %120 : vector<16x32xf32>
    %122 = vector.broadcast %102 : vector<1x32xf32> to vector<16x32xf32>
    %123 = arith.mulf %121, %122 : vector<16x32xf32>
    %124 = vector.broadcast %103 : vector<1x32xf32> to vector<16x32xf32>
    %125 = arith.addf %123, %124 : vector<16x32xf32>
    %126 = vector.extract_strided_slice %97 {offsets = [0, 0], sizes = [32, 96], strides = [1, 1]} : vector<32x384xf32> to vector<32x96xf32>
    %cst_50 = arith.constant dense<0.000000e+00> : vector<16x96xf32>
    %127 = tpu.matmul %125, %126, %cst_50 {dimension_numbers = #tpu.dot_dimension_numbers<[1], [0], [0], [1], [0, 0, 1, 1], [], []>, precision = #tpu.contract_precision<fp32>} : vector<16x32xf32>, vector<32x96xf32>, vector<16x96xf32> -> vector<16x96xf32>
    %128 = vector.extract_strided_slice %127 {offsets = [0, 0], sizes = [16, 32], strides = [1, 1]} : vector<16x96xf32> to vector<16x32xf32>
    %129 = vector.extract_strided_slice %127 {offsets = [0, 32], sizes = [16, 64], strides = [1, 1]} : vector<16x96xf32> to vector<16x64xf32>
    %130 = tpu.concatenate %129, %129, %129, %129 in 0 : vector<16x64xf32>, vector<16x64xf32>, vector<16x64xf32>, vector<16x64xf32> -> vector<64x64xf32>
    %131 = arith.mulf %130, %3 : vector<64x64xf32>
    %132 = vector.extract_strided_slice %131 {offsets = [0, 0], sizes = [64, 32], strides = [1, 1]} : vector<64x64xf32> to vector<64x32xf32>
    %cst_51 = arith.constant dense<0.000000e+00> : vector<16x64xf32>
    %133 = tpu.matmul %128, %132, %cst_51 {dimension_numbers = #tpu.dot_dimension_numbers<[1], [1], [0], [0], [0, 0, 1, 0], [], []>, precision = #tpu.contract_precision<fp32>} : vector<16x32xf32>, vector<64x32xf32>, vector<16x64xf32> -> vector<16x64xf32>
    %134 = arith.addf %133, %1 : vector<16x64xf32>
    %cst_52 = arith.constant dense<0xFF800000> : vector<16xf32>
    %135 = vector.multi_reduction <maximumf>, %134, %cst_52 [1] : vector<16x64xf32> to vector<16xf32>
    %136 = vector.shape_cast %135 : vector<16xf32> to vector<16x1xf32>
    %137 = vector.broadcast %136 : vector<16x1xf32> to vector<16x64xf32>
    %138 = arith.subf %134, %137 : vector<16x64xf32>
    %139 = math.exp %138 : vector<16x64xf32>
    %cst_53 = arith.constant dense<0.000000e+00> : vector<16x64xf32>
    %140 = tpu.matmul %139, %2, %cst_53 {dimension_numbers = #tpu.dot_dimension_numbers<[1], [0], [0], [1], [0, 0, 1, 1], [], []>, precision = #tpu.contract_precision<fp32>} : vector<16x64xf32>, vector<64x64xf32>, vector<16x64xf32> -> vector<16x64xf32>
    %141 = arith.divf %139, %140 : vector<16x64xf32>
    %142 = vector.extract_strided_slice %131 {offsets = [0, 32], sizes = [64, 32], strides = [1, 1]} : vector<64x64xf32> to vector<64x32xf32>
    %cst_54 = arith.constant dense<0.000000e+00> : vector<16x32xf32>
    %143 = tpu.matmul %141, %142, %cst_54 {dimension_numbers = #tpu.dot_dimension_numbers<[1], [0], [0], [1], [0, 0, 1, 1], [], []>, precision = #tpu.contract_precision<fp32>} : vector<16x64xf32>, vector<64x32xf32>, vector<16x32xf32> -> vector<16x32xf32>
    %144 = vector.extract_strided_slice %97 {offsets = [0, 96], sizes = [32, 32], strides = [1, 1]} : vector<32x384xf32> to vector<32x32xf32>
    %cst_55 = arith.constant dense<0.000000e+00> : vector<16x32xf32>
    %145 = tpu.matmul %143, %144, %cst_55 {dimension_numbers = #tpu.dot_dimension_numbers<[1], [0], [0], [1], [0, 0, 1, 1], [], []>, precision = #tpu.contract_precision<fp32>} : vector<16x32xf32>, vector<32x32xf32>, vector<16x32xf32> -> vector<16x32xf32>
    %146 = vector.extract_strided_slice %99 {offsets = [2, 0], sizes = [1, 32], strides = [1, 1]} : vector<6x32xf32> to vector<1x32xf32>
    %147 = vector.broadcast %146 : vector<1x32xf32> to vector<16x32xf32>
    %148 = arith.addf %145, %147 : vector<16x32xf32>
    %149 = arith.addf %95, %148 : vector<16x32xf32>
    %cst_56 = arith.constant dense<0.000000e+00> : vector<16x32xf32>
    %150 = tpu.matmul %141, %4, %cst_56 {dimension_numbers = #tpu.dot_dimension_numbers<[1], [0], [0], [1], [0, 0, 1, 1], [], []>, precision = #tpu.contract_precision<fp32>} : vector<16x64xf32>, vector<64x32xf32>, vector<16x32xf32> -> vector<16x32xf32>
    %151 = vector.extract_strided_slice %99 {offsets = [3, 0], sizes = [1, 32], strides = [1, 1]} : vector<6x32xf32> to vector<1x32xf32>
    %152 = vector.extract_strided_slice %99 {offsets = [4, 0], sizes = [1, 32], strides = [1, 1]} : vector<6x32xf32> to vector<1x32xf32>
    %cst_57 = arith.constant dense<0.000000e+00> : vector<16xf32>
    %153 = vector.multi_reduction <add>, %149, %cst_57 [1] : vector<16x32xf32> to vector<16xf32>
    %154 = vector.shape_cast %153 : vector<16xf32> to vector<16x1xf32>
    %cst_58 = arith.constant 3.200000e+01 : f32
    %155 = vector.broadcast %cst_58 : f32 to vector<16x1xf32>
    %156 = arith.divf %154, %155 : vector<16x1xf32>
    %157 = vector.broadcast %156 : vector<16x1xf32> to vector<16x32xf32>
    %158 = arith.subf %149, %157 : vector<16x32xf32>
    %159 = arith.mulf %158, %158 : vector<16x32xf32>
    %cst_59 = arith.constant dense<0.000000e+00> : vector<16xf32>
    %160 = vector.multi_reduction <add>, %159, %cst_59 [1] : vector<16x32xf32> to vector<16xf32>
    %161 = vector.shape_cast %160 : vector<16xf32> to vector<16x1xf32>
    %cst_60 = arith.constant 3.200000e+01 : f32
    %162 = vector.broadcast %cst_60 : f32 to vector<16x1xf32>
    %163 = arith.divf %161, %162 : vector<16x1xf32>
    %164 = vector.broadcast %156 : vector<16x1xf32> to vector<16x32xf32>
    %165 = arith.subf %149, %164 : vector<16x32xf32>
    %cst_61 = arith.constant 9.99999974E-6 : f32
    %166 = vector.broadcast %cst_61 : f32 to vector<16x1xf32>
    %167 = arith.addf %163, %166 : vector<16x1xf32>
    %168 = math.rsqrt %167 : vector<16x1xf32>
    %169 = vector.broadcast %168 : vector<16x1xf32> to vector<16x32xf32>
    %170 = arith.mulf %165, %169 : vector<16x32xf32>
    %171 = vector.broadcast %151 : vector<1x32xf32> to vector<16x32xf32>
    %172 = arith.mulf %170, %171 : vector<16x32xf32>
    %173 = vector.broadcast %152 : vector<1x32xf32> to vector<16x32xf32>
    %174 = arith.addf %172, %173 : vector<16x32xf32>
    %175 = vector.extract_strided_slice %97 {offsets = [0, 128], sizes = [32, 128], strides = [1, 1]} : vector<32x384xf32> to vector<32x128xf32>
    %cst_62 = arith.constant dense<0.000000e+00> : vector<16x128xf32>
    %176 = tpu.matmul %174, %175, %cst_62 {dimension_numbers = #tpu.dot_dimension_numbers<[1], [0], [0], [1], [0, 0, 1, 1], [], []>, precision = #tpu.contract_precision<fp32>} : vector<16x32xf32>, vector<32x128xf32>, vector<16x128xf32> -> vector<16x128xf32>
    %177 = vector.broadcast %101 : vector<1x128xf32> to vector<16x128xf32>
    %178 = arith.addf %176, %177 : vector<16x128xf32>
    %cst_63 = arith.constant 0.000000e+00 : f32
    %179 = vector.broadcast %cst_63 : f32 to vector<16x128xf32>
    %180 = arith.maximumf %178, %179 : vector<16x128xf32>
    %181 = vector.extract_strided_slice %97 {offsets = [0, 256], sizes = [32, 128], strides = [1, 1]} : vector<32x384xf32> to vector<32x128xf32>
    %cst_64 = arith.constant dense<0.000000e+00> : vector<16x32xf32>
    %182 = tpu.matmul %180, %181, %cst_64 {dimension_numbers = #tpu.dot_dimension_numbers<[1], [1], [0], [0], [0, 0, 1, 0], [], []>, precision = #tpu.contract_precision<fp32>} : vector<16x128xf32>, vector<32x128xf32>, vector<16x32xf32> -> vector<16x32xf32>
    %183 = arith.addf %149, %182 : vector<16x32xf32>
    %184 = vector.extract_strided_slice %99 {offsets = [5, 0], sizes = [1, 32], strides = [1, 1]} : vector<6x32xf32> to vector<1x32xf32>
    %185 = vector.broadcast %184 : vector<1x32xf32> to vector<16x32xf32>
    %186 = arith.addf %183, %185 : vector<16x32xf32>
    %cst_65 = arith.constant 0.000000e+00 : f32
    %187 = vector.broadcast %cst_65 : f32 to vector<16x32xf32>
    %188 = tpu.concatenate %186, %59, %150, %187 in 1 : vector<16x32xf32>, vector<16x32xf32>, vector<16x32xf32>, vector<16x32xf32> -> vector<16x128xf32>
    %c0_66 = arith.constant 0 : index
    %c0_67 = arith.constant 0 : index
    %189 = vector.load %arg9[%c0_66, %c0_67] : memref<16x128xf32, #tpu.memory_space<vmem>>, vector<16x128xf32>
    tpu.vector_store %arg9[%c0_66, %c0_67], %188 {strides = array<i32>} : memref<16x128xf32, #tpu.memory_space<vmem>>, vector<16x128xf32>,
    return
  }
  func.func @transform_0(%arg0: i32) -> (i32, i32) {
    %c0_i32 = arith.constant 0 : i32
    %c0_i32_0 = arith.constant 0 : i32
    %c0_i32_1 = arith.constant 0 : i32
    return %c0_i32, %c0_i32_0 : i32, i32
  }
  func.func @transform_1(%arg0: i32) -> (i32, i32, i32) {
    %c0_i32 = arith.constant 0 : i32
    %c0_i32_0 = arith.constant 0 : i32
    %c0_i32_1 = arith.constant 0 : i32
    %c0_i32_2 = arith.constant 0 : i32
    return %c0_i32, %c0_i32_0, %c0_i32_1 : i32, i32, i32
  }
  func.func @transform_2(%arg0: i32) -> (i32, i32, i32) {
    %c0_i32 = arith.constant 0 : i32
    %c0_i32_0 = arith.constant 0 : i32
    %c0_i32_1 = arith.constant 0 : i32
    %c0_i32_2 = arith.constant 0 : i32
    return %c0_i32, %c0_i32_0, %c0_i32_1 : i32, i32, i32
  }
  func.func @transform_3(%arg0: i32) -> (i32, i32, i32) {
    %c0_i32 = arith.constant 0 : i32
    %c0_i32_0 = arith.constant 0 : i32
    %c0_i32_1 = arith.constant 0 : i32
    %c0_i32_2 = arith.constant 0 : i32
    return %c0_i32, %c0_i32_0, %c0_i32_1 : i32, i32, i32
  }
  func.func @transform_4(%arg0: i32) -> (i32, i32) {
    %c0_i32 = arith.constant 0 : i32
    %c0_i32_0 = arith.constant 0 : i32
    %c0_i32_1 = arith.constant 0 : i32
    return %c0_i32, %c0_i32_0 : i32, i32
  }
  func.func @transform_5(%arg0: i32) -> (i32, i32) {
    %c0_i32 = arith.constant 0 : i32
    %c0_i32_0 = arith.constant 0 : i32
    %c0_i32_1 = arith.constant 0 : i32
    return %c0_i32, %c0_i32_0 : i32, i32
  }
  func.func @transform_6(%arg0: i32) -> (i32, i32) {
    %c0_i32 = arith.constant 0 : i32
    %c0_i32_0 = arith.constant 0 : i32
    %c0_i32_1 = arith.constant 0 : i32
    return %c0_i32, %c0_i32_0 : i32, i32
  }
  func.func @transform_7(%arg0: i32) -> (i32, i32) {
    %c0_i32 = arith.constant 0 : i32
    %c0_i32_0 = arith.constant 0 : i32
    %c0_i32_1 = arith.constant 0 : i32
    return %c0_i32, %c0_i32_0 : i32, i32
  }
  func.func @transform_8(%arg0: i32) -> (i32, i32) {
    %c0_i32 = arith.constant 0 : i32
    %c0_i32_0 = arith.constant 0 : i32
    %c0_i32_1 = arith.constant 0 : i32
    return %c0_i32, %c0_i32_0 : i32, i32
  }
}

</mosaic_0001>

<bundles_post_ra>
// kernel: tpu_custom_call.1
= control target key start
LH: loop header
LB: loop body
LE: loop exit
PB: predicated region body
PF: predicated region fallthrough
CT: control target
= control target key end

     0   :  { %13 = vsyncpa [#allocation3], 0  ;;  %s14544_s0 = inlined_call_operand.hbm [shape: f32[16,32], index: 0, kind: input, shape index: {}]   ;;  %s14545_s1 = inlined_call_operand.hbm [shape: f32[2,32,384], index: 1, kind: input, shape index: {}]   ;;  %s14546_s2 = inlined_call_operand.vmem [shape: f32[2,6,32], index: 2, kind: input, shape index: {}]   ;;  %s14547_s3 = inlined_call_operand.hbm [shape: f32[2,1,128], index: 3, kind: input, shape index: {}]   ;;  %s14548_s4 = inlined_call_operand.hbm [shape: f32[16,64], index: 4, kind: input, shape index: {}]   ;;  %s14549_s5 = inlined_call_operand.vmem [shape: f32[64,64], index: 5, kind: input, shape index: {}]   ;;  %s14550_s6 = inlined_call_operand.vmem [shape: f32[64,64], index: 6, kind: input, shape index: {}]   ;;  %s14551_s7 = inlined_call_operand.vmem [shape: f32[64,32], index: 7, kind: input, shape index: {}]   ;;  %s14552_s8 = inlined_call_operand.hbm [shape: f32[16,128], index: 8, kind: output, shape index: {}]  }
   0x1   :  { %14 = vsyncpa [#allocation6], 0 }
   0x2   :  { %15 = vsyncpa [#allocation9], 0 }
   0x3   :  { %16 = vsyncpa [#allocation4], 0  ;;  %s11934_s27 = smov [#allocation5]  }
   0x4   :  { %s34_s28 = sshll.u32 %s11934_s27, 4  ;;  %s35_s28 = int_to_ptr.vmem [resolvable:$true] %s34_s28 }
   0x5   :  { %s11834_s29 = scalar_lea.vmem %s35_s28, 3072  ;;  %p11839_p1 = scmp.lt.s32.totalorder %s35_s28, %s35_s28 }
   0x6   :  { %p11835_p0 = scmp.ne.s32.totalorder %s35_s28, %s11834_s29  ;;  %p11840_p2 = scmp.lt.s32.totalorder %s11834_s29, %s11834_s29 }
   0x8   :  { %p11841_p3 = por %p11840_p2, %p11839_p1 }
   0xa   :  { %p11842_p4 = pnand %p11841_p3, %p11835_p0 }
   0xc   :  { %11845 = shalt.err (!%p11842_p4)
}
   0xd   :  { %s11935_s30 = smov 384   ;;  %s11936_s9 = smov 24  }
   0xe   :  { %40 = dma.hbm_to_vmem [thread:$0]  %s14545_s1, 3072, %s35_s28, [#allocation6], %s11935_s30, %s11935_s30, %s11936_s9  }
   0xf   :  { %s11937_s12 = smov [#allocation2]  }
  0x10   :  { %s22_s13 = sshll.u32 %s11937_s12, 4  ;;  %s23_s13 = int_to_ptr.vmem [resolvable:$true] %s22_s13 }
  0x11   :  { %s11854_s14 = scalar_lea.vmem %s23_s13, 256  ;;  %p11859_p6 = scmp.lt.s32.totalorder %s23_s13, %s23_s13 }
  0x12   :  { %p11855_p5 = scmp.ne.s32.totalorder %s23_s13, %s11854_s14  ;;  %p11860_p7 = scmp.lt.s32.totalorder %s11854_s14, %s11854_s14 }
  0x14   :  { %p11861_p8 = por %p11860_p7, %p11859_p6 }
  0x16   :  { %p11862_p9 = pnand %p11861_p8, %p11855_p5 }
  0x18   :  { %11865 = shalt.err (!%p11862_p9)
}
  0x19   :  { %s11938_s15 = smov 128   ;;  %s11939_s16 = smov 8  }
  0x1a   :  { %28 = dma.hbm_to_vmem [thread:$0]  %s14544_s0, 256, %s23_s13, [#allocation3], %s11938_s15, %s11938_s15, %s11939_s16  }
  0x1b   :  { %s11940_s1 = smov [#allocation7]  }
  0x1c   :  { %s48_s19 = sshll.u32 %s11940_s1, 4  ;;  %s49_s19 = int_to_ptr.vmem [resolvable:$true] %s48_s19 }
  0x1d   :  { %s11874_s20 = scalar_lea.vmem %s49_s19, 32  ;;  %p11879_p11 = scmp.lt.s32.totalorder %s49_s19, %s49_s19 }
  0x1e   :  { %p11875_p10 = scmp.ne.s32.totalorder %s49_s19, %s11874_s20  ;;  %p11880_p12 = scmp.lt.s32.totalorder %s11874_s20, %s11874_s20 }
  0x20   :  { %p11881_p13 = por %p11880_p12, %p11879_p11 }
  0x22   :  { %p11882_p0 = pnand %p11881_p13, %p11875_p10 }
  0x24   :  { %11885 = shalt.err (!%p11882_p0)
}
  0x25   :  { %s11941_s21 = smov 16   ;;  %s11942_s22 = smov 1  }
  0x26   :  { %54 = dma.hbm_to_vmem [thread:$0]  %s14547_s3, 32, %s49_s19, [#allocation6], %s11941_s21, %s11941_s21, %s11942_s22  }
  0x27   :  { %s11943_s25 = smov [#allocation8]  }
  0x28   :  { %s60_s26 = sshll.u32 %s11943_s25, 4  ;;  %s61_s26 = int_to_ptr.vmem [resolvable:$true] %s60_s26 }
  0x29   :  { %s11894_s0 = scalar_lea.vmem %s61_s26, 256  ;;  %p11899_p2 = scmp.lt.s32.totalorder %s61_s26, %s61_s26 }
  0x2a   :  { %p11895_p1 = scmp.ne.s32.totalorder %s61_s26, %s11894_s0  ;;  %p11900_p3 = scmp.lt.s32.totalorder %s11894_s0, %s11894_s0 }
  0x2c   :  { %p11901_p4 = por %p11900_p3, %p11899_p2 }
  0x2e   :  { %p11902_p5 = pnand %p11901_p4, %p11895_p1 }
  0x30   :  { %11905 = shalt.err (!%p11902_p5)
}
  0x31   :  { %66 = dma.hbm_to_vmem [thread:$0]  %s14548_s4, 256, %s61_s26, [#allocation9], %s11938_s15, %s11938_s15, %s11939_s16  }
  0x32   :  { %11926 = dma.done.wait [#allocation3], 256  }
  0x33   :  { %11927 = vsyncadd [#allocation3], 4294967040 }
  0x34   :  { %11928 = dma.done.wait [#allocation6], 3104  }
  0x35   :  { %11929 = vsyncadd [#allocation6], 4294964192 }
  0x36   :  { %11930 = dma.done.wait [#allocation9], 256  }
  0x37   :  { %11931 = vsyncadd [#allocation9], 4294967040  ;;  %vm127_vm0 = vcmask 261120   ;;  %v85_v0 = vld [vmem:[#allocation2] sm:$0xff]  ;;  %v86_v1 = vld [vmem:[#allocation2 + $0x8] sm:$0xff]  ;;  %s11944_s9 = smov 32   ;;  %v155_v51 = vlaneseq }
  0x38   :  { %v128_v2 = vsel %vm127_vm0, %v85_v0, 0.0  ;;  %v131_v3 = vsel %vm127_vm0, %v86_v1, 0.0  ;;  %v12023_v14 = vld [vmem:[#allocation5 + $0x48] sm:$0xff]  ;;  %v12025_v15 = vld [vmem:[#allocation5 + $0x30] sm:$0xff]  ;;  %v12027_v16 = vld [vmem:[#allocation5 + $0x18] sm:$0xff]  ;;  %vm1367_vm1 = vcmask 523264  }
  0x39   :  { %129 = vadd.xlane.f32.xlu0 %v128_v2  ;;  %v12030_v17 = vand.u32 4294901760, %v12023_v14  ;;  %v12033_v18 = vand.u32 4294901760, %v12025_v15  ;;  %v12036_v19 = vand.u32 4294901760, %v12027_v16  ;;  %v12071_v31 = vld [vmem:[#allocation5] sm:$0xff]  ;;  %v104_v39 = vld [vmem:[%s14550_s6 + $0x38] sm:$0xff]  ;;  %v102_v40 = vld [vmem:[%s14550_s6 + $0x28] sm:$0xff] }
  0x3a   :  { %v12074_v32 = vand.u32 4294901760, %v12071_v31  ;;  %v103_v38 = vld [vmem:[%s14550_s6 + $0x30] sm:$0xff]  ;;  %v100_v41 = vld [vmem:[%s14550_s6 + $0x18] sm:$0xff]  ;;  %v101_v42 = vld [vmem:[%s14550_s6 + $0x20] sm:$0xff]  ;;  %v12121_v53 = vshrl.u32 %v155_v51, 7  ;;  %s11946_s11 = smov 64  }
  0x3b   :  { %v12040_v20 = vsub.f32 %v12023_v14, %v12030_v17  ;;  %v12044_v21 = vsub.f32 %v12025_v15, %v12033_v18  ;;  %v12048_v22 = vsub.f32 %v12027_v16, %v12036_v19  ;;  %10334 = vmatprep.subr.mxu0 %v12030_v17  ;;  %v98_v43 = vld [vmem:[%s14550_s6 + $0x8] sm:$0xff]  ;;  %v99_v44 = vld [vmem:[%s14550_s6 + $0x10] sm:$0xff]  ;;  %v97_v45 = vld [vmem:[%s14550_s6] sm:$0xff]  ;;  %s11945_s6 = smov 96   ;;  %vm9539_vm2 = vcmask 785408  }
  0x3c   :  { %10335 = vmatpush3.msra.mxu0 %v12030_v17  ;;  %v12078_v34 = vsub.f32 %v12071_v31, %v12074_v32  ;;  %v14554_v54 = vsub.s32 0, %v12121_v53  ;;  %v125_v55 = vld [vmem:[%s14546_s2] sm:$0x3f]  ;;  %v14553_v56 = vsub.s32 1, %v12121_v53 }
  0x3d   :  { %132 = vadd.xlane.f32.xlu0 %v131_v3  ;;  %v12053_v23 = vand.u32 4294901760, %v12040_v20  ;;  %v12056_v24 = vand.u32 4294901760, %v12044_v21  ;;  %v12059_v25 = vand.u32 4294901760, %v12048_v22  ;;  %10336 = vmatprep.subr.mxu0 %v12033_v18 }
  0x3e   :  { %10337 = vmatpush3.msra.mxu0 %v12033_v18  ;;  %v12083_v35 = vand.u32 4294901760, %v12078_v34  ;;  %v158_v57 = vrot.slane %v125_v55, %v14554_v54  ;;  %v164_v60 = vrot.slane %v125_v55, %v14553_v56 }
  0x3f   :  { %v290_v26 = vsub.f32 %v12040_v20, %v12053_v23  ;;  %v297_v27 = vsub.f32 %v12044_v21, %v12056_v24  ;;  %v304_v28 = vsub.f32 %v12048_v22, %v12059_v25  ;;  %10338 = vmatprep.subr.mxu0 %v12036_v19 }
  0x40   :  { %10339 = vmatpush3.msra.mxu0 %v12036_v19  ;;  %v311_v36 = vsub.f32 %v12078_v34, %v12083_v35 }
  0x41   :  { %v291_v29 = vand.u32 4294901760, %v290_v26  ;;  %v298_v30 = vand.u32 4294901760, %v297_v27  ;;  %v305_v33 = vand.u32 4294901760, %v304_v28  ;;  %10340 = vmatprep.subr.mxu0 %v12074_v32 }
  0x42   :  { %10341 = vmatpush3.msra.mxu0 %v12074_v32  ;;  %v312_v37 = vand.u32 4294901760, %v311_v36 }
  0x43   :  { %10345 = vmatprep.subr.mxu1 %v291_v29  ;;  %10356 = vmatprep.subr.mxu0 %v12040_v20 }
  0x44   :  { %10346 = vmatpush3.msra.mxu1 %v291_v29 }
  0x45   :  { %10347 = vmatprep.subr.mxu1 %v298_v30 }
  0x46   :  { %10348 = vmatpush3.msra.mxu1 %v298_v30 }
  0x47   :  { %10349 = vmatprep.subr.mxu1 %v305_v33 }
  0x48   :  { %10350 = vmatpush3.msra.mxu1 %v305_v33 }
  0x49   :  { %10351 = vmatprep.subr.mxu1 %v312_v37 }
  0x4a   :  { %10352 = vmatpush3.msra.mxu1 %v312_v37 }
  0x4b   :  { %10367 = vmatprep.subr.mxu1 %v12030_v17 }
  0x53   :  { %723 = vrot.lane.b32.xlu0 %v104_v39, %s11944_s9 }
  0x57   :  { %715 = vrot.lane.b32.xlu0 %v100_v41, %s11944_s9 }
  0x5b   :  { %711 = vrot.lane.b32.xlu0 %v98_v43, %s11944_s9 }
  0xc2   :  { %v130_v4 = vpop.xlane.xlu0 %129 }
  0xc3   :  { %v135_v5 = vmul.f32 0.03125, %v130_v4 }
  0xc5   :  { %v12013_v6 = vsub.f32 %v85_v0, %v135_v5 }
  0xc6   :  { %v133_v7 = vpop.xlane.xlu0 %132 }
  0xc7   :  { %v136_v8 = vmul.f32 0.03125, %v133_v7  ;;  %v139_v9 = vmul.f32 %v12013_v6, %v12013_v6 }
  0xc9   :  { %v12017_v10 = vsub.f32 %v86_v1, %v136_v8  ;;  %v141_v11 = vsel %vm127_vm0, %v139_v9, 0.0 }
  0xca   :  { %142 = vadd.xlane.f32.xlu1 %v141_v11 }
  0xcb   :  { %v140_v12 = vmul.f32 %v12017_v10, %v12017_v10 }
  0xcd   :  { %v144_v13 = vsel %vm127_vm0, %v140_v12, 0.0 }
  0xce   :  { %145 = vadd.xlane.f32.xlu1 %v144_v13 }
  0xdf   :  { %721 = vrot.lane.b32.xlu1 %v103_v38, %s11944_s9  ;;  %v12170_v38 = vpop.permute.xlu0 %723 }
  0xe3   :  { %719 = vrot.lane.b32.xlu1 %v102_v40, %s11944_s9 }
  0xe7   :  { %717 = vrot.lane.b32.xlu1 %v101_v42, %s11944_s9 }
  0xeb   :  { %713 = vrot.lane.b32.xlu1 %v99_v44, %s11944_s9 }
  0xef   :  { %709 = vrot.lane.b32.xlu1 %v97_v45, %s11944_s9 }
 0x153   :  { %v143_v46 = vpop.xlane.xlu1 %142 }
 0x154   :  { %v147_v47 = vmul.f32 0.03125, %v143_v46 }
 0x156   :  { %v149_v48 = vadd.f32 1e-05, %v147_v47 }
 0x157   :  { %v146_v49 = vpop.xlane.xlu1 %145 }
 0x158   :  { %11788 = vrsqrt.f32 %v149_v48  ;;  %v148_v50 = vmul.f32 0.03125, %v146_v49  ;;  %v12186_v48 = vpop.permute.xlu0 %715 }
 0x15a   :  { %v150_v52 = vadd.f32 1e-05, %v148_v50 }
 0x15c   :  { %11790 = vrsqrt.f32 %v150_v52 }
 0x165   :  { %v11789_v58 = vpop.eup %11788 }
 0x166   :  { %v153_v59 = vmul.f32 %v11789_v58, %v12013_v6 }
 0x168   :  { %v159_v61 = vmul.f32 %v158_v57, %v153_v59  ;;  %v12214_v59 = vpop.permute.xlu0 %711 }
 0x169   :  { %v11791_v62 = vpop.eup %11790 }
 0x16a   :  { %v165_v63 = vadd.f32 %v164_v60, %v159_v61  ;;  %v154_v0 = vmul.f32 %v11791_v62, %v12017_v10 }
 0x16c   :  { %v168_v1 = vsel %vm127_vm0, %v165_v63, 0  ;;  %v160_v2 = vmul.f32 %v158_v57, %v154_v0 }
 0x16d   :  { %v242_v3 = vand.u32 4294901760, %v168_v1 }
 0x16e   :  { %v166_v4 = vadd.f32 %v164_v60, %v160_v2 }
 0x16f   :  { %10353 = vmatprep.mubr.f32.mxu1 %v242_v3  ;;  %v243_v5 = vsub.f32 %v168_v1, %v242_v3 }
 0x170   :  { %v171_v7 = vsel %vm127_vm0, %v166_v4, 0 }
 0x171   :  { %v252_v8 = vand.u32 4294901760, %v171_v7  ;;  %v244_v9 = vand.u32 4294901760, %v243_v5 }
 0x173   :  { %v253_v6 = vsub.f32 %v171_v7, %v252_v8  ;;  %10354 = vmatmul.mubr.f32.vlgmr.msra.gmra.mxu1 %v252_v8  ;;  %v245_v11 = vsub.f32 %v243_v5, %v244_v9 }
 0x174   :  { %10368 = vmatpush3.msra.mxu1 %v12030_v17  ;;  %10375 = vmatprep.mubr.f32.mxu1 %v244_v9 }
 0x175   :  { %10369 = vmatprep.subr.mxu1 %v12033_v18  ;;  %v246_v10 = vand.u32 4294901760, %v245_v11  ;;  %v254_v12 = vand.u32 4294901760, %v253_v6 }
 0x176   :  { %10370 = vmatpush3.msra.mxu1 %v12033_v18 }
 0x177   :  { %10371 = vmatprep.subr.mxu1 %v12036_v19  ;;  %10342 = vmatprep.mubr.f32.mxu0 %v246_v10  ;;  %v255_v13 = vsub.f32 %v253_v6, %v254_v12 }
 0x178   :  { %10372 = vmatpush3.msra.mxu1 %v12036_v19 }
 0x179   :  { %10373 = vmatprep.subr.mxu1 %v12074_v32  ;;  %v256_v26 = vand.u32 4294901760, %v255_v13 }
 0x17a   :  { %10374 = vmatpush3.msra.mxu1 %v12074_v32 }
 0x17b   :  { %10376 = vmatmul.mubr.f32.vlgmr.msra.gmra.mxu1 %v254_v12  ;;  %10389 = vmatprep.subr.mxu1 %v12030_v17 }
 0x17c   :  { %10343 = vmatmul.mubr.f32.vlgmr.msra.gmra.mxu0 %v256_v26  ;;  %10390 = vmatpush3.msra.mxu1 %v12030_v17 }
 0x17d   :  { %10357 = vmatpush3.msra.mxu0 %v12040_v20  ;;  %10397 = vmatprep.mubr.f32.mxu1 %v242_v3 }
 0x17e   :  { %10358 = vmatprep.subr.mxu0 %v12044_v21  ;;  %10364 = vmatprep.mubr.f32.mxu0 %v243_v5 }
 0x17f   :  { %10391 = vmatprep.subr.mxu1 %v12033_v18  ;;  %10359 = vmatpush3.msra.mxu0 %v12044_v21 }
 0x180   :  { %10392 = vmatpush3.msra.mxu1 %v12033_v18  ;;  %10360 = vmatprep.subr.mxu0 %v12048_v22 }
 0x181   :  { %10393 = vmatprep.subr.mxu1 %v12036_v19  ;;  %10361 = vmatpush3.msra.mxu0 %v12048_v22  ;;  %v12166_v22 = vpop.permute.xlu1 %721 }
 0x182   :  { %10394 = vmatpush3.msra.mxu1 %v12036_v19  ;;  %10362 = vmatprep.subr.mxu0 %v12078_v34 }
 0x183   :  { %10395 = vmatprep.subr.mxu1 %v12074_v32  ;;  %10363 = vmatpush3.msra.mxu0 %v12078_v34 }
 0x184   :  { %10396 = vmatpush3.msra.mxu1 %v12074_v32  ;;  %10365 = vmatmul.mubr.f32.vlgmr.msra.gmra.mxu0 %v253_v6 }
 0x185   :  { %10378 = vmatprep.subr.mxu0 %v12053_v23  ;;  %10398 = vmatmul.mubr.f32.vlgmr.msra.gmra.mxu1 %v252_v8 }
 0x186   :  { %10379 = vmatpush3.msra.mxu0 %v12053_v23  ;;  %10386 = vmatprep.mubr.f32.mxu0 %v242_v3 }
 0x187   :  { %10380 = vmatprep.subr.mxu0 %v12056_v24 }
 0x188   :  { %10381 = vmatpush3.msra.mxu0 %v12056_v24 }
 0x189   :  { %10382 = vmatprep.subr.mxu0 %v12059_v25 }
 0x18a   :  { %10383 = vmatpush3.msra.mxu0 %v12059_v25  ;;  %v12168_v25 = vpop.permute.xlu1 %719 }
 0x18b   :  { %10384 = vmatprep.subr.mxu0 %v12083_v35 }
 0x18c   :  { %10385 = vmatpush3.msra.mxu0 %v12083_v35 }
 0x18d   :  { %10387 = vmatmul.mubr.f32.vlgmr.msra.gmra.mxu0 %v252_v8 }
 0x18e   :  { %v12174_v43 = vpop.permute.xlu1 %717 }
 0x192   :  { %v12196_v51 = vpop.permute.xlu1 %713 }
 0x196   :  { %v12224_v62 = vpop.permute.xlu1 %709 }
 0x233   :  { %v10355_v18 = vpop.f32.mrf.mxu1 }
 0x235   :  { %v349_v21 = vpop.f32.mrf.mxu1 }
 0x23b   :  { %v10377_v27 = vpop.f32.mrf.mxu1 }
 0x23c   :  { %v10344_v17 = vpop.f32.mrf.mxu0 }
 0x23d   :  { %v356_v23 = vadd.f32 %v10355_v18, %v10344_v17  ;;  %v519_v32 = vpop.f32.mrf.mxu1 }
 0x23e   :  { %v248_v19 = vpop.f32.mrf.mxu0 }
 0x23f   :  { %v350_v24 = vadd.f32 %v349_v21, %v248_v19 }
 0x244   :  { %v10366_v20 = vpop.f32.mrf.mxu0 }
 0x245   :  { %v443_v29 = vadd.f32 %v10366_v20, %v356_v23  ;;  %v10399_v34 = vpop.f32.mrf.mxu1 }
 0x246   :  { %v435_v28 = vpop.f32.mrf.mxu0 }
 0x247   :  { %v436_v30 = vadd.f32 %v435_v28, %v350_v24  ;;  %v528_v33 = vadd.f32 %v10377_v27, %v443_v29  ;;  %v691_v42 = vpop.f32.mrf.mxu1 }
 0x249   :  { %v520_v37 = vadd.f32 %v519_v32, %v436_v30 }
 0x24d   :  { %v10388_v35 = vpop.f32.mrf.mxu0 }
 0x24e   :  { %v617_v36 = vadd.f32 %v10388_v35, %v528_v33 }
 0x24f   :  { %v610_v39 = vpop.f32.mrf.mxu0 }
 0x250   :  { %v12172_v40 = vadd.f32 %v10399_v34, %v617_v36  ;;  %v611_v41 = vadd.f32 %v610_v39, %v520_v37 }
 0x252   :  { %v692_v44 = vadd.f32 %v691_v42, %v611_v41  ;;  %v12178_v45 = vmul.f32 %v12170_v38, %v12172_v40  ;;  %v12194_v50 = vmul.f32 %v12168_v25, %v12172_v40  ;;  %v12210_v58 = vmul.f32 %v12186_v48, %v12172_v40 }
 0x253   :  { %v12228_v0 = vmul.f32 %v12214_v59, %v12172_v40 }
 0x254   :  { %763 = vrot.lane.b32.xlu0 %v12178_v45, %s11945_s6  ;;  %v12183_v46 = vmul.f32 %v12166_v22, %v692_v44  ;;  %v766_v47 = vsel %vm127_vm0, %v692_v44, 0  ;;  %v12205_v55 = vmul.f32 %v12174_v43, %v692_v44  ;;  %v12220_v61 = vmul.f32 %v12196_v51, %v692_v44 }
 0x255   :  { %v12188_v49 = vand.u32 4294901760, %v766_v47  ;;  %v12233_v1 = vmul.f32 %v12224_v62, %v692_v44 }
 0x256   :  { %761 = vrot.lane.b32.xlu1 %v12183_v46, %s11945_s6 }
 0x257   :  { %10435 = vmatprep.mubr.f32.mxu1 %v12188_v49  ;;  %v12200_v52 = vsub.f32 %v766_v47, %v12188_v49 }
 0x258   :  { %759 = vrot.lane.b32.xlu0 %v12194_v50, %s11945_s6 }
 0x259   :  { %v862_v57 = vand.u32 4294901760, %v12200_v52 }
 0x25a   :  { %757 = vrot.lane.b32.xlu1 %v12205_v55, %s11945_s6 }
 0x25b   :  { %v863_v60 = vsub.f32 %v12200_v52, %v862_v57 }
 0x25c   :  { %755 = vrot.lane.b32.xlu0 %v12210_v58, %s11945_s6 }
 0x25d   :  { %v864_v63 = vand.u32 4294901760, %v863_v60 }
 0x25e   :  { %753 = vrot.lane.b32.xlu1 %v12220_v61, %s11945_s6 }
 0x25f   :  { %10416 = vmatprep.mubr.f32.mxu0 %v864_v63  ;;  %v769_v63 = vsel %vm127_vm0, %v12172_v40, 0 }
 0x260   :  { %751 = vrot.lane.b32.xlu0 %v12228_v0, %s11945_s6 }
 0x262   :  { %749 = vrot.lane.b32.xlu1 %v12233_v1, %s11945_s6 }
 0x2c6   :  { %v764_v2 = vpop.permute.xlu0 %763 }
 0x2c7   :  { %v785_v3 = vsel %vm127_vm0, %v764_v2, 0 }
 0x2c8   :  { %v12240_v4 = vand.u32 4294901760, %v785_v3  ;;  %v762_v5 = vpop.permute.xlu1 %761 }
 0x2c9   :  { %v783_v7 = vsel %vm127_vm0, %v762_v5, 0 }
 0x2ca   :  { %v12244_v8 = vsub.f32 %v785_v3, %v12240_v4  ;;  %v12246_v9 = vand.u32 4294901760, %v783_v7  ;;  %10400 = vmatprep.subr.mxu0 %v12240_v4  ;;  %v760_v6 = vpop.permute.xlu0 %759 }
 0x2cb   :  { %v781_v11 = vsel %vm127_vm0, %v760_v6, 0  ;;  %10401 = vmatpush3.xpose.msra.mxu0 %v12240_v4 }
 0x2cc   :  { %v12252_v10 = vsub.f32 %v783_v7, %v12246_v9  ;;  %v12254_v12 = vand.u32 4294901760, %v781_v11  ;;  %v758_v13 = vpop.permute.xlu1 %757  ;;  %10402 = vmatprep.subr.mxu0 %v12246_v9  ;;  %v12258_v26 = vand.u32 4294901760, %v12244_v8 }
 0x2cd   :  { %v779_v17 = vsel %vm127_vm0, %v758_v13, 0 }
 0x2ce   :  { %v12262_v18 = vsub.f32 %v781_v11, %v12254_v12  ;;  %v12264_v19 = vand.u32 4294901760, %v779_v17  ;;  %v756_v20 = vpop.permute.xlu0 %755  ;;  %v900_v21 = vsub.f32 %v12244_v8, %v12258_v26  ;;  %v12269_v23 = vand.u32 4294901760, %v12252_v10 }
 0x2cf   :  { %v777_v27 = vsel %vm127_vm0, %v756_v20, 0  ;;  %10403 = vmatpush3.xpose.msra.mxu0 %v12246_v9  ;;  %v12313_v11 = vand.u32 4294901760, %v769_v63 }
 0x2d0   :  { %v12274_v28 = vsub.f32 %v779_v17, %v12264_v19  ;;  %v12276_v24 = vand.u32 4294901760, %v777_v27  ;;  %v754_v29 = vpop.permute.xlu1 %753  ;;  %10404 = vmatprep.subr.mxu0 %v12254_v12  ;;  %v901_v30 = vand.u32 4294901760, %v900_v21  ;;  %v907_v32 = vsub.f32 %v12252_v10, %v12269_v23 }
 0x2d1   :  { %v775_v33 = vsel %vm127_vm0, %v754_v29, 0  ;;  %v12283_v34 = vand.u32 4294901760, %v12262_v18 }
 0x2d2   :  { %v12286_v35 = vsub.f32 %v777_v27, %v12276_v24  ;;  %v12288_v36 = vand.u32 4294901760, %v775_v33  ;;  %10419 = vmatprep.subr.mxu1 %v901_v30  ;;  %v752_v37 = vpop.permute.xlu0 %751  ;;  %v908_v39 = vand.u32 4294901760, %v907_v32  ;;  %v12291_v41 = vand.u32 4294901760, %v12274_v28 }
 0x2d3   :  { %v773_v42 = vsel %vm127_vm0, %v752_v37, 0  ;;  %10405 = vmatpush3.xpose.msra.mxu0 %v12254_v12  ;;  %10420 = vmatpush3.xpose.msra.mxu1 %v901_v30  ;;  %v914_v44 = vsub.f32 %v12262_v18, %v12283_v34  ;;  %v12326_v27 = vsub.f32 %v769_v63, %v12313_v11 }
 0x2d4   :  { %v750_v47 = vpop.permute.xlu1 %749  ;;  %10406 = vmatprep.subr.mxu0 %v12264_v19  ;;  %10421 = vmatprep.subr.mxu1 %v908_v39  ;;  %v12298_v60 = vand.u32 4294901760, %v773_v42  ;;  %v12303_v2 = vsub.f32 %v775_v33, %v12288_v36  ;;  %v921_v5 = vsub.f32 %v12274_v28, %v12291_v41  ;;  %v12308_v7 = vand.u32 4294901760, %v12286_v35 }
 0x2d5   :  { %v915_v3 = vand.u32 4294901760, %v914_v44  ;;  %v771_v6 = vsel %vm127_vm0, %v750_v47, 0  ;;  %v872_v37 = vand.u32 4294901760, %v12326_v27 }
 0x2d6   :  { %v940_v40 = vsub.f32 %v773_v42, %v12298_v60  ;;  %v12316_v13 = vand.u32 4294901760, %v771_v6  ;;  %v922_v17 = vand.u32 4294901760, %v921_v5  ;;  %v928_v20 = vsub.f32 %v12286_v35, %v12308_v7 }
 0x2d7   :  { %10407 = vmatpush3.xpose.msra.mxu0 %v12264_v19  ;;  %10422 = vmatpush3.xpose.msra.mxu1 %v908_v39  ;;  %v12321_v21 = vand.u32 4294901760, %v12303_v2  ;;  %v873_v47 = vsub.f32 %v12326_v27, %v872_v37 }
 0x2d8   :  { %10408 = vmatprep.subr.mxu0 %v12276_v24  ;;  %10423 = vmatprep.subr.mxu1 %v915_v3  ;;  %v947_v29 = vsub.f32 %v771_v6, %v12316_v13  ;;  %v929_v30 = vand.u32 4294901760, %v928_v20  ;;  %v12331_v33 = vand.u32 4294901760, %v940_v40 }
 0x2d9   :  { %v935_v32 = vsub.f32 %v12303_v2, %v12321_v21  ;;  %v874_v5 = vand.u32 4294901760, %v873_v47 }
 0x2da   :  { %v942_v42 = vsub.f32 %v940_v40, %v12331_v33  ;;  %v12337_v44 = vand.u32 4294901760, %v947_v29 }
 0x2db   :  { %10409 = vmatpush3.xpose.msra.mxu0 %v12276_v24  ;;  %10424 = vmatpush3.xpose.msra.mxu1 %v915_v3  ;;  %v936_v39 = vand.u32 4294901760, %v935_v32  ;;  %v95_v32 = vld [vmem:[%s14549_s5 + $0x30] sm:$0xff] }
 0x2dc   :  { %10410 = vmatprep.subr.mxu0 %v12288_v36  ;;  %10425 = vmatprep.subr.mxu1 %v922_v17  ;;  %v943_v63 = vand.u32 4294901760, %v942_v42  ;;  %v949_v3 = vsub.f32 %v947_v29, %v12337_v44 }
 0x2de   :  { %v950_v6 = vand.u32 4294901760, %v949_v3 }
 0x2df   :  { %10411 = vmatpush3.xpose.msra.mxu0 %v12288_v36  ;;  %10426 = vmatpush3.xpose.msra.mxu1 %v922_v17 }
 0x2e0   :  { %10412 = vmatprep.subr.mxu0 %v12298_v60  ;;  %10427 = vmatprep.subr.mxu1 %v929_v30 }
 0x2e3   :  { %10413 = vmatpush3.xpose.msra.mxu0 %v12298_v60  ;;  %10428 = vmatpush3.xpose.msra.mxu1 %v929_v30 }
 0x2e4   :  { %10414 = vmatprep.subr.mxu0 %v12316_v13  ;;  %10429 = vmatprep.subr.mxu1 %v936_v39 }
 0x2e7   :  { %10415 = vmatpush3.xpose.msra.mxu0 %v12316_v13  ;;  %10430 = vmatpush3.xpose.msra.mxu1 %v936_v39  ;;  %v94_v39 = vld [vmem:[%s14549_s5 + $0x28] sm:$0xff] }
 0x2e8   :  { %10431 = vmatprep.subr.mxu1 %v943_v63  ;;  %10438 = vmatprep.subr.mxu0 %v12244_v8  ;;  %v12445_v47 = vand.u32 4294901760, %v94_v39 }
 0x2ea   :  { %10417 = vmatmul.mubr.f32.vlgmr.msra.gmra.mxu0 %v874_v5 }
 0x2eb   :  { %10432 = vmatpush3.xpose.msra.mxu1 %v943_v63  ;;  %10439 = vmatpush3.xpose.msra.mxu0 %v12244_v8  ;;  %v93_v63 = vld [vmem:[%s14549_s5 + $0x20] sm:$0xff] }
 0x2ec   :  { %10454 = vmatprep.mubr.f32.mxu0 %v12200_v52  ;;  %10433 = vmatprep.subr.mxu1 %v950_v6 }
 0x2ed   :  { %10440 = vmatprep.subr.mxu0 %v12252_v10 }
 0x2ef   :  { %10434 = vmatpush3.xpose.msra.mxu1 %v950_v6  ;;  %10441 = vmatpush3.xpose.msra.mxu0 %v12252_v10  ;;  %v12458_v6 = vsub.f32 %v94_v39, %v12445_v47 }
 0x2f0   :  { %10442 = vmatprep.subr.mxu0 %v12262_v18  ;;  %10457 = vmatprep.subr.mxu1 %v12240_v4 }
 0x2f1   :  { %14666 = vst [vmem:[#allocation19_spill] sm:$0xff] %v12458_v6 }
 0x2f2   :  { %10436 = vmatmul.mubr.f32.vlgmr.msra.gmra.mxu1 %v12313_v11 }
 0x2f3   :  { %10443 = vmatpush3.xpose.msra.mxu0 %v12262_v18  ;;  %10458 = vmatpush3.xpose.msra.mxu1 %v12240_v4 }
 0x2f4   :  { %10473 = vmatprep.mubr.f32.mxu1 %v862_v57  ;;  %10444 = vmatprep.subr.mxu0 %v12274_v28 }
 0x2f5   :  { %10459 = vmatprep.subr.mxu1 %v12246_v9 }
 0x2f7   :  { %10445 = vmatpush3.xpose.msra.mxu0 %v12274_v28  ;;  %10460 = vmatpush3.xpose.msra.mxu1 %v12246_v9 }
 0x2f8   :  { %10446 = vmatprep.subr.mxu0 %v12286_v35  ;;  %10461 = vmatprep.subr.mxu1 %v12254_v12 }
 0x2fb   :  { %10447 = vmatpush3.xpose.msra.mxu0 %v12286_v35  ;;  %10462 = vmatpush3.xpose.msra.mxu1 %v12254_v12 }
 0x2fc   :  { %10448 = vmatprep.subr.mxu0 %v12303_v2  ;;  %10463 = vmatprep.subr.mxu1 %v12264_v19 }
 0x2ff   :  { %10449 = vmatpush3.xpose.msra.mxu0 %v12303_v2  ;;  %10464 = vmatpush3.xpose.msra.mxu1 %v12264_v19 }
 0x300   :  { %10450 = vmatprep.subr.mxu0 %v940_v40  ;;  %10465 = vmatprep.subr.mxu1 %v12276_v24 }
 0x303   :  { %10451 = vmatpush3.xpose.msra.mxu0 %v940_v40  ;;  %10466 = vmatpush3.xpose.msra.mxu1 %v12276_v24 }
 0x304   :  { %10452 = vmatprep.subr.mxu0 %v947_v29  ;;  %10467 = vmatprep.subr.mxu1 %v12288_v36 }
 0x307   :  { %10453 = vmatpush3.xpose.msra.mxu0 %v947_v29  ;;  %10468 = vmatpush3.xpose.msra.mxu1 %v12288_v36  ;;  %v96_v29 = vld [vmem:[%s14549_s5 + $0x38] sm:$0xff] }
 0x308   :  { %10469 = vmatprep.subr.mxu1 %v12298_v60  ;;  %10476 = vmatprep.subr.mxu0 %v12258_v26  ;;  %v12424_v30 = vand.u32 4294901760, %v96_v29 }
 0x30a   :  { %10455 = vmatmul.mubr.f32.vlgmr.msra.gmra.mxu0 %v12326_v27 }
 0x30b   :  { %10470 = vmatpush3.xpose.msra.mxu1 %v12298_v60  ;;  %10477 = vmatpush3.xpose.msra.mxu0 %v12258_v26 }
 0x30c   :  { %10492 = vmatprep.mubr.f32.mxu0 %v12188_v49  ;;  %10471 = vmatprep.subr.mxu1 %v12316_v13 }
 0x30d   :  { %10478 = vmatprep.subr.mxu0 %v12269_v23 }
 0x30f   :  { %10472 = vmatpush3.xpose.msra.mxu1 %v12316_v13  ;;  %10479 = vmatpush3.xpose.msra.mxu0 %v12269_v23 }
 0x310   :  { %10480 = vmatprep.subr.mxu0 %v12283_v34  ;;  %10495 = vmatprep.subr.mxu1 %v12240_v4 }
 0x312   :  { %10474 = vmatmul.mubr.f32.vlgmr.msra.gmra.mxu1 %v872_v37  ;;  %v12432_v37 = vand.u32 4294901760, %v95_v32 }
 0x313   :  { %10481 = vmatpush3.xpose.msra.mxu0 %v12283_v34  ;;  %10496 = vmatpush3.xpose.msra.mxu1 %v12240_v4  ;;  %v88_v4 = vld [vmem:[#allocation8 + $0x8] sm:$0xff] }
 0x314   :  { %10511 = vmatprep.mubr.f32.mxu1 %v12188_v49  ;;  %10482 = vmatprep.subr.mxu0 %v12291_v41 }
 0x315   :  { %10497 = vmatprep.subr.mxu1 %v12246_v9 }
 0x317   :  { %10483 = vmatpush3.xpose.msra.mxu0 %v12291_v41  ;;  %10498 = vmatpush3.xpose.msra.mxu1 %v12246_v9  ;;  %v87_v9 = vld [vmem:[#allocation8] sm:$0xff] }
 0x318   :  { %10484 = vmatprep.subr.mxu0 %v12308_v7  ;;  %10499 = vmatprep.subr.mxu1 %v12254_v12 }
 0x31b   :  { %10485 = vmatpush3.xpose.msra.mxu0 %v12308_v7  ;;  %10500 = vmatpush3.xpose.msra.mxu1 %v12254_v12 }
 0x31c   :  { %10486 = vmatprep.subr.mxu0 %v12321_v21  ;;  %10501 = vmatprep.subr.mxu1 %v12264_v19 }
 0x31f   :  { %10487 = vmatpush3.xpose.msra.mxu0 %v12321_v21  ;;  %10502 = vmatpush3.xpose.msra.mxu1 %v12264_v19 }
 0x320   :  { %10488 = vmatprep.subr.mxu0 %v12331_v33  ;;  %10503 = vmatprep.subr.mxu1 %v12276_v24 }
 0x323   :  { %10489 = vmatpush3.xpose.msra.mxu0 %v12331_v33  ;;  %10504 = vmatpush3.xpose.msra.mxu1 %v12276_v24  ;;  %v12430_v33 = vsub.f32 %v96_v29, %v12424_v30 }
 0x324   :  { %10490 = vmatprep.subr.mxu0 %v12337_v44  ;;  %10505 = vmatprep.subr.mxu1 %v12288_v36 }
 0x325   :  { %14662 = vst [vmem:[#allocation15_spill] sm:$0xff] %v12430_v33  ;;  %v12440_v42 = vand.u32 4294901760, %v12430_v33 }
 0x327   :  { %10491 = vmatpush3.xpose.msra.mxu0 %v12337_v44  ;;  %10506 = vmatpush3.xpose.msra.mxu1 %v12288_v36  ;;  %14663 = vst [vmem:[#allocation16_spill] sm:$0xff] %v12440_v42  ;;  %v12443_v44 = vsub.f32 %v95_v32, %v12432_v37  ;;  %v1499_v3 = vsub.f32 %v12430_v33, %v12440_v42 }
 0x328   :  { %10507 = vmatprep.subr.mxu1 %v12298_v60  ;;  %10514 = vmatprep.subr.mxu0 %v12424_v30 }
 0x329   :  { %14664 = vst [vmem:[#allocation17_spill] sm:$0xff] %v12443_v44  ;;  %v12455_v5 = vand.u32 4294901760, %v12443_v44 }
 0x32a   :  { %10493 = vmatmul.mubr.f32.vlgmr.msra.gmra.mxu0 %v12313_v11 }
 0x32b   :  { %10508 = vmatpush3.xpose.msra.mxu1 %v12298_v60  ;;  %10515 = vmatpush3.msra.mxu0 %v12424_v30  ;;  %14665 = vst [vmem:[#allocation18_spill] sm:$0xff] %v12455_v5 }
 0x32c   :  { %10509 = vmatprep.subr.mxu1 %v12316_v13  ;;  %10516 = vmatprep.subr.mxu0 %v12432_v37 }
 0x32d   :  { %10517 = vmatpush3.msra.mxu0 %v12432_v37 }
 0x32e   :  { %10518 = vmatprep.subr.mxu0 %v12445_v47 }
 0x32f   :  { %10510 = vmatpush3.xpose.msra.mxu1 %v12316_v13  ;;  %10519 = vmatpush3.msra.mxu0 %v12445_v47 }
 0x332   :  { %10512 = vmatmul.mubr.f32.vlgmr.msra.gmra.mxu1 %v12313_v11 }
 0x3aa   :  { %v10418_v49 = vpop.f32.mrf.mxu0 }
 0x3ab   :  { %v877_v12 = vadd.f32 %v10418_v49, %v88_v4  ;;  %v12460_v49 = vand.u32 4294901760, %v93_v63  ;;  %v1506_v4 = vsub.f32 %v12443_v44, %v12455_v5 }
 0x3ac   :  { %v866_v52 = vpop.f32.mrf.mxu0 }
 0x3ad   :  { %v867_v19 = vadd.f32 %v866_v52, %v87_v9  ;;  %v92_v52 = vld [vmem:[%s14549_s5 + $0x18] sm:$0xff]  ;;  %v12477_v9 = vsub.f32 %v93_v63, %v12460_v49  ;;  %10520 = vmatprep.subr.mxu0 %v12460_v49 }
 0x3ae   :  { %10521 = vmatpush3.msra.mxu0 %v12460_v49 }
 0x3af   :  { %14668 = vst [vmem:[#allocation21_spill] sm:$0xff] %v12477_v9 }
 0x3b2   :  { %v10437_v57 = vpop.f32.mrf.mxu1 }
 0x3b3   :  { %v994_v23 = vadd.f32 %v10437_v57, %v877_v12  ;;  %v12469_v57 = vand.u32 4294901760, %v1499_v3  ;;  %v91_v12 = vld [vmem:[%s14549_s5 + $0x10] sm:$0xff] }
 0x3b4   :  { %v987_v10 = vpop.f32.mrf.mxu1 }
 0x3b5   :  { %v988_v24 = vadd.f32 %v987_v10, %v867_v19  ;;  %v12480_v10 = vand.u32 4294901760, %v92_v52  ;;  %10533 = vmatprep.subr.mxu1 %v12469_v57  ;;  %v12494_v19 = vand.u32 4294901760, %v91_v12 }
 0x3b6   :  { %10534 = vmatpush3.msra.mxu1 %v12469_v57 }
 0x3b7   :  { %14671 = vst [vmem:[#allocation24_spill] sm:$0xff] %v12494_v19  ;;  %10522 = vmatprep.subr.mxu0 %v12480_v10 }
 0x3b8   :  { %10523 = vmatpush3.msra.mxu0 %v12480_v10 }
 0x3b9   :  { %10524 = vmatprep.subr.mxu0 %v12494_v19 }
 0x3ba   :  { %10525 = vmatpush3.msra.mxu0 %v12494_v19 }
 0x3ca   :  { %v10456_v8 = vpop.f32.mrf.mxu0 }
 0x3cb   :  { %v1089_v34 = vadd.f32 %v10456_v8, %v994_v23  ;;  %v12474_v8 = vand.u32 4294901760, %v12458_v6  ;;  %v12498_v23 = vsub.f32 %v92_v52, %v12480_v10 }
 0x3cc   :  { %v1081_v26 = vpop.f32.mrf.mxu0 }
 0x3cd   :  { %v1082_v36 = vadd.f32 %v1081_v26, %v988_v24  ;;  %14667 = vst [vmem:[#allocation20_spill] sm:$0xff] %v12474_v8  ;;  %v1513_v26 = vsub.f32 %v12458_v6, %v12474_v8  ;;  %14672 = vst [vmem:[#allocation25_spill] sm:$0xff] %v12498_v23 }
 0x3cf   :  { %v12507_v24 = vand.u32 4294901760, %v1513_v26 }
 0x3d1   :  { %14673 = vst [vmem:[#allocation26_spill] sm:$0xff] %v12507_v24 }
 0x3d2   :  { %v10475_v18 = vpop.f32.mrf.mxu1 }
 0x3d3   :  { %v1178_v41 = vadd.f32 %v10475_v18, %v1089_v34  ;;  %v12492_v18 = vand.u32 4294901760, %v12477_v9 }
 0x3d4   :  { %v1169_v35 = vpop.f32.mrf.mxu1 }
 0x3d5   :  { %v1170_v2 = vadd.f32 %v1169_v35, %v1082_v36  ;;  %14670 = vst [vmem:[#allocation23_spill] sm:$0xff] %v12492_v18  ;;  %v1520_v34 = vsub.f32 %v12477_v9, %v12492_v18  ;;  %v12512_v35 = vsub.f32 %v91_v12, %v12494_v19 }
 0x3d7   :  { %14674 = vst [vmem:[#allocation27_spill] sm:$0xff] %v12512_v35 }
 0x3ea   :  { %v10494_v28 = vpop.f32.mrf.mxu0 }
 0x3eb   :  { %v1279_v7 = vadd.f32 %v10494_v28, %v1178_v41  ;;  %v90_v28 = vld [vmem:[%s14549_s5 + $0x8] sm:$0xff]  ;;  %v12518_v41 = vand.u32 4294901760, %v12498_v23 }
 0x3ec   :  { %v1272_v60 = vpop.f32.mrf.mxu0  ;;  %v12514_v36 = vand.u32 4294901760, %v90_v28 }
 0x3ed   :  { %v1273_v40 = vadd.f32 %v1272_v60, %v1170_v2  ;;  %14676 = vst [vmem:[#allocation29_spill] sm:$0xff] %v12518_v41  ;;  %v12525_v60 = vand.u32 4294901760, %v1520_v34  ;;  %v12528_v2 = vand.u32 4294901760, %v12512_v35 }
 0x3ee   :  { %14675 = vst [vmem:[#allocation28_spill] sm:$0xff] %v12514_v36  ;;  %10526 = vmatprep.subr.mxu0 %v12514_v36 }
 0x3ef   :  { %14677 = vst [vmem:[#allocation30_spill] sm:$0xff] %v12525_v60  ;;  %14678 = vst [vmem:[#allocation31_spill] sm:$0xff] %v12528_v2  ;;  %10527 = vmatpush3.msra.mxu0 %v12514_v36 }
 0x3f2   :  { %v10513_v11 = vpop.f32.mrf.mxu1 }
 0x3f3   :  { %v12413_v13 = vadd.f32 %v10513_v11, %v1279_v7  ;;  %v12531_v7 = vsub.f32 %v90_v28, %v12514_v36 }
 0x3f4   :  { %v1357_v17 = vpop.f32.mrf.mxu1 }
 0x3f5   :  { %v12415_v20 = vadd.f32 %v1357_v17, %v1273_v40  ;;  %v1371_v21 = vsel %vm1367_vm1, %v12413_v13, -inf  ;;  %14679 = vst [vmem:[#allocation32_spill] sm:$0xff] %v12531_v7  ;;  %v1527_v40 = vsub.f32 %v12498_v23, %v12518_v41  ;;  %v1534_v17 = vsub.f32 %v12512_v35, %v12528_v2 }
 0x3f6   :  { %1372 = vmax.xlane.f32.xlu1 %v1371_v21  ;;  %v12547_v21 = vand.u32 4294901760, %v12531_v7 }
 0x3f7   :  { %v1368_v27 = vsel %vm1367_vm1, %v12415_v20, -inf  ;;  %v12556_v29 = vand.u32 4294901760, %v1534_v17 }
 0x3f8   :  { %1369 = vmax.xlane.f32.xlu0 %v1368_v27  ;;  %14681 = vst [vmem:[#allocation34_spill] sm:$0xff] %v12547_v21 }
 0x3f9   :  { %14684 = vst [vmem:[#allocation37_spill] sm:$0xff] %v12556_v29 }
 0x407   :  { %1982 = vrot.lane.b32.xlu1 %v12183_v46, %s11946_s11  ;;  %v12487_v46 = vand.u32 4294901760, %v1506_v4 }
 0x409   :  { %14669 = vst [vmem:[#allocation22_spill] sm:$0xff] %v12487_v46  ;;  %10535 = vmatprep.subr.mxu1 %v12487_v46 }
 0x40a   :  { %10536 = vmatpush3.msra.mxu1 %v12487_v46 }
 0x40b   :  { %1978 = vrot.lane.b32.xlu1 %v12205_v55, %s11946_s11  ;;  %v89_v55 = vld [vmem:[%s14549_s5] sm:$0xff]  ;;  %10537 = vmatprep.subr.mxu1 %v12507_v24 }
 0x40c   :  { %v12533_v11 = vand.u32 4294901760, %v89_v55  ;;  %10538 = vmatpush3.msra.mxu1 %v12507_v24 }
 0x40d   :  { %10539 = vmatprep.subr.mxu1 %v12525_v60 }
 0x40e   :  { %14680 = vst [vmem:[#allocation33_spill] sm:$0xff] %v12533_v11  ;;  %1984 = vrot.lane.b32.xlu0 %v12178_v45, %s11946_s11  ;;  %v12550_v27 = vsub.f32 %v89_v55, %v12533_v11  ;;  %10540 = vmatpush3.msra.mxu1 %v12525_v60  ;;  %v12553_v45 = vand.u32 4294901760, %v1527_v40 }
 0x40f   :  { %1974 = vrot.lane.b32.xlu1 %v12220_v61, %s11946_s11  ;;  %v1541_v61 = vsub.f32 %v12531_v7, %v12547_v21  ;;  %10528 = vmatprep.subr.mxu0 %v12533_v11 }
 0x410   :  { %14682 = vst [vmem:[#allocation35_spill] sm:$0xff] %v12550_v27  ;;  %14683 = vst [vmem:[#allocation36_spill] sm:$0xff] %v12553_v45  ;;  %v12561_v32 = vand.u32 4294901760, %v12550_v27  ;;  %10541 = vmatprep.subr.mxu1 %v12553_v45  ;;  %10529 = vmatpush3.msra.mxu0 %v12533_v11 }
 0x411   :  { %10542 = vmatpush3.msra.mxu1 %v12553_v45  ;;  %v12570_v39 = vand.u32 4294901760, %v1541_v61  ;;  %10552 = vmatprep.subr.mxu0 %v12430_v33 }
 0x412   :  { %14685 = vst [vmem:[#allocation38_spill] sm:$0xff] %v12561_v32  ;;  %1980 = vrot.lane.b32.xlu0 %v12194_v50, %s11946_s11  ;;  %v1548_v63 = vsub.f32 %v12550_v27, %v12561_v32  ;;  %10543 = vmatprep.subr.mxu1 %v12556_v29 }
 0x413   :  { %1970 = vrot.lane.b32.xlu1 %v12233_v1, %s11946_s11  ;;  %14686 = vst [vmem:[#allocation39_spill] sm:$0xff] %v12570_v39  ;;  %10544 = vmatpush3.msra.mxu1 %v12556_v29 }
 0x414   :  { %v12577_v3 = vand.u32 4294901760, %v1548_v63  ;;  %10545 = vmatprep.subr.mxu1 %v12570_v39 }
 0x415   :  { %10546 = vmatpush3.msra.mxu1 %v12570_v39 }
 0x416   :  { %14687 = vst [vmem:[#allocation40_spill] sm:$0xff] %v12577_v3  ;;  %1976 = vrot.lane.b32.xlu0 %v12210_v58, %s11946_s11  ;;  %10547 = vmatprep.subr.mxu1 %v12577_v3 }
 0x417   :  { %10548 = vmatpush3.msra.mxu1 %v12577_v3  ;;  %2592 = vrot.lane.b32.xlu1 %v12025_v15, %s11944_s9 }
 0x418   :  { %10571 = vmatprep.subr.mxu1 %v12424_v30 }
 0x41a   :  { %1972 = vrot.lane.b32.xlu0 %v12228_v0, %s11946_s11 }
 0x41b   :  { %2588 = vrot.lane.b32.xlu1 %v12071_v31, %s11944_s9 }
 0x41e   :  { %2594 = vrot.lane.b32.xlu0 %v12023_v14, %s11944_s9 }
 0x422   :  { %2590 = vrot.lane.b32.xlu0 %v12027_v16, %s11944_s9 }
 0x47f   :  { %v1373_v50 = vpop.xlane.xlu1 %1372 }
 0x480   :  { %v1375_v58 = vsub.f32 %v12413_v13, %v1373_v50 }
 0x481   :  { %v1370_v1 = vpop.xlane.xlu0 %1369 }
 0x482   :  { %v1378_v52 = vmul.f32 1.442695, %v1375_v58  ;;  %v1374_v15 = vsub.f32 %v12415_v20, %v1370_v1 }
 0x483   :  { %v1983_v50 = vpop.permute.xlu1 %1982 }
 0x484   :  { %11792 = vpow2.f32 %v1378_v52  ;;  %v1376_v0 = vmul.f32 1.442695, %v1374_v15  ;;  %v12649_v15 = vand.u32 4294901760, %v1983_v50 }
 0x485   :  { %v1985_v63 = vpop.permute.xlu0 %1984 }
 0x486   :  { %11794 = vpow2.f32 %v1376_v0  ;;  %v12644_v1 = vand.u32 4294901760, %v1985_v63 }
 0x487   :  { %v1979_v52 = vpop.permute.xlu1 %1978 }
 0x488   :  { %v12656_v0 = vsub.f32 %v1985_v63, %v12644_v1 }
 0x489   :  { %v1981_v58 = vpop.permute.xlu0 %1980 }
 0x491   :  { %v12601_v4 = vpop.eup %11792 }
 0x492   :  { %v1384_v31 = vsel %vm1367_vm1, %v12601_v4, 0 }
 0x493   :  { %v12605_v12 = vpop.eup %11794  ;;  %v12607_v14 = vand.u32 4294901760, %v1384_v31 }
 0x494   :  { %v1381_v16 = vsel %vm1367_vm1, %v12605_v12, 0 }
 0x495   :  { %v12611_v13 = vand.u32 4294901760, %v1381_v16  ;;  %v12614_v26 = vsub.f32 %v1384_v31, %v12607_v14  ;;  %v12658_v31 = vand.u32 4294901760, %v1981_v58 }
 0x497   :  { %10549 = vmatprep.mubr.f32.mxu1 %v12611_v13  ;;  %v1460_v20 = vsub.f32 %v1381_v16, %v12611_v13  ;;  %v1471_v28 = vand.u32 4294901760, %v12614_v26  ;;  %v1977_v16 = vpop.permute.xlu0 %1976 }
 0x498   :  { %10550 = vmatmul.mubr.f32.vlgmr.msra.gmra.mxu1 %v12607_v14 }
 0x499   :  { %10572 = vmatpush3.msra.mxu1 %v12424_v30  ;;  %v1461_v34 = vand.u32 4294901760, %v1460_v20  ;;  %v1472_v55 = vsub.f32 %v12614_v26, %v1471_v28 }
 0x49a   :  { %10573 = vmatprep.subr.mxu1 %v12432_v37 }
 0x49b   :  { %10574 = vmatpush3.msra.mxu1 %v12432_v37  ;;  %10587 = vmatprep.mubr.f32.mxu1 %v1461_v34  ;;  %v1462_v40 = vsub.f32 %v1460_v20, %v1461_v34  ;;  %v1473_v61 = vand.u32 4294901760, %v1472_v55  ;;  %v1975_v34 = vpop.permute.xlu1 %1974  ;;  %v12674_v55 = vsub.f32 %v1981_v58, %v12658_v31  ;;  %v1973_v63 = vpop.permute.xlu0 %1972 }
 0x49c   :  { %10575 = vmatprep.subr.mxu1 %v12445_v47  ;;  %v12707_v54 = vand.u32 4294901760, %v1973_v63 }
 0x49d   :  { %10576 = vmatpush3.msra.mxu1 %v12445_v47  ;;  %v1463_v17 = vand.u32 4294901760, %v1462_v40  ;;  %v12679_v40 = vand.u32 4294901760, %v12656_v0  ;;  %v12702_v56 = vand.u32 4294901760, %v12674_v55 }
 0x49e   :  { %10577 = vmatprep.subr.mxu1 %v12460_v49 }
 0x49f   :  { %10578 = vmatpush3.msra.mxu1 %v12460_v49  ;;  %10530 = vmatprep.mubr.f32.mxu0 %v1463_v17  ;;  %v12681_v17 = vand.u32 4294901760, %v1977_v16  ;;  %v1971_v58 = vpop.permute.xlu1 %1970 }
 0x4a0   :  { %10579 = vmatprep.subr.mxu1 %v12480_v10  ;;  %10531 = vmatmul.mubr.f32.vlgmr.msra.gmra.mxu0 %v1473_v61 }
 0x4a1   :  { %10553 = vmatpush3.msra.mxu0 %v12430_v33  ;;  %10580 = vmatpush3.msra.mxu1 %v12480_v10 }
 0x4a2   :  { %10554 = vmatprep.subr.mxu0 %v12443_v44  ;;  %10568 = vmatprep.mubr.f32.mxu0 %v1460_v20  ;;  %v12665_v20 = vsub.f32 %v1983_v50, %v12649_v15 }
 0x4a3   :  { %10581 = vmatprep.subr.mxu1 %v12494_v19  ;;  %10555 = vmatpush3.msra.mxu0 %v12443_v44 }
 0x4a4   :  { %10582 = vmatpush3.msra.mxu1 %v12494_v19  ;;  %10556 = vmatprep.subr.mxu0 %v12458_v6  ;;  %v12691_v50 = vand.u32 4294901760, %v12665_v20 }
 0x4a5   :  { %10583 = vmatprep.subr.mxu1 %v12514_v36  ;;  %10557 = vmatpush3.msra.mxu0 %v12458_v6 }
 0x4a6   :  { %10584 = vmatpush3.msra.mxu1 %v12514_v36  ;;  %10558 = vmatprep.subr.mxu0 %v12477_v9 }
 0x4a7   :  { %10585 = vmatprep.subr.mxu1 %v12533_v11  ;;  %10559 = vmatpush3.msra.mxu0 %v12477_v9 }
 0x4a8   :  { %10586 = vmatpush3.msra.mxu1 %v12533_v11  ;;  %10560 = vmatprep.subr.mxu0 %v12498_v23 }
 0x4a9   :  { %10588 = vmatmul.mubr.f32.vlgmr.msra.gmra.mxu1 %v1471_v28  ;;  %10609 = vmatprep.subr.mxu1 %v12424_v30  ;;  %v12667_v28 = vand.u32 4294901760, %v1979_v52 }
 0x4aa   :  { %10561 = vmatpush3.msra.mxu0 %v12498_v23  ;;  %10610 = vmatpush3.msra.mxu1 %v12424_v30 }
 0x4ab   :  { %10625 = vmatprep.mubr.f32.mxu1 %v12611_v13  ;;  %10562 = vmatprep.subr.mxu0 %v12512_v35  ;;  %v12686_v61 = vsub.f32 %v1979_v52, %v12667_v28  ;;  %v2113_v52 = vsub.f32 %v12656_v0, %v12679_v40 }
 0x4ac   :  { %10611 = vmatprep.subr.mxu1 %v12432_v37  ;;  %10563 = vmatpush3.msra.mxu0 %v12512_v35  ;;  %v12730_v35 = vsub.f32 %v1973_v63, %v12707_v54 }
 0x4ad   :  { %10612 = vmatpush3.msra.mxu1 %v12432_v37  ;;  %10564 = vmatprep.subr.mxu0 %v12531_v7 }
 0x4ae   :  { %10613 = vmatprep.subr.mxu1 %v12445_v47  ;;  %10565 = vmatpush3.msra.mxu0 %v12531_v7  ;;  %v2127_v7 = vsub.f32 %v12674_v55, %v12702_v56  ;;  %v12752_v6 = vand.u32 4294901760, %v12730_v35 }
 0x4af   :  { %10614 = vmatpush3.msra.mxu1 %v12445_v47  ;;  %10566 = vmatprep.subr.mxu0 %v12550_v27 }
 0x4b0   :  { %10615 = vmatprep.subr.mxu1 %v12460_v49  ;;  %10567 = vmatpush3.msra.mxu0 %v12550_v27  ;;  %v2128_v9 = vand.u32 4294901760, %v2127_v7 }
 0x4b1   :  { %10616 = vmatpush3.msra.mxu1 %v12460_v49  ;;  %10569 = vmatmul.mubr.f32.vlgmr.msra.gmra.mxu0 %v12614_v26  ;;  %v12693_v26 = vand.u32 4294901760, %v1975_v34 }
 0x4b2   :  { %10590 = vmatprep.subr.mxu0 %v12440_v42  ;;  %10617 = vmatprep.subr.mxu1 %v12480_v10 }
 0x4b3   :  { %10591 = vmatpush3.msra.mxu0 %v12440_v42  ;;  %10606 = vmatprep.mubr.f32.mxu0 %v12611_v13  ;;  %v12705_v13 = vsub.f32 %v1977_v16, %v12681_v17  ;;  %v12716_v42 = vand.u32 4294901760, %v12686_v61  ;;  %v12719_v27 = vsub.f32 %v1975_v34, %v12693_v26  ;;  %v12721_v16 = vand.u32 4294901760, %v1971_v58 }
 0x4b4   :  { %10618 = vmatpush3.msra.mxu1 %v12480_v10  ;;  %10592 = vmatprep.subr.mxu0 %v12455_v5 }
 0x4b5   :  { %10619 = vmatprep.subr.mxu1 %v12494_v19  ;;  %10593 = vmatpush3.msra.mxu0 %v12455_v5  ;;  %v2120_v5 = vsub.f32 %v12665_v20, %v12691_v50  ;;  %v12735_v34 = vand.u32 4294901760, %v12705_v13  ;;  %v12745_v63 = vand.u32 4294901760, %v12719_v27 }
 0x4b6   :  { %10620 = vmatpush3.msra.mxu1 %v12494_v19  ;;  %10594 = vmatprep.subr.mxu0 %v12474_v8 }
 0x4b7   :  { %10621 = vmatprep.subr.mxu1 %v12514_v36  ;;  %10595 = vmatpush3.msra.mxu0 %v12474_v8  ;;  %v2114_v8 = vand.u32 4294901760, %v2113_v52  ;;  %v2121_v23 = vand.u32 4294901760, %v2120_v5  ;;  %v2134_v52 = vsub.f32 %v12686_v61, %v12716_v42  ;;  %v2141_v5 = vsub.f32 %v12705_v13, %v12735_v34 }
 0x4b8   :  { %10622 = vmatpush3.msra.mxu1 %v12514_v36  ;;  %10596 = vmatprep.subr.mxu0 %v12492_v18 }
 0x4b9   :  { %10623 = vmatprep.subr.mxu1 %v12533_v11  ;;  %10597 = vmatpush3.msra.mxu0 %v12492_v18  ;;  %v12741_v18 = vsub.f32 %v1971_v58, %v12721_v16  ;;  %v2148_v58 = vsub.f32 %v12719_v27, %v12745_v63 }
 0x4ba   :  { %10624 = vmatpush3.msra.mxu1 %v12533_v11  ;;  %10598 = vmatprep.subr.mxu0 %v12518_v41 }
 0x4bb   :  { %10626 = vmatmul.mubr.f32.vlgmr.msra.gmra.mxu1 %v12607_v14  ;;  %10647 = vmatprep.subr.mxu1 %v2114_v8  ;;  %v12759_v7 = vand.u32 4294901760, %v12741_v18 }
 0x4bc   :  { %10599 = vmatpush3.msra.mxu0 %v12518_v41  ;;  %10648 = vmatpush3.msra.mxu1 %v2114_v8  ;;  %v2135_v8 = vand.u32 4294901760, %v2134_v52 }
 0x4bd   :  { %10600 = vmatprep.subr.mxu0 %v12528_v2  ;;  %10649 = vmatprep.subr.mxu1 %v2121_v23  ;;  %v2162_v52 = vsub.f32 %v12741_v18, %v12759_v7 }
 0x4be   :  { %10601 = vmatpush3.msra.mxu0 %v12528_v2  ;;  %10650 = vmatpush3.msra.mxu1 %v2121_v23  ;;  %v2142_v23 = vand.u32 4294901760, %v2141_v5  ;;  %v2155_v2 = vsub.f32 %v12730_v35, %v12752_v6 }
 0x4bf   :  { %10602 = vmatprep.subr.mxu0 %v12547_v21  ;;  %10651 = vmatprep.subr.mxu1 %v2128_v9 }
 0x4c0   :  { %10603 = vmatpush3.msra.mxu0 %v12547_v21  ;;  %10652 = vmatpush3.msra.mxu1 %v2128_v9  ;;  %v2149_v9 = vand.u32 4294901760, %v2148_v58  ;;  %v2156_v5 = vand.u32 4294901760, %v2155_v2 }
 0x4c1   :  { %10604 = vmatprep.subr.mxu0 %v12561_v32  ;;  %10653 = vmatprep.subr.mxu1 %v2135_v8 }
 0x4c2   :  { %10605 = vmatpush3.msra.mxu0 %v12561_v32  ;;  %10654 = vmatpush3.msra.mxu1 %v2135_v8 }
 0x4c3   :  { %10607 = vmatmul.mubr.f32.vlgmr.msra.gmra.mxu0 %v12607_v14  ;;  %10628 = vmatprep.subr.mxu0 %v12644_v1  ;;  %v2163_v14 = vand.u32 4294901760, %v2162_v52 }
 0x4c4   :  { %10655 = vmatprep.subr.mxu1 %v2142_v23  ;;  %10629 = vmatpush3.msra.mxu0 %v12644_v1 }
 0x4c5   :  { %10656 = vmatpush3.msra.mxu1 %v2142_v23  ;;  %10630 = vmatprep.subr.mxu0 %v12649_v15 }
 0x4c6   :  { %10657 = vmatprep.subr.mxu1 %v2149_v9  ;;  %10631 = vmatpush3.msra.mxu0 %v12649_v15 }
 0x4c7   :  { %10658 = vmatpush3.msra.mxu1 %v2149_v9  ;;  %10632 = vmatprep.subr.mxu0 %v12658_v31 }
 0x4c8   :  { %10659 = vmatprep.subr.mxu1 %v2156_v5  ;;  %10633 = vmatpush3.msra.mxu0 %v12658_v31 }
 0x4c9   :  { %10660 = vmatpush3.msra.mxu1 %v2156_v5  ;;  %10634 = vmatprep.subr.mxu0 %v12667_v28 }
 0x4ca   :  { %10661 = vmatprep.subr.mxu1 %v2163_v14  ;;  %10635 = vmatpush3.msra.mxu0 %v12667_v28 }
 0x4cb   :  { %10662 = vmatpush3.msra.mxu1 %v2163_v14  ;;  %10636 = vmatprep.subr.mxu0 %v12681_v17 }
 0x4cc   :  { %10685 = vmatprep.subr.mxu1 %v12644_v1  ;;  %10637 = vmatpush3.msra.mxu0 %v12681_v17 }
 0x4cd   :  { %10638 = vmatprep.subr.mxu0 %v12693_v26 }
 0x4ce   :  { %10639 = vmatpush3.msra.mxu0 %v12693_v26 }
 0x4cf   :  { %10640 = vmatprep.subr.mxu0 %v12707_v54 }
 0x4d0   :  { %10641 = vmatpush3.msra.mxu0 %v12707_v54 }
 0x4d1   :  { %10642 = vmatprep.subr.mxu0 %v12721_v16 }
 0x4d2   :  { %10643 = vmatpush3.msra.mxu0 %v12721_v16 }
 0x4d3   :  { %10666 = vmatprep.subr.mxu0 %v12656_v0 }
 0x558   :  { %v10551_v8 = vpop.f32.mrf.mxu1 }
 0x55a   :  { %v1586_v9 = vpop.f32.mrf.mxu1 }
 0x560   :  { %v10532_v2 = vpop.f32.mrf.mxu0 }
 0x561   :  { %v1593_v52 = vadd.f32 %v10551_v8, %v10532_v2 }
 0x562   :  { %v1465_v58 = vpop.f32.mrf.mxu0 }
 0x563   :  { %v1587_v32 = vadd.f32 %v1586_v9, %v1465_v58 }
 0x569   :  { %v10589_v5 = vpop.f32.mrf.mxu1 }
 0x56b   :  { %v1768_v44 = vpop.f32.mrf.mxu1 }
 0x571   :  { %v10570_v23 = vpop.f32.mrf.mxu0 }
 0x572   :  { %v1688_v21 = vadd.f32 %v10570_v23, %v1593_v52 }
 0x573   :  { %v1680_v14 = vpop.f32.mrf.mxu0 }
 0x574   :  { %v1681_v41 = vadd.f32 %v1680_v14, %v1587_v32  ;;  %v1777_v3 = vadd.f32 %v10589_v5, %v1688_v21 }
 0x576   :  { %v1769_v45 = vadd.f32 %v1768_v44, %v1681_v41 }
 0x57b   :  { %v10627_v39 = vpop.f32.mrf.mxu1 }
 0x57d   :  { %v1956_v24 = vpop.f32.mrf.mxu1 }
 0x583   :  { %v10608_v29 = vpop.f32.mrf.mxu0 }
 0x584   :  { %v1878_v33 = vadd.f32 %v10608_v29, %v1777_v3 }
 0x585   :  { %v1871_v11 = vpop.f32.mrf.mxu0 }
 0x586   :  { %v1963_v60 = vadd.f32 %v10627_v39, %v1878_v33  ;;  %v1872_v36 = vadd.f32 %v1871_v11, %v1769_v45 }
 0x588   :  { %11796 = vrcp.f32 %v1963_v60  ;;  %v1957_v19 = vadd.f32 %v1956_v24, %v1872_v36 }
 0x58a   :  { %11798 = vrcp.f32 %v1957_v19 }
 0x595   :  { %v11797_v46 = vpop.eup %11796 }
 0x596   :  { %v1969_v2 = vmul.f32 %v11797_v46, %v12601_v4 }
 0x597   :  { %v11799_v8 = vpop.eup %11798 }
 0x598   :  { %v1998_v58 = vsel %vm1367_vm1, %v1969_v2, 0  ;;  %v1967_v32 = vmul.f32 %v11799_v8, %v12605_v12 }
 0x599   :  { %v12789_v21 = vand.u32 4294901760, %v1998_v58 }
 0x59a   :  { %v1995_v29 = vsel %vm1367_vm1, %v1967_v32, 0 }
 0x59b   :  { %v12792_v44 = vand.u32 4294901760, %v1995_v29  ;;  %v12795_v33 = vsub.f32 %v1998_v58, %v12789_v21 }
 0x59d   :  { %10663 = vmatprep.mubr.f32.mxu1 %v12792_v44  ;;  %v12799_v19 = vsub.f32 %v1995_v29, %v12792_v44  ;;  %v12802_v46 = vand.u32 4294901760, %v12795_v33 }
 0x59e   :  { %10664 = vmatmul.mubr.f32.vlgmr.msra.gmra.mxu1 %v12789_v21 }
 0x59f   :  { %10686 = vmatpush3.msra.mxu1 %v12644_v1  ;;  %v12807_v24 = vand.u32 4294901760, %v12799_v19  ;;  %v2086_v36 = vsub.f32 %v12795_v33, %v12802_v46 }
 0x5a0   :  { %10687 = vmatprep.subr.mxu1 %v12649_v15 }
 0x5a1   :  { %10688 = vmatpush3.msra.mxu1 %v12649_v15  ;;  %10701 = vmatprep.mubr.f32.mxu1 %v12807_v24  ;;  %v2076_v41 = vsub.f32 %v12799_v19, %v12807_v24  ;;  %v12821_v11 = vand.u32 4294901760, %v2086_v36 }
 0x5a2   :  { %10689 = vmatprep.subr.mxu1 %v12658_v31 }
 0x5a3   :  { %10690 = vmatpush3.msra.mxu1 %v12658_v31  ;;  %v12818_v60 = vand.u32 4294901760, %v2076_v41 }
 0x5a4   :  { %10691 = vmatprep.subr.mxu1 %v12667_v28 }
 0x5a5   :  { %10692 = vmatpush3.msra.mxu1 %v12667_v28  ;;  %10644 = vmatprep.mubr.f32.mxu0 %v12818_v60 }
 0x5a6   :  { %10693 = vmatprep.subr.mxu1 %v12681_v17  ;;  %10645 = vmatmul.mubr.f32.vlgmr.msra.gmra.mxu0 %v12821_v11 }
 0x5a7   :  { %10667 = vmatpush3.msra.mxu0 %v12656_v0  ;;  %10694 = vmatpush3.msra.mxu1 %v12681_v17 }
 0x5a8   :  { %10668 = vmatprep.subr.mxu0 %v12665_v20  ;;  %10682 = vmatprep.mubr.f32.mxu0 %v12799_v19 }
 0x5a9   :  { %10695 = vmatprep.subr.mxu1 %v12693_v26  ;;  %10669 = vmatpush3.msra.mxu0 %v12665_v20 }
 0x5aa   :  { %10696 = vmatpush3.msra.mxu1 %v12693_v26  ;;  %10670 = vmatprep.subr.mxu0 %v12674_v55 }
 0x5ab   :  { %10697 = vmatprep.subr.mxu1 %v12707_v54  ;;  %10671 = vmatpush3.msra.mxu0 %v12674_v55 }
 0x5ac   :  { %10698 = vmatpush3.msra.mxu1 %v12707_v54  ;;  %10672 = vmatprep.subr.mxu0 %v12686_v61 }
 0x5ad   :  { %10699 = vmatprep.subr.mxu1 %v12721_v16  ;;  %10673 = vmatpush3.msra.mxu0 %v12686_v61 }
 0x5ae   :  { %10700 = vmatpush3.msra.mxu1 %v12721_v16  ;;  %10674 = vmatprep.subr.mxu0 %v12705_v13 }
 0x5af   :  { %10702 = vmatmul.mubr.f32.vlgmr.msra.gmra.mxu1 %v12802_v46  ;;  %10723 = vmatprep.subr.mxu1 %v12644_v1 }
 0x5b0   :  { %10675 = vmatpush3.msra.mxu0 %v12705_v13  ;;  %10724 = vmatpush3.msra.mxu1 %v12644_v1 }
 0x5b1   :  { %10739 = vmatprep.mubr.f32.mxu1 %v12792_v44  ;;  %10676 = vmatprep.subr.mxu0 %v12719_v27 }
 0x5b2   :  { %10725 = vmatprep.subr.mxu1 %v12649_v15  ;;  %10677 = vmatpush3.msra.mxu0 %v12719_v27 }
 0x5b3   :  { %10726 = vmatpush3.msra.mxu1 %v12649_v15  ;;  %10678 = vmatprep.subr.mxu0 %v12730_v35 }
 0x5b4   :  { %10727 = vmatprep.subr.mxu1 %v12658_v31  ;;  %10679 = vmatpush3.msra.mxu0 %v12730_v35 }
 0x5b5   :  { %10728 = vmatpush3.msra.mxu1 %v12658_v31  ;;  %10680 = vmatprep.subr.mxu0 %v12741_v18 }
 0x5b6   :  { %10729 = vmatprep.subr.mxu1 %v12667_v28  ;;  %10681 = vmatpush3.msra.mxu0 %v12741_v18 }
 0x5b7   :  { %10730 = vmatpush3.msra.mxu1 %v12667_v28  ;;  %10683 = vmatmul.mubr.f32.vlgmr.msra.gmra.mxu0 %v12795_v33 }
 0x5b8   :  { %10704 = vmatprep.subr.mxu0 %v12679_v40  ;;  %10731 = vmatprep.subr.mxu1 %v12681_v17 }
 0x5b9   :  { %10705 = vmatpush3.msra.mxu0 %v12679_v40  ;;  %10720 = vmatprep.mubr.f32.mxu0 %v12792_v44 }
 0x5ba   :  { %10732 = vmatpush3.msra.mxu1 %v12681_v17  ;;  %10706 = vmatprep.subr.mxu0 %v12691_v50 }
 0x5bb   :  { %10733 = vmatprep.subr.mxu1 %v12693_v26  ;;  %10707 = vmatpush3.msra.mxu0 %v12691_v50 }
 0x5bc   :  { %10734 = vmatpush3.msra.mxu1 %v12693_v26  ;;  %10708 = vmatprep.subr.mxu0 %v12702_v56 }
 0x5bd   :  { %10735 = vmatprep.subr.mxu1 %v12707_v54  ;;  %10709 = vmatpush3.msra.mxu0 %v12702_v56 }
 0x5be   :  { %10736 = vmatpush3.msra.mxu1 %v12707_v54  ;;  %10710 = vmatprep.subr.mxu0 %v12716_v42  ;;  %v2595_v54 = vpop.permute.xlu0 %2594 }
 0x5bf   :  { %10737 = vmatprep.subr.mxu1 %v12721_v16  ;;  %10711 = vmatpush3.msra.mxu0 %v12716_v42  ;;  %v12888_v56 = vand.u32 4294901760, %v2595_v54  ;;  %v2593_v42 = vpop.permute.xlu1 %2592 }
 0x5c0   :  { %10738 = vmatpush3.msra.mxu1 %v12721_v16  ;;  %10712 = vmatprep.subr.mxu0 %v12735_v34  ;;  %v12893_v35 = vand.u32 4294901760, %v2593_v42 }
 0x5c1   :  { %10740 = vmatmul.mubr.f32.vlgmr.msra.gmra.mxu1 %v12789_v21  ;;  %10713 = vmatpush3.msra.mxu0 %v12735_v34  ;;  %v12891_v18 = vsub.f32 %v2595_v54, %v12888_v56 }
 0x5c2   :  { %10714 = vmatprep.subr.mxu0 %v12745_v63  ;;  %v2591_v27 = vpop.permute.xlu0 %2590 }
 0x5c3   :  { %10715 = vmatpush3.msra.mxu0 %v12745_v63  ;;  %v12900_v45 = vand.u32 4294901760, %v2591_v27  ;;  %v2589_v39 = vpop.permute.xlu1 %2588  ;;  %v12910_v12 = vand.u32 4294901760, %v12891_v18 }
 0x5c4   :  { %10716 = vmatprep.subr.mxu0 %v12752_v6  ;;  %v12907_v4 = vand.u32 4294901760, %v2589_v39 }
 0x5c5   :  { %10717 = vmatpush3.msra.mxu0 %v12752_v6  ;;  %v12898_v6 = vsub.f32 %v2593_v42, %v12893_v35  ;;  %v12905_v3 = vsub.f32 %v2591_v27, %v12900_v45  ;;  %v2723_v15 = vsub.f32 %v12891_v18, %v12910_v12 }
 0x5c6   :  { %10718 = vmatprep.subr.mxu0 %v12759_v7  ;;  %v12915_v1 = vsub.f32 %v2589_v39, %v12907_v4 }
 0x5c7   :  { %10719 = vmatpush3.msra.mxu0 %v12759_v7  ;;  %v12920_v0 = vand.u32 4294901760, %v12898_v6  ;;  %v2724_v31 = vand.u32 4294901760, %v2723_v15  ;;  %v12927_v28 = vand.u32 4294901760, %v12905_v3 }
 0x5c8   :  { %10721 = vmatmul.mubr.f32.vlgmr.msra.gmra.mxu0 %v12789_v21  ;;  %10742 = vmatprep.subr.mxu0 %v12888_v56  ;;  %v12933_v17 = vand.u32 4294901760, %v12915_v1 }
 0x5c9   :  { %10743 = vmatpush3.msra.mxu0 %v12888_v56  ;;  %v2730_v20 = vsub.f32 %v12898_v6, %v12920_v0  ;;  %10753 = vmatprep.subr.mxu1 %v2724_v31  ;;  %v2737_v40 = vsub.f32 %v12905_v3, %v12927_v28 }
 0x5ca   :  { %10744 = vmatprep.subr.mxu0 %v12893_v35  ;;  %10754 = vmatpush3.msra.mxu1 %v2724_v31  ;;  %v2744_v50 = vsub.f32 %v12915_v1, %v12933_v17 }
 0x5cb   :  { %10745 = vmatpush3.msra.mxu0 %v12893_v35  ;;  %v2731_v55 = vand.u32 4294901760, %v2730_v20  ;;  %v2738_v61 = vand.u32 4294901760, %v2737_v40  ;;  %v112_v40 = vld [vmem:[%s14551_s7 + $0x38] sm:$0xff] }
 0x5cc   :  { %10746 = vmatprep.subr.mxu0 %v12900_v45  ;;  %v2745_v26 = vand.u32 4294901760, %v2744_v50 }
 0x5cd   :  { %10747 = vmatpush3.msra.mxu0 %v12900_v45  ;;  %10755 = vmatprep.subr.mxu1 %v2731_v55 }
 0x5ce   :  { %10748 = vmatprep.subr.mxu0 %v12907_v4  ;;  %10756 = vmatpush3.msra.mxu1 %v2731_v55 }
 0x5cf   :  { %10749 = vmatpush3.msra.mxu0 %v12907_v4  ;;  %10757 = vmatprep.subr.mxu1 %v2738_v61 }
 0x5d0   :  { %10764 = vmatprep.subr.mxu0 %v12891_v18  ;;  %10758 = vmatpush3.msra.mxu1 %v2738_v61 }
 0x5d1   :  { %10759 = vmatprep.subr.mxu1 %v2745_v26 }
 0x5d2   :  { %10760 = vmatpush3.msra.mxu1 %v2745_v26 }
 0x5d3   :  { %10775 = vmatprep.subr.mxu1 %v12888_v56 }
 0x65e   :  { %v10665_v16 = vpop.f32.mrf.mxu1 }
 0x660   :  { %v2200_v7 = vpop.f32.mrf.mxu1 }
 0x666   :  { %v10646_v13 = vpop.f32.mrf.mxu0 }
 0x667   :  { %v2207_v23 = vadd.f32 %v10665_v16, %v10646_v13  ;;  %v12953_v16 = vand.u32 4294901760, %v112_v40 }
 0x668   :  { %v2079_v34 = vpop.f32.mrf.mxu0 }
 0x669   :  { %v2201_v5 = vadd.f32 %v2200_v7, %v2079_v34  ;;  %v111_v34 = vld [vmem:[%s14551_s7 + $0x30] sm:$0xff]  ;;  %v110_v7 = vld [vmem:[%s14551_s7 + $0x28] sm:$0xff] }
 0x66f   :  { %v10703_v9 = vpop.f32.mrf.mxu1 }
 0x671   :  { %v2382_v8 = vpop.f32.mrf.mxu1 }
 0x677   :  { %v10684_v63 = vpop.f32.mrf.mxu0 }
 0x678   :  { %v2302_v14 = vadd.f32 %v10684_v63, %v2207_v23  ;;  %v12964_v23 = vand.u32 4294901760, %v111_v34 }
 0x679   :  { %v2294_v52 = vpop.f32.mrf.mxu0 }
 0x67a   :  { %v2295_v2 = vadd.f32 %v2294_v52, %v2201_v5  ;;  %v2391_v58 = vadd.f32 %v10703_v9, %v2302_v14  ;;  %v12969_v5 = vsub.f32 %v112_v40, %v12953_v16  ;;  %v109_v14 = vld [vmem:[%s14551_s7 + $0x20] sm:$0xff] }
 0x67c   :  { %v2383_v41 = vadd.f32 %v2382_v8, %v2295_v2  ;;  %14688 = vst [vmem:[#allocation41_spill] sm:$0xff] %v12969_v5  ;;  %v12975_v2 = vand.u32 4294901760, %v110_v7 }
 0x67e   :  { %14689 = vst [vmem:[#allocation42_spill] sm:$0xff] %v12975_v2 }
 0x681   :  { %v10741_v32 = vpop.f32.mrf.mxu1 }
 0x683   :  { %v2570_v39 = vpop.f32.mrf.mxu1 }
 0x688   :  { %v10722_v29 = vpop.f32.mrf.mxu0 }
 0x689   :  { %v2492_v36 = vadd.f32 %v10722_v29, %v2391_v58  ;;  %v108_v58 = vld [vmem:[%s14551_s7 + $0x18] sm:$0xff]  ;;  %v12985_v29 = vand.u32 4294901760, %v109_v14 }
 0x68a   :  { %v2485_v54 = vpop.f32.mrf.mxu0 }
 0x68b   :  { %v2577_v42 = vadd.f32 %v10741_v32, %v2492_v36  ;;  %v2486_v27 = vadd.f32 %v2485_v54, %v2383_v41  ;;  %v12983_v32 = vsub.f32 %v111_v34, %v12964_v23  ;;  %14691 = vst [vmem:[#allocation44_spill] sm:$0xff] %v12985_v29  ;;  %v12989_v41 = vand.u32 4294901760, %v12969_v5 }
 0x68c   :  { %v12993_v54 = vsub.f32 %v110_v7, %v12975_v2 }
 0x68d   :  { %v2604_v15 = vsel %vm127_vm0, %v2577_v42, 0  ;;  %v2571_v31 = vadd.f32 %v2570_v39, %v2486_v27  ;;  %14690 = vst [vmem:[#allocation43_spill] sm:$0xff] %v12983_v32  ;;  %14692 = vst [vmem:[#allocation45_spill] sm:$0xff] %v12989_v41  ;;  %v12995_v42 = vand.u32 4294901760, %v108_v58  ;;  %v107_v27 = vld [vmem:[%s14551_s7 + $0x10] sm:$0xff]  ;;  %v13004_v39 = vand.u32 4294901760, %v12983_v32 }
 0x68e   :  { %v12939_v20 = vand.u32 4294901760, %v2604_v15  ;;  %14693 = vst [vmem:[#allocation46_spill] sm:$0xff] %v12993_v54 }
 0x68f   :  { %v2601_v55 = vsel %vm127_vm0, %v2571_v31, 0  ;;  %14694 = vst [vmem:[#allocation47_spill] sm:$0xff] %v12995_v42  ;;  %14695 = vst [vmem:[#allocation48_spill] sm:$0xff] %v13004_v39  ;;  %v106_v31 = vld [vmem:[%s14551_s7 + $0x8] sm:$0xff]  ;;  %v13023_v40 = vsub.f32 %v108_v58, %v12995_v42 }
 0x690   :  { %v12946_v61 = vsub.f32 %v2604_v15, %v12939_v20  ;;  %v12948_v50 = vand.u32 4294901760, %v2601_v55  ;;  %v13007_v15 = vsub.f32 %v109_v14, %v12985_v29 }
 0x691   :  { %14699 = vst [vmem:[#allocation52_spill] sm:$0xff] %v13023_v40 }
 0x692   :  { %v2676_v26 = vsub.f32 %v2601_v55, %v12948_v50  ;;  %10761 = vmatprep.mubr.f32.mxu1 %v12948_v50  ;;  %v2687_v13 = vand.u32 4294901760, %v12946_v61  ;;  %14696 = vst [vmem:[#allocation49_spill] sm:$0xff] %v13007_v15  ;;  %v13015_v55 = vand.u32 4294901760, %v107_v27  ;;  %v13037_v34 = vand.u32 4294901760, %v13007_v15 }
 0x693   :  { %10762 = vmatmul.mubr.f32.vlgmr.msra.gmra.mxu1 %v12939_v20 }
 0x694   :  { %10776 = vmatpush3.msra.mxu1 %v12888_v56  ;;  %v2677_v63 = vand.u32 4294901760, %v2676_v26  ;;  %v2688_v52 = vsub.f32 %v12946_v61, %v2687_v13  ;;  %14697 = vst [vmem:[#allocation50_spill] sm:$0xff] %v13015_v55  ;;  %14701 = vst [vmem:[#allocation54_spill] sm:$0xff] %v13037_v34 }
 0x695   :  { %10777 = vmatprep.subr.mxu1 %v12893_v35 }
 0x696   :  { %10778 = vmatpush3.msra.mxu1 %v12893_v35  ;;  %10783 = vmatprep.mubr.f32.mxu1 %v2677_v63  ;;  %v2678_v9 = vsub.f32 %v2676_v26, %v2677_v63  ;;  %v2689_v36 = vand.u32 4294901760, %v2688_v52 }
 0x697   :  { %10779 = vmatprep.subr.mxu1 %v12900_v45 }
 0x698   :  { %10780 = vmatpush3.msra.mxu1 %v12900_v45  ;;  %v2679_v8 = vand.u32 4294901760, %v2678_v9  ;;  %v13053_v9 = vand.u32 4294901760, %v13023_v40 }
 0x699   :  { %10781 = vmatprep.subr.mxu1 %v12907_v4 }
 0x69a   :  { %10782 = vmatpush3.msra.mxu1 %v12907_v4  ;;  %10750 = vmatprep.mubr.f32.mxu0 %v2679_v8  ;;  %14704 = vst [vmem:[#allocation57_spill] sm:$0xff] %v13053_v9  ;;  %v3277_v8 = vsub.f32 %v13023_v40, %v13053_v9 }
 0x69b   :  { %10784 = vmatmul.mubr.f32.vlgmr.msra.gmra.mxu1 %v2687_v13  ;;  %10797 = vmatprep.subr.mxu1 %v12888_v56  ;;  %v105_v13 = vld [vmem:[%s14551_s7] sm:$0xff] }
 0x69c   :  { %10751 = vmatmul.mubr.f32.vlgmr.msra.gmra.mxu0 %v2689_v36  ;;  %10798 = vmatpush3.msra.mxu1 %v12888_v56  ;;  %v3249_v56 = vsub.f32 %v12969_v5, %v12989_v41  ;;  %v13046_v7 = vand.u32 4294901760, %v105_v13 }
 0x69d   :  { %10765 = vmatpush3.msra.mxu0 %v12891_v18  ;;  %10805 = vmatprep.mubr.f32.mxu1 %v12948_v50  ;;  %v13020_v18 = vand.u32 4294901760, %v12993_v54 }
 0x69e   :  { %10766 = vmatprep.subr.mxu0 %v12898_v6  ;;  %10772 = vmatprep.mubr.f32.mxu0 %v2676_v26  ;;  %v13030_v26 = vand.u32 4294901760, %v106_v31  ;;  %v13041_v63 = vand.u32 4294901760, %v3249_v56  ;;  %14703 = vst [vmem:[#allocation56_spill] sm:$0xff] %v13046_v7 }
 0x69f   :  { %10799 = vmatprep.subr.mxu1 %v12893_v35  ;;  %10767 = vmatpush3.msra.mxu0 %v12898_v6  ;;  %14698 = vst [vmem:[#allocation51_spill] sm:$0xff] %v13020_v18  ;;  %v3256_v6 = vsub.f32 %v12983_v32, %v13004_v39 }
 0x6a0   :  { %10800 = vmatpush3.msra.mxu1 %v12893_v35  ;;  %10768 = vmatprep.subr.mxu0 %v12905_v3  ;;  %14700 = vst [vmem:[#allocation53_spill] sm:$0xff] %v13030_v26  ;;  %v13044_v35 = vsub.f32 %v107_v27, %v13015_v55  ;;  %v13098_v27 = vand.u32 4294901760, %v3277_v8 }
 0x6a1   :  { %10801 = vmatprep.subr.mxu1 %v12900_v45  ;;  %10769 = vmatpush3.msra.mxu0 %v12905_v3  ;;  %v3263_v3 = vsub.f32 %v12993_v54, %v13020_v18  ;;  %v13062_v52 = vand.u32 4294901760, %v3256_v6 }
 0x6a2   :  { %10802 = vmatpush3.msra.mxu1 %v12900_v45  ;;  %10770 = vmatprep.subr.mxu0 %v12915_v1  ;;  %14702 = vst [vmem:[#allocation55_spill] sm:$0xff] %v13044_v35  ;;  %v13058_v45 = vsub.f32 %v106_v31, %v13030_v26 }
 0x6a3   :  { %10803 = vmatprep.subr.mxu1 %v12907_v4  ;;  %10771 = vmatpush3.msra.mxu0 %v12915_v1  ;;  %v3270_v1 = vsub.f32 %v13007_v15, %v13037_v34  ;;  %v13076_v14 = vand.u32 4294901760, %v3263_v3 }
 0x6a4   :  { %10804 = vmatpush3.msra.mxu1 %v12907_v4  ;;  %10773 = vmatmul.mubr.f32.vlgmr.msra.gmra.mxu0 %v12946_v61  ;;  %14705 = vst [vmem:[#allocation58_spill] sm:$0xff] %v13058_v45  ;;  %v13069_v4 = vand.u32 4294901760, %v13044_v35  ;;  %v13072_v61 = vsub.f32 %v105_v13, %v13046_v7 }
 0x6a5   :  { %10786 = vmatprep.subr.mxu0 %v12910_v12  ;;  %10806 = vmatmul.mubr.f32.vlgmr.msra.gmra.mxu1 %v12939_v20  ;;  %v13087_v58 = vand.u32 4294901760, %v3270_v1 }
 0x6a6   :  { %10827 = vmatprep.subr.mxu1 %v13041_v63  ;;  %10787 = vmatpush3.msra.mxu0 %v12910_v12  ;;  %14706 = vst [vmem:[#allocation59_spill] sm:$0xff] %v13069_v4  ;;  %14707 = vst [vmem:[#allocation60_spill] sm:$0xff] %v13072_v61  ;;  %v13083_v12 = vand.u32 4294901760, %v13058_v45  ;;  %v13094_v36 = vand.u32 4294901760, %v13072_v61 }
 0x6a7   :  { %10794 = vmatprep.mubr.f32.mxu0 %v12948_v50  ;;  %10828 = vmatpush3.msra.mxu1 %v13041_v63  ;;  %v3284_v50 = vsub.f32 %v13044_v35, %v13069_v4 }
 0x6a8   :  { %10843 = vmatprep.mubr.f32.mxu1 %v12792_v44  ;;  %10788 = vmatprep.subr.mxu0 %v12920_v0  ;;  %14708 = vst [vmem:[#allocation61_spill] sm:$0xff] %v13083_v12  ;;  %14709 = vst [vmem:[#allocation62_spill] sm:$0xff] %v13094_v36 }
 0x6a9   :  { %10829 = vmatprep.subr.mxu1 %v13062_v52  ;;  %10789 = vmatpush3.msra.mxu0 %v12920_v0  ;;  %v3291_v0 = vsub.f32 %v13058_v45, %v13083_v12  ;;  %v13108_v31 = vand.u32 4294901760, %v3284_v50 }
 0x6aa   :  { %10830 = vmatpush3.msra.mxu1 %v13062_v52  ;;  %10790 = vmatprep.subr.mxu0 %v12927_v28 }
 0x6ab   :  { %10831 = vmatprep.subr.mxu1 %v13076_v14  ;;  %10791 = vmatpush3.msra.mxu0 %v12927_v28  ;;  %v3298_v28 = vsub.f32 %v13072_v61, %v13094_v36  ;;  %v13116_v56 = vand.u32 4294901760, %v3291_v0 }
 0x6ac   :  { %10832 = vmatpush3.msra.mxu1 %v13076_v14  ;;  %10792 = vmatprep.subr.mxu0 %v12933_v17 }
 0x6ad   :  { %10833 = vmatprep.subr.mxu1 %v13087_v58  ;;  %10793 = vmatpush3.msra.mxu0 %v12933_v17  ;;  %14710 = vst [vmem:[#allocation63_spill] sm:$0xff] %v13116_v56  ;;  %v13122_v17 = vand.u32 4294901760, %v3298_v28 }
 0x6ae   :  { %10834 = vmatpush3.msra.mxu1 %v13087_v58  ;;  %10795 = vmatmul.mubr.f32.vlgmr.msra.gmra.mxu0 %v12939_v20 }
 0x6af   :  { %10808 = vmatprep.subr.mxu0 %v12953_v16  ;;  %10835 = vmatprep.subr.mxu1 %v13098_v27  ;;  %14711 = vst [vmem:[#allocation64_spill] sm:$0xff] %v13122_v17 }
 0x6b0   :  { %10809 = vmatpush3.msra.mxu0 %v12953_v16  ;;  %10824 = vmatprep.mubr.f32.mxu0 %v12818_v60 }
 0x6b1   :  { %10836 = vmatpush3.msra.mxu1 %v13098_v27  ;;  %10810 = vmatprep.subr.mxu0 %v12964_v23 }
 0x6b2   :  { %10837 = vmatprep.subr.mxu1 %v13108_v31  ;;  %10811 = vmatpush3.msra.mxu0 %v12964_v23 }
 0x6b3   :  { %10838 = vmatpush3.msra.mxu1 %v13108_v31  ;;  %10812 = vmatprep.subr.mxu0 %v12975_v2 }
 0x6b4   :  { %10839 = vmatprep.subr.mxu1 %v13116_v56  ;;  %10813 = vmatpush3.msra.mxu0 %v12975_v2 }
 0x6b5   :  { %10840 = vmatpush3.msra.mxu1 %v13116_v56  ;;  %10814 = vmatprep.subr.mxu0 %v12985_v29 }
 0x6b6   :  { %10841 = vmatprep.subr.mxu1 %v13122_v17  ;;  %10815 = vmatpush3.msra.mxu0 %v12985_v29 }
 0x6b7   :  { %10842 = vmatpush3.msra.mxu1 %v13122_v17  ;;  %10816 = vmatprep.subr.mxu0 %v12995_v42 }
 0x6b8   :  { %10844 = vmatmul.mubr.f32.vlgmr.msra.gmra.mxu1 %v12789_v21  ;;  %10865 = vmatprep.subr.mxu1 %v12953_v16 }
 0x6b9   :  { %10817 = vmatpush3.msra.mxu0 %v12995_v42  ;;  %10866 = vmatpush3.msra.mxu1 %v12953_v16 }
 0x6ba   :  { %10881 = vmatprep.mubr.f32.mxu1 %v12807_v24  ;;  %10818 = vmatprep.subr.mxu0 %v13015_v55 }
 0x6bb   :  { %10867 = vmatprep.subr.mxu1 %v12964_v23  ;;  %10819 = vmatpush3.msra.mxu0 %v13015_v55 }
 0x6bc   :  { %10868 = vmatpush3.msra.mxu1 %v12964_v23  ;;  %10820 = vmatprep.subr.mxu0 %v13030_v26 }
 0x6bd   :  { %10869 = vmatprep.subr.mxu1 %v12975_v2  ;;  %10821 = vmatpush3.msra.mxu0 %v13030_v26 }
 0x6be   :  { %10870 = vmatpush3.msra.mxu1 %v12975_v2  ;;  %10822 = vmatprep.subr.mxu0 %v13046_v7 }
 0x6bf   :  { %10871 = vmatprep.subr.mxu1 %v12985_v29  ;;  %10823 = vmatpush3.msra.mxu0 %v13046_v7 }
 0x6c0   :  { %10872 = vmatpush3.msra.mxu1 %v12985_v29  ;;  %10825 = vmatmul.mubr.f32.vlgmr.msra.gmra.mxu0 %v12821_v11 }
 0x6c1   :  { %10846 = vmatprep.subr.mxu0 %v12969_v5  ;;  %10873 = vmatprep.subr.mxu1 %v12995_v42 }
 0x6c2   :  { %10847 = vmatpush3.msra.mxu0 %v12969_v5  ;;  %10862 = vmatprep.mubr.f32.mxu0 %v12799_v19  ;;  %v13219_v19 = vld [vmem:[%s14546_s2] sm:$0x3f] }
 0x6c3   :  { %10874 = vmatpush3.msra.mxu1 %v12995_v42  ;;  %10848 = vmatprep.subr.mxu0 %v12983_v32 }
 0x6c4   :  { %10875 = vmatprep.subr.mxu1 %v13015_v55  ;;  %10849 = vmatpush3.msra.mxu0 %v12983_v32 }
 0x6c5   :  { %10876 = vmatpush3.msra.mxu1 %v13015_v55  ;;  %10850 = vmatprep.subr.mxu0 %v12993_v54 }
 0x6c6   :  { %10877 = vmatprep.subr.mxu1 %v13030_v26  ;;  %10851 = vmatpush3.msra.mxu0 %v12993_v54 }
 0x6c7   :  { %10878 = vmatpush3.msra.mxu1 %v13030_v26  ;;  %10852 = vmatprep.subr.mxu0 %v13007_v15 }
 0x6c8   :  { %10879 = vmatprep.subr.mxu1 %v13046_v7  ;;  %10853 = vmatpush3.msra.mxu0 %v13007_v15 }
 0x6c9   :  { %10880 = vmatpush3.msra.mxu1 %v13046_v7  ;;  %10854 = vmatprep.subr.mxu0 %v13023_v40 }
 0x6ca   :  { %10882 = vmatmul.mubr.f32.vlgmr.msra.gmra.mxu1 %v12802_v46  ;;  %10903 = vmatprep.subr.mxu1 %v12953_v16 }
 0x6cb   :  { %10855 = vmatpush3.msra.mxu0 %v13023_v40  ;;  %10904 = vmatpush3.msra.mxu1 %v12953_v16 }
 0x6cc   :  { %10919 = vmatprep.mubr.f32.mxu1 %v12792_v44  ;;  %10856 = vmatprep.subr.mxu0 %v13044_v35 }
 0x6cd   :  { %10905 = vmatprep.subr.mxu1 %v12964_v23  ;;  %10857 = vmatpush3.msra.mxu0 %v13044_v35 }
 0x6ce   :  { %10906 = vmatpush3.msra.mxu1 %v12964_v23  ;;  %10858 = vmatprep.subr.mxu0 %v13058_v45 }
 0x6cf   :  { %10907 = vmatprep.subr.mxu1 %v12975_v2  ;;  %10859 = vmatpush3.msra.mxu0 %v13058_v45  ;;  %v14643_v45 = vsub.s32 4, %v12121_v53 }
 0x6d0   :  { %10908 = vmatpush3.msra.mxu1 %v12975_v2  ;;  %10860 = vmatprep.subr.mxu0 %v13072_v61 }
 0x6d1   :  { %10909 = vmatprep.subr.mxu1 %v12985_v29  ;;  %10861 = vmatpush3.msra.mxu0 %v13072_v61 }
 0x6d2   :  { %10910 = vmatpush3.msra.mxu1 %v12985_v29  ;;  %10863 = vmatmul.mubr.f32.vlgmr.msra.gmra.mxu0 %v12795_v33 }
 0x6d3   :  { %10884 = vmatprep.subr.mxu0 %v12989_v41  ;;  %10911 = vmatprep.subr.mxu1 %v12995_v42 }
 0x6d4   :  { %10885 = vmatpush3.msra.mxu0 %v12989_v41  ;;  %10900 = vmatprep.mubr.f32.mxu0 %v12792_v44  ;;  %v14619_v44 = vsub.s32 2, %v12121_v53 }
 0x6d5   :  { %10912 = vmatpush3.msra.mxu1 %v12995_v42  ;;  %10886 = vmatprep.subr.mxu0 %v13004_v39 }
 0x6d6   :  { %10913 = vmatprep.subr.mxu1 %v13015_v55  ;;  %10887 = vmatpush3.msra.mxu0 %v13004_v39  ;;  %v2583_v46 = vrot.slane %v13219_v19, %v14619_v44 }
 0x6d7   :  { %10914 = vmatpush3.msra.mxu1 %v13015_v55  ;;  %10888 = vmatprep.subr.mxu0 %v13020_v18 }
 0x6d8   :  { %10915 = vmatprep.subr.mxu1 %v13030_v26  ;;  %10889 = vmatpush3.msra.mxu0 %v13020_v18 }
 0x6d9   :  { %10916 = vmatpush3.msra.mxu1 %v13030_v26  ;;  %10890 = vmatprep.subr.mxu0 %v13037_v34 }
 0x6da   :  { %10917 = vmatprep.subr.mxu1 %v13046_v7  ;;  %10891 = vmatpush3.msra.mxu0 %v13037_v34 }
 0x6db   :  { %10918 = vmatpush3.msra.mxu1 %v13046_v7  ;;  %10892 = vmatprep.subr.mxu0 %v13053_v9 }
 0x6dc   :  { %10920 = vmatmul.mubr.f32.vlgmr.msra.gmra.mxu1 %v12789_v21  ;;  %10893 = vmatpush3.msra.mxu0 %v13053_v9 }
 0x6dd   :  { %10894 = vmatprep.subr.mxu0 %v13069_v4 }
 0x6de   :  { %10895 = vmatpush3.msra.mxu0 %v13069_v4 }
 0x6df   :  { %10896 = vmatprep.subr.mxu0 %v13083_v12 }
 0x6e0   :  { %10897 = vmatpush3.msra.mxu0 %v13083_v12 }
 0x6e1   :  { %10898 = vmatprep.subr.mxu0 %v13094_v36 }
 0x6e2   :  { %10899 = vmatpush3.msra.mxu0 %v13094_v36 }
 0x6e3   :  { %10901 = vmatmul.mubr.f32.vlgmr.msra.gmra.mxu0 %v12789_v21 }
 0x753   :  { %v10763_v24 = vpop.f32.mrf.mxu1 }
 0x755   :  { %v2782_v6 = vpop.f32.mrf.mxu1 }
 0x75b   :  { %v10785_v21 = vpop.f32.mrf.mxu1 }
 0x75c   :  { %v10752_v33 = vpop.f32.mrf.mxu0 }
 0x75d   :  { %v2692_v11 = vadd.f32 %v10752_v33, %v2583_v46  ;;  %v2952_v28 = vpop.f32.mrf.mxu1  ;;  %v11821_v33 = vld [vmem:[#allocation2 + $0x8] sm:$0xff] }
 0x75e   :  { %v2681_v60 = vpop.f32.mrf.mxu0 }
 0x75f   :  { %v2682_v13 = vadd.f32 %v2681_v60, %v2583_v46  ;;  %v2789_v3 = vadd.f32 %v10763_v24, %v2692_v11  ;;  %v11822_v24 = vld [vmem:[#allocation2] sm:$0xff] }
 0x761   :  { %v2783_v50 = vadd.f32 %v2782_v6, %v2682_v13 }
 0x764   :  { %v10774_v20 = vpop.f32.mrf.mxu0 }
 0x765   :  { %v2876_v8 = vadd.f32 %v10774_v20, %v2789_v3  ;;  %v10807_v12 = vpop.f32.mrf.mxu1 }
 0x766   :  { %v2868_v1 = vpop.f32.mrf.mxu0 }
 0x767   :  { %v2869_v0 = vadd.f32 %v2868_v1, %v2783_v50  ;;  %v2961_v36 = vadd.f32 %v10785_v21, %v2876_v8  ;;  %v3124_v41 = vpop.f32.mrf.mxu1 }
 0x769   :  { %v2953_v34 = vadd.f32 %v2952_v28, %v2869_v0 }
 0x76e   :  { %v10796_v4 = vpop.f32.mrf.mxu0 }
 0x76f   :  { %v3050_v9 = vadd.f32 %v10796_v4, %v2961_v36 }
 0x770   :  { %v3043_v18 = vpop.f32.mrf.mxu0 }
 0x771   :  { %v3131_v44 = vadd.f32 %v10807_v12, %v3050_v9  ;;  %v3044_v39 = vadd.f32 %v3043_v18, %v2953_v34 }
 0x773   :  { %v13224_v61 = vadd.f32 %v11821_v33, %v3131_v44  ;;  %v3125_v46 = vadd.f32 %v3124_v41, %v3044_v39 }
 0x775   :  { %v13226_v60 = vadd.f32 %v11822_v24, %v3125_v46  ;;  %v3719_v11 = vsel %vm127_vm0, %v13224_v61, 0.0 }
 0x776   :  { %3720 = vadd.xlane.f32.xlu1 %v3719_v11 }
 0x777   :  { %v3716_v20 = vsel %vm127_vm0, %v13226_v60, 0.0 }
 0x778   :  { %3717 = vadd.xlane.f32.xlu0 %v3716_v20  ;;  %v10845_v4 = vpop.f32.mrf.mxu1 }
 0x77a   :  { %v3336_v18 = vpop.f32.mrf.mxu1 }
 0x780   :  { %v10826_v36 = vpop.f32.mrf.mxu0 }
 0x781   :  { %v3343_v9 = vadd.f32 %v10845_v4, %v10826_v36 }
 0x782   :  { %v3215_v34 = vpop.f32.mrf.mxu0 }
 0x783   :  { %v3337_v12 = vadd.f32 %v3336_v18, %v3215_v34 }
 0x78a   :  { %v10883_v44 = vpop.f32.mrf.mxu1 }
 0x78c   :  { %v3518_v21 = vpop.f32.mrf.mxu1 }
 0x792   :  { %v10864_v13 = vpop.f32.mrf.mxu0 }
 0x793   :  { %v3438_v41 = vadd.f32 %v10864_v13, %v3343_v9  ;;  %v117_v13 = vld [vmem:[#allocation5 + $0x20] sm:$0xff] }
 0x794   :  { %v3430_v39 = vpop.f32.mrf.mxu0 }
 0x795   :  { %v3431_v6 = vadd.f32 %v3430_v39, %v3337_v12  ;;  %v3527_v3 = vadd.f32 %v10883_v44, %v3438_v41  ;;  %v123_v12 = vld [vmem:[#allocation5 + $0x50] sm:$0xff]  ;;  %v120_v44 = vld [vmem:[#allocation5 + $0x38] sm:$0xff] }
 0x796   :  { %v13244_v41 = vand.u32 4294901760, %v123_v12  ;;  %v13246_v39 = vand.u32 4294901760, %v120_v44 }
 0x797   :  { %v13232_v1 = vadd.f32 %v3518_v21, %v3431_v6  ;;  %v13248_v6 = vand.u32 4294901760, %v117_v13 }
 0x798   :  { %v13254_v21 = vsub.f32 %v120_v44, %v13246_v39  ;;  %10922 = vmatprep.subr.mxu0 %v13244_v41 }
 0x799   :  { %14712 = vst [vmem:[#allocation65_spill] sm:$0xff] %v13232_v1  ;;  %10923 = vmatpush3.msra.mxu0 %v13244_v41 }
 0x79a   :  { %10924 = vmatprep.subr.mxu0 %v13246_v39 }
 0x79b   :  { %10925 = vmatpush3.msra.mxu0 %v13246_v39 }
 0x79c   :  { %v10921_v0 = vpop.f32.mrf.mxu1  ;;  %10926 = vmatprep.subr.mxu0 %v13248_v6 }
 0x79d   :  { %10927 = vmatpush3.msra.mxu0 %v13248_v6 }
 0x7a3   :  { %v10902_v8 = vpop.f32.mrf.mxu0 }
 0x7a4   :  { %v3628_v50 = vadd.f32 %v10902_v8, %v3527_v3  ;;  %v13251_v3 = vsub.f32 %v123_v12, %v13244_v41  ;;  %v13257_v8 = vsub.f32 %v117_v13, %v13248_v6 }
 0x7a6   :  { %v13234_v28 = vadd.f32 %v10921_v0, %v3628_v50  ;;  %v13262_v50 = vand.u32 4294901760, %v13251_v3  ;;  %v13265_v0 = vand.u32 4294901760, %v13254_v21 }
 0x7a8   :  { %14713 = vst [vmem:[#allocation66_spill] sm:$0xff] %v13234_v28  ;;  %v14638_v28 = vsub.s32 3, %v12121_v53 }
 0x7ff   :  { %v3721_v33 = vpop.xlane.xlu1 %3720 }
 0x800   :  { %v3723_v46 = vmul.f32 0.03125, %v3721_v33  ;;  %v13268_v33 = vand.u32 4294901760, %v13257_v8 }
 0x801   :  { %v3718_v24 = vpop.xlane.xlu0 %3717 }
 0x802   :  { %v3722_v11 = vmul.f32 0.03125, %v3718_v24  ;;  %v13237_v20 = vsub.f32 %v13224_v61, %v3723_v46  ;;  %v3883_v46 = vsub.f32 %v13251_v3, %v13262_v50  ;;  %v3890_v24 = vsub.f32 %v13254_v21, %v13265_v0 }
 0x804   :  { %v3724_v4 = vsub.f32 %v13226_v60, %v3722_v11  ;;  %v3727_v18 = vmul.f32 %v13237_v20, %v13237_v20  ;;  %v3897_v11 = vsub.f32 %v13257_v8, %v13268_v33 }
 0x806   :  { %v3726_v36 = vmul.f32 %v3724_v4, %v3724_v4  ;;  %v3731_v34 = vsel %vm127_vm0, %v3727_v18, 0.0  ;;  %v3898_v18 = vand.u32 4294901760, %v3897_v11 }
 0x808   :  { %v3728_v9 = vsel %vm127_vm0, %v3726_v36, 0.0  ;;  %v3884_v36 = vand.u32 4294901760, %v3883_v46 }
 0x809   :  { %3729 = vadd.xlane.f32.xlu0 %v3728_v9  ;;  %v3891_v9 = vand.u32 4294901760, %v3890_v24 }
 0x80a   :  { %10933 = vmatprep.subr.mxu1 %v3884_v36 }
 0x80b   :  { %10934 = vmatpush3.msra.mxu1 %v3884_v36 }
 0x80c   :  { %10935 = vmatprep.subr.mxu1 %v3891_v9 }
 0x80d   :  { %3732 = vadd.xlane.f32.xlu0 %v3731_v34  ;;  %10936 = vmatpush3.msra.mxu1 %v3891_v9  ;;  %v114_v34 = vld [vmem:[#allocation5 + $0x8] sm:$0xff] }
 0x80e   :  { %10937 = vmatprep.subr.mxu1 %v3898_v18  ;;  %v13280_v12 = vand.u32 4294901760, %v114_v34 }
 0x80f   :  { %10938 = vmatpush3.msra.mxu1 %v3898_v18 }
 0x810   :  { %v13283_v44 = vsub.f32 %v114_v34, %v13280_v12  ;;  %10928 = vmatprep.subr.mxu0 %v13280_v12 }
 0x811   :  { %10929 = vmatpush3.msra.mxu0 %v13280_v12 }
 0x812   :  { %v13288_v13 = vand.u32 4294901760, %v13283_v44  ;;  %10944 = vmatprep.subr.mxu0 %v13251_v3 }
 0x814   :  { %v3904_v46 = vsub.f32 %v13283_v44, %v13288_v13 }
 0x816   :  { %v3905_v24 = vand.u32 4294901760, %v3904_v46  ;;  %v3745_v46 = vrot.slane %v13219_v19, %v14638_v28 }
 0x818   :  { %10939 = vmatprep.subr.mxu1 %v3905_v24 }
 0x819   :  { %10940 = vmatpush3.msra.mxu1 %v3905_v24 }
 0x81a   :  { %10955 = vmatprep.subr.mxu1 %v13244_v41 }
 0x892   :  { %v3730_v11 = vpop.xlane.xlu0 %3729 }
 0x893   :  { %v3734_v36 = vmul.f32 0.03125, %v3730_v11  ;;  %v3751_v11 = vrot.slane %v13219_v19, %v14643_v45 }
 0x895   :  { %v3736_v9 = vadd.f32 1e-05, %v3734_v36 }
 0x896   :  { %v3733_v18 = vpop.xlane.xlu0 %3732 }
 0x897   :  { %11800 = vrsqrt.f32 %v3736_v9  ;;  %v3735_v34 = vmul.f32 0.03125, %v3733_v18 }
 0x899   :  { %v3737_v1 = vadd.f32 1e-05, %v3735_v34 }
 0x89b   :  { %11802 = vrsqrt.f32 %v3737_v1 }
 0x8a4   :  { %v11801_v35 = vpop.eup %11800 }
 0x8a5   :  { %v3740_v24 = vmul.f32 %v11801_v35, %v3724_v4 }
 0x8a7   :  { %v3746_v36 = vmul.f32 %v3745_v46, %v3740_v24 }
 0x8a8   :  { %v11803_v40 = vpop.eup %11802 }
 0x8a9   :  { %v3752_v9 = vadd.f32 %v3751_v11, %v3746_v36  ;;  %v3741_v18 = vmul.f32 %v11803_v40, %v13237_v20 }
 0x8ab   :  { %v3761_v1 = vsel %vm127_vm0, %v3752_v9, 0  ;;  %v3747_v34 = vmul.f32 %v3745_v46, %v3741_v18 }
 0x8ac   :  { %v3835_v15 = vand.u32 4294901760, %v3761_v1 }
 0x8ad   :  { %v3753_v54 = vadd.f32 %v3751_v11, %v3747_v34 }
 0x8ae   :  { %10941 = vmatprep.mubr.f32.mxu1 %v3835_v15  ;;  %v3836_v32 = vsub.f32 %v3761_v1, %v3835_v15 }
 0x8af   :  { %v3764_v28 = vsel %vm127_vm0, %v3753_v54, 0 }
 0x8b0   :  { %v3845_v5 = vand.u32 4294901760, %v3764_v28  ;;  %v3837_v35 = vand.u32 4294901760, %v3836_v32 }
 0x8b2   :  { %v3846_v4 = vsub.f32 %v3764_v28, %v3845_v5  ;;  %10942 = vmatmul.mubr.f32.vlgmr.msra.gmra.mxu1 %v3845_v5  ;;  %v3838_v7 = vsub.f32 %v3836_v32, %v3837_v35 }
 0x8b3   :  { %10956 = vmatpush3.msra.mxu1 %v13244_v41  ;;  %10963 = vmatprep.mubr.f32.mxu1 %v3837_v35  ;;  %v13385_v35 = vpop.f32.mrf.mxu0 }
 0x8b4   :  { %10957 = vmatprep.subr.mxu1 %v13246_v39  ;;  %v3839_v40 = vand.u32 4294901760, %v3838_v7  ;;  %v3847_v20 = vand.u32 4294901760, %v3846_v4  ;;  %14714 = vst [vmem:[#allocation67_spill] sm:$0xff] %v13385_v35 }
 0x8b5   :  { %10958 = vmatpush3.msra.mxu1 %v13246_v39 }
 0x8b6   :  { %10959 = vmatprep.subr.mxu1 %v13248_v6  ;;  %10930 = vmatprep.mubr.f32.mxu0 %v3839_v40  ;;  %v3848_v46 = vsub.f32 %v3846_v4, %v3847_v20  ;;  %v13387_v40 = vpop.f32.mrf.mxu1 }
 0x8b7   :  { %10960 = vmatpush3.msra.mxu1 %v13248_v6  ;;  %14715 = vst [vmem:[#allocation68_spill] sm:$0xff] %v13387_v40 }
 0x8b8   :  { %10961 = vmatprep.subr.mxu1 %v13280_v12  ;;  %v3849_v54 = vand.u32 4294901760, %v3848_v46 }
 0x8b9   :  { %10962 = vmatpush3.msra.mxu1 %v13280_v12 }
 0x8ba   :  { %10964 = vmatmul.mubr.f32.vlgmr.msra.gmra.mxu1 %v3847_v20  ;;  %10977 = vmatprep.subr.mxu1 %v13244_v41  ;;  %v9563_v20 = vld [vmem:[#allocation7] ss:$0 sm:$0xff] }
 0x8bb   :  { %10931 = vmatmul.mubr.f32.vlgmr.msra.gmra.mxu0 %v3849_v54  ;;  %10978 = vmatpush3.msra.mxu1 %v13244_v41 }
 0x8bc   :  { %10945 = vmatpush3.msra.mxu0 %v13251_v3  ;;  %10985 = vmatprep.mubr.f32.mxu1 %v3835_v15  ;;  %v118_v3 = vld [vmem:[#allocation5 + $0x28] sm:$0xff] }
 0x8bd   :  { %10946 = vmatprep.subr.mxu0 %v13254_v21  ;;  %10952 = vmatprep.mubr.f32.mxu0 %v3836_v32  ;;  %v124_v32 = vld [vmem:[#allocation5 + $0x58] sm:$0xff] }
 0x8be   :  { %10979 = vmatprep.subr.mxu1 %v13246_v39  ;;  %10947 = vmatpush3.msra.mxu0 %v13254_v21  ;;  %v13335_v7 = vand.u32 4294901760, %v124_v32 }
 0x8bf   :  { %10980 = vmatpush3.msra.mxu1 %v13246_v39  ;;  %10948 = vmatprep.subr.mxu0 %v13257_v8 }
 0x8c0   :  { %10981 = vmatprep.subr.mxu1 %v13248_v6  ;;  %10949 = vmatpush3.msra.mxu0 %v13257_v8  ;;  %v13338_v28 = vsub.f32 %v124_v32, %v13335_v7 }
 0x8c1   :  { %10982 = vmatpush3.msra.mxu1 %v13248_v6  ;;  %10950 = vmatprep.subr.mxu0 %v13283_v44 }
 0x8c2   :  { %10983 = vmatprep.subr.mxu1 %v13280_v12  ;;  %10951 = vmatpush3.msra.mxu0 %v13283_v44  ;;  %v13343_v41 = vand.u32 4294901760, %v13338_v28 }
 0x8c3   :  { %10984 = vmatpush3.msra.mxu1 %v13280_v12  ;;  %10953 = vmatmul.mubr.f32.vlgmr.msra.gmra.mxu0 %v3846_v4  ;;  %v115_v12 = vld [vmem:[#allocation5 + $0x10] sm:$0xff] }
 0x8c4   :  { %10966 = vmatprep.subr.mxu0 %v13262_v50  ;;  %10986 = vmatmul.mubr.f32.vlgmr.msra.gmra.mxu1 %v3845_v5  ;;  %v4413_v6 = vsub.f32 %v13338_v28, %v13343_v41  ;;  %v13369_v24 = vand.u32 4294901760, %v115_v12 }
 0x8c5   :  { %10967 = vmatpush3.msra.mxu0 %v13262_v50  ;;  %10974 = vmatprep.mubr.f32.mxu0 %v3835_v15  ;;  %v121_v15 = vld [vmem:[#allocation5 + $0x40] sm:$0xff]  ;;  %v13357_v50 = vand.u32 4294901760, %v118_v3 }
 0x8c6   :  { %10968 = vmatprep.subr.mxu0 %v13265_v0  ;;  %v13345_v39 = vand.u32 4294901760, %v121_v15  ;;  %v4414_v21 = vand.u32 4294901760, %v4413_v6  ;;  %v13374_v36 = vsub.f32 %v115_v12, %v13369_v24 }
 0x8c7   :  { %10969 = vmatpush3.msra.mxu0 %v13265_v0 }
 0x8c8   :  { %10970 = vmatprep.subr.mxu0 %v13268_v33  ;;  %10999 = vmatprep.subr.mxu1 %v4414_v21  ;;  %v13379_v18 = vand.u32 4294901760, %v13374_v36 }
 0x8c9   :  { %10971 = vmatpush3.msra.mxu0 %v13268_v33  ;;  %v13362_v33 = vsub.f32 %v118_v3, %v13357_v50  ;;  %11000 = vmatpush3.xpose.msra.mxu1 %v4414_v21 }
 0x8ca   :  { %10972 = vmatprep.subr.mxu0 %v13288_v13  ;;  %v4434_v1 = vsub.f32 %v13374_v36, %v13379_v18 }
 0x8cb   :  { %10973 = vmatpush3.msra.mxu0 %v13288_v13  ;;  %v13367_v13 = vand.u32 4294901760, %v13362_v33 }
 0x8cc   :  { %10975 = vmatmul.mubr.f32.vlgmr.msra.gmra.mxu0 %v3845_v5  ;;  %10988 = vmatprep.subr.mxu0 %v13335_v7  ;;  %v13350_v5 = vsub.f32 %v121_v15, %v13345_v39  ;;  %v4435_v34 = vand.u32 4294901760, %v4434_v1 }
 0x8cd   :  { %10989 = vmatpush3.xpose.msra.mxu0 %v13335_v7  ;;  %v4427_v11 = vsub.f32 %v13362_v33, %v13367_v13 }
 0x8ce   :  { %10990 = vmatprep.subr.mxu0 %v13345_v39  ;;  %v13355_v8 = vand.u32 4294901760, %v13350_v5 }
 0x8cf   :  { %v4428_v9 = vand.u32 4294901760, %v4427_v11 }
 0x8d0   :  { %v4420_v0 = vsub.f32 %v13350_v5, %v13355_v8 }
 0x8d1   :  { %10991 = vmatpush3.xpose.msra.mxu0 %v13345_v39 }
 0x8d2   :  { %10992 = vmatprep.subr.mxu0 %v13357_v50  ;;  %v4421_v44 = vand.u32 4294901760, %v4420_v0 }
 0x8d4   :  { %11001 = vmatprep.subr.mxu1 %v4421_v44 }
 0x8d5   :  { %10993 = vmatpush3.xpose.msra.mxu0 %v13357_v50  ;;  %11002 = vmatpush3.xpose.msra.mxu1 %v4421_v44 }
 0x8d6   :  { %10994 = vmatprep.subr.mxu0 %v13369_v24  ;;  %11003 = vmatprep.subr.mxu1 %v4428_v9 }
 0x8d9   :  { %10995 = vmatpush3.xpose.msra.mxu0 %v13369_v24  ;;  %11004 = vmatpush3.xpose.msra.mxu1 %v4428_v9 }
 0x8da   :  { %11010 = vmatprep.subr.mxu0 %v13338_v28  ;;  %11005 = vmatprep.subr.mxu1 %v4435_v34 }
 0x8dd   :  { %11006 = vmatpush3.xpose.msra.mxu1 %v4435_v34 }
 0x8de   :  { %11021 = vmatprep.subr.mxu1 %v13335_v7 }
 0x972   :  { %v10943_v46 = vpop.f32.mrf.mxu1 }
 0x974   :  { %v3942_v3 = vpop.f32.mrf.mxu1 }
 0x97a   :  { %v10965_v0 = vpop.f32.mrf.mxu1 }
 0x97b   :  { %v10932_v4 = vpop.f32.mrf.mxu0 }
 0x97c   :  { %v3852_v32 = vadd.f32 %v10932_v4, %v9563_v20  ;;  %v4112_v1 = vpop.f32.mrf.mxu1 }
 0x97d   :  { %v3841_v54 = vpop.f32.mrf.mxu0 }
 0x97e   :  { %v3842_v15 = vadd.f32 %v9563_v20, %v3841_v54  ;;  %v3949_v21 = vadd.f32 %v10943_v46, %v3852_v32 }
 0x980   :  { %v3943_v11 = vadd.f32 %v3942_v3, %v3842_v15 }
 0x983   :  { %v10954_v6 = vpop.f32.mrf.mxu0 }
 0x984   :  { %v4036_v44 = vadd.f32 %v10954_v6, %v3949_v21  ;;  %v10987_v45 = vpop.f32.mrf.mxu1 }
 0x985   :  { %v4028_v12 = vpop.f32.mrf.mxu0 }
 0x986   :  { %v4029_v9 = vadd.f32 %v4028_v12, %v3943_v11  ;;  %v4121_v34 = vadd.f32 %v10965_v0, %v4036_v44  ;;  %v4284_v29 = vpop.f32.mrf.mxu1 }
 0x988   :  { %v4113_v55 = vadd.f32 %v4112_v1, %v4029_v9 }
 0x98c   :  { %v10976_v35 = vpop.f32.mrf.mxu0 }
 0x98d   :  { %v4210_v26 = vadd.f32 %v10976_v35, %v4121_v34 }
 0x98e   :  { %v4203_v40 = vpop.f32.mrf.mxu0 }
 0x98f   :  { %v4291_v42 = vadd.f32 %v10987_v45, %v4210_v26  ;;  %v4204_v17 = vadd.f32 %v4203_v40, %v4113_v55 }
 0x991   :  { %v4295_v4 = vmax.f32 %v4291_v42, 0.0  ;;  %v4285_v20 = vadd.f32 %v4284_v29, %v4204_v17 }
 0x993   :  { %v4375_v54 = vand.u32 4294901760, %v4295_v4  ;;  %v4294_v56 = vmax.f32 %v4285_v20, 0.0 }
 0x995   :  { %v4376_v46 = vsub.f32 %v4295_v4, %v4375_v54  ;;  %v4365_v32 = vand.u32 4294901760, %v4294_v56 }
 0x997   :  { %v4377_v2 = vand.u32 4294901760, %v4376_v46  ;;  %v4366_v6 = vsub.f32 %v4294_v56, %v4365_v32  ;;  %11007 = vmatprep.mubr.f32.mxu1 %v4365_v32 }
 0x998   :  { %11008 = vmatmul.mubr.f32.vlgmr.msra.gmra.mxu1 %v4375_v54 }
 0x999   :  { %11022 = vmatpush3.xpose.msra.mxu1 %v13335_v7  ;;  %v4367_v15 = vand.u32 4294901760, %v4366_v6  ;;  %v4378_v35 = vsub.f32 %v4376_v46, %v4377_v2 }
 0x99a   :  { %11023 = vmatprep.subr.mxu1 %v13345_v39 }
 0x99b   :  { %11029 = vmatprep.mubr.f32.mxu1 %v4367_v15  ;;  %v4368_v26 = vsub.f32 %v4366_v6, %v4367_v15  ;;  %v4379_v29 = vand.u32 4294901760, %v4378_v35 }
 0x99d   :  { %11024 = vmatpush3.xpose.msra.mxu1 %v13345_v39  ;;  %v4369_v42 = vand.u32 4294901760, %v4368_v26 }
 0x99e   :  { %11025 = vmatprep.subr.mxu1 %v13357_v50 }
 0x99f   :  { %10996 = vmatprep.mubr.f32.mxu0 %v4369_v42 }
 0x9a0   :  { %10997 = vmatmul.mubr.f32.vlgmr.msra.gmra.mxu0 %v4379_v29  ;;  %v13445_v29 = vld [vmem:[#allocation5 + $0xa8] sm:$0xff] }
 0x9a1   :  { %11011 = vmatpush3.xpose.msra.mxu0 %v13338_v28  ;;  %11026 = vmatpush3.xpose.msra.mxu1 %v13357_v50 }
 0x9a2   :  { %11018 = vmatprep.mubr.f32.mxu0 %v4366_v6  ;;  %11012 = vmatprep.subr.mxu0 %v13350_v5 }
 0x9a3   :  { %11027 = vmatprep.subr.mxu1 %v13369_v24 }
 0x9a5   :  { %11013 = vmatpush3.xpose.msra.mxu0 %v13350_v5  ;;  %11028 = vmatpush3.xpose.msra.mxu1 %v13369_v24 }
 0x9a6   :  { %11014 = vmatprep.subr.mxu0 %v13362_v33  ;;  %11043 = vmatprep.subr.mxu1 %v13335_v7 }
 0x9a8   :  { %11030 = vmatmul.mubr.f32.vlgmr.msra.gmra.mxu1 %v4377_v2 }
 0x9a9   :  { %11015 = vmatpush3.xpose.msra.mxu0 %v13362_v33  ;;  %11044 = vmatpush3.xpose.msra.mxu1 %v13335_v7 }
 0x9aa   :  { %11051 = vmatprep.mubr.f32.mxu1 %v4365_v32  ;;  %11016 = vmatprep.subr.mxu0 %v13374_v36 }
 0x9ab   :  { %11045 = vmatprep.subr.mxu1 %v13345_v39 }
 0x9ad   :  { %11017 = vmatpush3.xpose.msra.mxu0 %v13374_v36  ;;  %11046 = vmatpush3.xpose.msra.mxu1 %v13345_v39 }
 0x9ae   :  { %11032 = vmatprep.subr.mxu0 %v13343_v41  ;;  %11047 = vmatprep.subr.mxu1 %v13357_v50 }
 0x9b0   :  { %11019 = vmatmul.mubr.f32.vlgmr.msra.gmra.mxu0 %v4376_v46 }
 0x9b1   :  { %11033 = vmatpush3.xpose.msra.mxu0 %v13343_v41  ;;  %11040 = vmatprep.mubr.f32.mxu0 %v4365_v32 }
 0x9b2   :  { %11048 = vmatpush3.xpose.msra.mxu1 %v13357_v50  ;;  %11034 = vmatprep.subr.mxu0 %v13355_v8 }
 0x9b3   :  { %11049 = vmatprep.subr.mxu1 %v13369_v24 }
 0x9b5   :  { %11035 = vmatpush3.xpose.msra.mxu0 %v13355_v8 }
 0x9b6   :  { %11050 = vmatpush3.xpose.msra.mxu1 %v13369_v24  ;;  %11036 = vmatprep.subr.mxu0 %v13367_v13 }
 0x9b9   :  { %11052 = vmatmul.mubr.f32.vlgmr.msra.gmra.mxu1 %v4375_v54  ;;  %11037 = vmatpush3.xpose.msra.mxu0 %v13367_v13  ;;  %v14658_v13 = vsub.s32 5, %v12121_v53 }
 0x9ba   :  { %11038 = vmatprep.subr.mxu0 %v13379_v18 }
 0x9bb   :  { %v4829_v12 = vrot.slane %v13219_v19, %v14658_v13 }
 0x9bd   :  { %11039 = vmatpush3.xpose.msra.mxu0 %v13379_v18 }
 0x9c0   :  { %11041 = vmatmul.mubr.f32.vlgmr.msra.gmra.mxu0 %v4375_v54 }
 0xa58   :  { %v11009_v55 = vpop.f32.mrf.mxu1 }
 0xa5a   :  { %v4472_v17 = vpop.f32.mrf.mxu1 }
 0xa60   :  { %v10998_v2 = vpop.f32.mrf.mxu0 }
 0xa61   :  { %v4479_v7 = vadd.f32 %v11009_v55, %v10998_v2  ;;  %v13447_v2 = vld [vmem:[#allocation5 + $0x90] sm:$0xff]  ;;  %v13449_v55 = vld [vmem:[#allocation5 + $0x78] sm:$0xff] }
 0xa62   :  { %v4371_v45 = vpop.f32.mrf.mxu0 }
 0xa63   :  { %v4473_v39 = vadd.f32 %v4472_v17, %v4371_v45  ;;  %v13452_v45 = vand.u32 4294901760, %v13445_v29  ;;  %v13458_v17 = vand.u32 4294901760, %v13449_v55 }
 0xa65   :  { %11054 = vmatprep.subr.mxu0 %v13452_v45 }
 0xa66   :  { %11055 = vmatpush3.msra.mxu0 %v13452_v45 }
 0xa68   :  { %v11031_v28 = vpop.f32.mrf.mxu1 }
 0xa6a   :  { %v4642_v50 = vpop.f32.mrf.mxu1 }
 0xa70   :  { %v11020_v56 = vpop.f32.mrf.mxu0 }
 0xa71   :  { %v4566_v5 = vadd.f32 %v11020_v56, %v4479_v7  ;;  %v13455_v56 = vand.u32 4294901760, %v13447_v2  ;;  %v13460_v7 = vld [vmem:[#allocation5 + $0x60] sm:$0xff] }
 0xa72   :  { %v4558_v41 = vpop.f32.mrf.mxu0 }
 0xa73   :  { %v4559_v8 = vadd.f32 %v4558_v41, %v4473_v39  ;;  %v4651_v33 = vadd.f32 %v11031_v28, %v4566_v5  ;;  %v13463_v28 = vand.u32 4294901760, %v13460_v7  ;;  %v13467_v41 = vsub.f32 %v13445_v29, %v13452_v45  ;;  %11056 = vmatprep.subr.mxu0 %v13455_v56 }
 0xa74   :  { %v13471_v39 = vsub.f32 %v13447_v2, %v13455_v56  ;;  %v13475_v5 = vsub.f32 %v13449_v55, %v13458_v17  ;;  %11057 = vmatpush3.msra.mxu0 %v13455_v56 }
 0xa75   :  { %v4643_v18 = vadd.f32 %v4642_v50, %v4559_v8  ;;  %v13480_v8 = vsub.f32 %v13460_v7, %v13463_v28  ;;  %v13484_v50 = vand.u32 4294901760, %v13467_v41  ;;  %11058 = vmatprep.subr.mxu0 %v13458_v17 }
 0xa76   :  { %11059 = vmatpush3.msra.mxu0 %v13458_v17 }
 0xa77   :  { %11060 = vmatprep.subr.mxu0 %v13463_v28 }
 0xa78   :  { %11061 = vmatpush3.msra.mxu0 %v13463_v28 }
 0xa79   :  { %v11053_v24 = vpop.f32.mrf.mxu1  ;;  %11076 = vmatprep.subr.mxu0 %v13467_v41 }
 0xa7b   :  { %v4814_v44 = vpop.f32.mrf.mxu1 }
 0xa80   :  { %v11042_v36 = vpop.f32.mrf.mxu0 }
 0xa81   :  { %v4740_v40 = vadd.f32 %v11042_v36, %v4651_v33  ;;  %v13487_v33 = vand.u32 4294901760, %v13471_v39  ;;  %v13494_v36 = vand.u32 4294901760, %v13480_v8 }
 0xa82   :  { %v4733_v3 = vpop.f32.mrf.mxu0 }
 0xa83   :  { %v4821_v21 = vadd.f32 %v11053_v24, %v4740_v40  ;;  %v4734_v0 = vadd.f32 %v4733_v3, %v4643_v18  ;;  %v13490_v24 = vand.u32 4294901760, %v13475_v5  ;;  %v5010_v40 = vsub.f32 %v13467_v41, %v13484_v50 }
 0xa84   :  { %v5017_v18 = vsub.f32 %v13471_v39, %v13487_v33 }
 0xa85   :  { %v4825_v11 = vadd.f32 %v4821_v21, %v13224_v61  ;;  %v4815_v9 = vadd.f32 %v4814_v44, %v4734_v0  ;;  %v5024_v3 = vsub.f32 %v13475_v5, %v13490_v24  ;;  %v5011_v21 = vand.u32 4294901760, %v5010_v40 }
 0xa86   :  { %v5018_v0 = vand.u32 4294901760, %v5017_v18 }
 0xa87   :  { %v4824_v1 = vadd.f32 %v4815_v9, %v13226_v60  ;;  %v13425_v34 = vadd.f32 %v4829_v12, %v4825_v11  ;;  %11065 = vmatprep.subr.mxu1 %v5011_v21  ;;  %v5025_v44 = vand.u32 4294901760, %v5024_v3 }
 0xa88   :  { %11066 = vmatpush3.msra.mxu1 %v5011_v21 }
 0xa89   :  { %14716 = vst [vmem:[#allocation69_spill] sm:$0xff] %v13425_v34  ;;  %v4852_v4 = vsel %vm127_vm0, %v13425_v34, 0.0  ;;  %v13429_v20 = vadd.f32 %v4829_v12, %v4824_v1  ;;  %v5031_v12 = vsub.f32 %v13480_v8, %v13494_v36  ;;  %11067 = vmatprep.subr.mxu1 %v5018_v0 }
 0xa8a   :  { %4853 = vadd.xlane.f32.xlu1 %v4852_v4  ;;  %11068 = vmatpush3.msra.mxu1 %v5018_v0 }
 0xa8b   :  { %14717 = vst [vmem:[#allocation70_spill] sm:$0xff] %v13429_v20  ;;  %v4849_v54 = vsel %vm127_vm0, %v13429_v20, 0.0  ;;  %v5032_v11 = vand.u32 4294901760, %v5031_v12  ;;  %11069 = vmatprep.subr.mxu1 %v5025_v44 }
 0xa8c   :  { %4850 = vadd.xlane.f32.xlu0 %v4849_v54  ;;  %11070 = vmatpush3.msra.mxu1 %v5025_v44 }
 0xa8d   :  { %11071 = vmatprep.subr.mxu1 %v5032_v11 }
 0xa8e   :  { %11072 = vmatpush3.msra.mxu1 %v5032_v11 }
 0xa8f   :  { %11087 = vmatprep.subr.mxu1 %v13452_v45 }
 0xb13   :  { %v4854_v46 = vpop.xlane.xlu1 %4853 }
 0xb14   :  { %v4856_v19 = vmul.f32 0.03125, %v4854_v46 }
 0xb15   :  { %v4851_v32 = vpop.xlane.xlu0 %4850 }
 0xb16   :  { %v13434_v61 = vsub.f32 %v13425_v34, %v4856_v19  ;;  %v4855_v6 = vmul.f32 0.03125, %v4851_v32  ;;  %v9564_v32 = vld [vmem:[%s14546_s2 + $0x8] sm:$0x3f] }
 0xb18   :  { %v13437_v60 = vsub.f32 %v13429_v20, %v4855_v6  ;;  %v4860_v15 = vmul.f32 %v13434_v61, %v13434_v61  ;;  %v14718_v6 = vsub.s32 0, %v12121_v53 }
 0xb1a   :  { %v4864_v35 = vsel %vm127_vm0, %v4860_v15, 0.0  ;;  %v4859_v26 = vmul.f32 %v13437_v60, %v13437_v60  ;;  %v4878_v15 = vrot.slane %v9564_v32, %v14718_v6 }
 0xb1b   :  { %4865 = vadd.xlane.f32.xlu1 %v4864_v35 }
 0xb1c   :  { %v4861_v42 = vsel %vm127_vm0, %v4859_v26, 0.0  ;;  %v14719_v26 = vsub.s32 1, %v12121_v53 }
 0xb1d   :  { %4862 = vadd.xlane.f32.xlu0 %v4861_v42 }
 0xb1e   :  { %v4884_v42 = vrot.slane %v9564_v32, %v14719_v26 }
 0xba4   :  { %v4866_v9 = vpop.xlane.xlu1 %4865 }
 0xba5   :  { %v4868_v1 = vmul.f32 0.03125, %v4866_v9 }
 0xba6   :  { %v4863_v4 = vpop.xlane.xlu0 %4862 }
 0xba7   :  { %v4870_v54 = vadd.f32 1e-05, %v4868_v1  ;;  %v4867_v46 = vmul.f32 0.03125, %v4863_v4 }
 0xba9   :  { %11804 = vrsqrt.f32 %v4870_v54  ;;  %v4869_v19 = vadd.f32 1e-05, %v4867_v46 }
 0xbab   :  { %11806 = vrsqrt.f32 %v4869_v19 }
 0xbb6   :  { %v11805_v35 = vpop.eup %11804 }
 0xbb7   :  { %v4874_v40 = vmul.f32 %v11805_v35, %v13434_v61 }
 0xbb8   :  { %v11807_v18 = vpop.eup %11806 }
 0xbb9   :  { %v4873_v3 = vmul.f32 %v11807_v18, %v13437_v60  ;;  %v4880_v21 = vmul.f32 %v4878_v15, %v4874_v40 }
 0xbbb   :  { %v4879_v0 = vmul.f32 %v4878_v15, %v4873_v3  ;;  %v4886_v12 = vadd.f32 %v4884_v42, %v4880_v21 }
 0xbbd   :  { %v4885_v44 = vadd.f32 %v4884_v42, %v4879_v0  ;;  %v4891_v11 = vsel %vm127_vm0, %v4886_v12, 0 }
 0xbbe   :  { %v4972_v9 = vand.u32 4294901760, %v4891_v11 }
 0xbbf   :  { %v4888_v1 = vsel %vm127_vm0, %v4885_v44, 0 }
 0xbc0   :  { %v4962_v4 = vand.u32 4294901760, %v4888_v1  ;;  %v4973_v54 = vsub.f32 %v4891_v11, %v4972_v9 }
 0xbc2   :  { %11073 = vmatprep.mubr.f32.mxu1 %v4962_v4  ;;  %v4963_v46 = vsub.f32 %v4888_v1, %v4962_v4  ;;  %v4974_v19 = vand.u32 4294901760, %v4973_v54 }
 0xbc3   :  { %11074 = vmatmul.mubr.f32.vlgmr.msra.gmra.mxu1 %v4972_v9 }
 0xbc4   :  { %11088 = vmatpush3.msra.mxu1 %v13452_v45  ;;  %v4964_v61 = vand.u32 4294901760, %v4963_v46  ;;  %v4975_v32 = vsub.f32 %v4973_v54, %v4974_v19 }
 0xbc5   :  { %11089 = vmatprep.subr.mxu1 %v13455_v56 }
 0xbc6   :  { %11090 = vmatpush3.msra.mxu1 %v13455_v56  ;;  %11095 = vmatprep.mubr.f32.mxu1 %v4964_v61  ;;  %v4965_v60 = vsub.f32 %v4963_v46, %v4964_v61  ;;  %v4976_v15 = vand.u32 4294901760, %v4975_v32 }
 0xbc7   :  { %11091 = vmatprep.subr.mxu1 %v13458_v17 }
 0xbc8   :  { %11092 = vmatpush3.msra.mxu1 %v13458_v17  ;;  %v4966_v6 = vand.u32 4294901760, %v4965_v60 }
 0xbc9   :  { %11093 = vmatprep.subr.mxu1 %v13463_v28 }
 0xbca   :  { %11094 = vmatpush3.msra.mxu1 %v13463_v28  ;;  %11062 = vmatprep.mubr.f32.mxu0 %v4966_v6 }
 0xbcb   :  { %11096 = vmatmul.mubr.f32.vlgmr.msra.gmra.mxu1 %v4974_v19  ;;  %11109 = vmatprep.subr.mxu1 %v13452_v45 }
 0xbcc   :  { %11063 = vmatmul.mubr.f32.vlgmr.msra.gmra.mxu0 %v4976_v15  ;;  %11110 = vmatpush3.msra.mxu1 %v13452_v45 }
 0xbcd   :  { %11077 = vmatpush3.msra.mxu0 %v13467_v41  ;;  %11117 = vmatprep.mubr.f32.mxu1 %v4962_v4 }
 0xbce   :  { %11078 = vmatprep.subr.mxu0 %v13471_v39  ;;  %11084 = vmatprep.mubr.f32.mxu0 %v4963_v46 }
 0xbcf   :  { %11111 = vmatprep.subr.mxu1 %v13455_v56  ;;  %11079 = vmatpush3.msra.mxu0 %v13471_v39 }
 0xbd0   :  { %11112 = vmatpush3.msra.mxu1 %v13455_v56  ;;  %11080 = vmatprep.subr.mxu0 %v13475_v5 }
 0xbd1   :  { %11113 = vmatprep.subr.mxu1 %v13458_v17  ;;  %11081 = vmatpush3.msra.mxu0 %v13475_v5 }
 0xbd2   :  { %11114 = vmatpush3.msra.mxu1 %v13458_v17  ;;  %11082 = vmatprep.subr.mxu0 %v13480_v8 }
 0xbd3   :  { %11115 = vmatprep.subr.mxu1 %v13463_v28  ;;  %11083 = vmatpush3.msra.mxu0 %v13480_v8 }
 0xbd4   :  { %11116 = vmatpush3.msra.mxu1 %v13463_v28  ;;  %11085 = vmatmul.mubr.f32.vlgmr.msra.gmra.mxu0 %v4973_v54 }
 0xbd5   :  { %11098 = vmatprep.subr.mxu0 %v13484_v50  ;;  %11118 = vmatmul.mubr.f32.vlgmr.msra.gmra.mxu1 %v4972_v9 }
 0xbd6   :  { %11099 = vmatpush3.msra.mxu0 %v13484_v50  ;;  %11106 = vmatprep.mubr.f32.mxu0 %v4962_v4 }
 0xbd7   :  { %11100 = vmatprep.subr.mxu0 %v13487_v33 }
 0xbd8   :  { %11101 = vmatpush3.msra.mxu0 %v13487_v33 }
 0xbd9   :  { %11102 = vmatprep.subr.mxu0 %v13490_v24 }
 0xbda   :  { %11103 = vmatpush3.msra.mxu0 %v13490_v24 }
 0xbdb   :  { %11104 = vmatprep.subr.mxu0 %v13494_v36 }
 0xbdc   :  { %11105 = vmatpush3.msra.mxu0 %v13494_v36 }
 0xbdd   :  { %11107 = vmatmul.mubr.f32.vlgmr.msra.gmra.mxu0 %v4972_v9 }
 0xc83   :  { %v11075_v56 = vpop.f32.mrf.mxu1 }
 0xc85   :  { %v5069_v41 = vpop.f32.mrf.mxu1 }
 0xc8b   :  { %v11097_v5 = vpop.f32.mrf.mxu1 }
 0xc8c   :  { %v11064_v45 = vpop.f32.mrf.mxu0 }
 0xc8d   :  { %v5076_v39 = vadd.f32 %v11075_v56, %v11064_v45  ;;  %v5239_v26 = vpop.f32.mrf.mxu1 }
 0xc8e   :  { %v4968_v17 = vpop.f32.mrf.mxu0 }
 0xc8f   :  { %v5070_v50 = vadd.f32 %v5069_v41, %v4968_v17 }
 0xc94   :  { %v11086_v28 = vpop.f32.mrf.mxu0 }
 0xc95   :  { %v5163_v35 = vadd.f32 %v11086_v28, %v5076_v39  ;;  %v11119_v40 = vpop.f32.mrf.mxu1 }
 0xc96   :  { %v5155_v8 = vpop.f32.mrf.mxu0 }
 0xc97   :  { %v5156_v33 = vadd.f32 %v5155_v8, %v5070_v50  ;;  %v5248_v42 = vadd.f32 %v11097_v5, %v5163_v35  ;;  %v5411_v12 = vpop.f32.mrf.mxu1 }
 0xc99   :  { %v5240_v3 = vadd.f32 %v5239_v26, %v5156_v33 }
 0xc9d   :  { %v11108_v24 = vpop.f32.mrf.mxu0 }
 0xc9e   :  { %v5337_v18 = vadd.f32 %v11108_v24, %v5248_v42 }
 0xc9f   :  { %v5330_v21 = vpop.f32.mrf.mxu0 }
 0xca0   :  { %v13552_v36 = vadd.f32 %v11119_v40, %v5337_v18  ;;  %v5331_v0 = vadd.f32 %v5330_v21, %v5240_v3 }
 0xca2   :  { %v5412_v44 = vadd.f32 %v5411_v12, %v5331_v0  ;;  %v13556_v11 = vmul.f32 %v13552_v36, %v12170_v38  ;;  %v13570_v54 = vmul.f32 %v13552_v36, %v12186_v48  ;;  %v13587_v48 = vmul.f32 %v13552_v36, %v12214_v59 }
 0xca4   :  { %5451 = vrot.lane.b32.xlu0 %v13556_v11, %s11945_s6  ;;  %v13561_v9 = vmul.f32 %v5412_v44, %v12166_v22  ;;  %v5454_v1 = vsel %vm127_vm0, %v5412_v44, 0  ;;  %v13580_v22 = vmul.f32 %v13552_v36, %v12168_v25  ;;  %v13595_v61 = vmul.f32 %v5412_v44, %v12174_v43 }
 0xca5   :  { %v13564_v4 = vand.u32 4294901760, %v5454_v1  ;;  %v13600_v60 = vmul.f32 %v5412_v44, %v12196_v51  ;;  %v13605_v59 = vmul.f32 %v5412_v44, %v12224_v62 }
 0xca6   :  { %5449 = vrot.lane.b32.xlu1 %v13561_v9, %s11945_s6 }
 0xca7   :  { %11155 = vmatprep.mubr.f32.mxu1 %v13564_v4  ;;  %v13574_v38 = vsub.f32 %v5454_v1, %v13564_v4 }
 0xca8   :  { %5443 = vrot.lane.b32.xlu0 %v13570_v54, %s11945_s6 }
 0xca9   :  { %v14659_v46 = vand.u32 4294901760, %v13574_v38 }
 0xcaa   :  { %5447 = vrot.lane.b32.xlu1 %v13580_v22, %s11945_s6 }
 0xcab   :  { %v5551_v19 = vsub.f32 %v13574_v38, %v14659_v46 }
 0xcac   :  { %5439 = vrot.lane.b32.xlu0 %v13587_v48, %s11945_s6 }
 0xcad   :  { %v5552_v25 = vand.u32 4294901760, %v5551_v19 }
 0xcae   :  { %5445 = vrot.lane.b32.xlu1 %v13595_v61, %s11945_s6 }
 0xcaf   :  { %11136 = vmatprep.mubr.f32.mxu0 %v5552_v25 }
 0xcb2   :  { %5441 = vrot.lane.b32.xlu1 %v13600_v60, %s11945_s6 }
 0xcb6   :  { %5437 = vrot.lane.b32.xlu1 %v13605_v59, %s11945_s6 }
 0xd16   :  { %v5452_v32 = vpop.permute.xlu0 %5451 }
 0xd17   :  { %v5473_v43 = vsel %vm127_vm0, %v5452_v32, 0 }
 0xd18   :  { %v13610_v6 = vand.u32 4294901760, %v5473_v43  ;;  %v5450_v15 = vpop.permute.xlu1 %5449 }
 0xd19   :  { %v5471_v45 = vsel %vm127_vm0, %v5450_v15, 0 }
 0xd1a   :  { %v13614_v51 = vsub.f32 %v5473_v43, %v13610_v6  ;;  %v13616_v56 = vand.u32 4294901760, %v5471_v45  ;;  %11120 = vmatprep.subr.mxu0 %v13610_v6  ;;  %v5444_v62 = vpop.permute.xlu0 %5443 }
 0xd1b   :  { %v5465_v17 = vsel %vm127_vm0, %v5444_v62, 0  ;;  %11121 = vmatpush3.xpose.msra.mxu0 %v13610_v6 }
 0xd1c   :  { %v13622_v28 = vsub.f32 %v5471_v45, %v13616_v56  ;;  %11122 = vmatprep.subr.mxu0 %v13616_v56  ;;  %v5448_v41 = vpop.permute.xlu1 %5447  ;;  %v13626_v39 = vand.u32 4294901760, %v13614_v51  ;;  %v13628_v5 = vand.u32 4294901760, %v5465_v17  ;;  %v5457_v45 = vsel %vm127_vm0, %v13552_v36, 0 }
 0xd1d   :  { %v5469_v8 = vsel %vm127_vm0, %v5448_v41, 0 }
 0xd1e   :  { %v13631_v50 = vand.u32 4294901760, %v5469_v8  ;;  %v5588_v35 = vsub.f32 %v13614_v51, %v13626_v39  ;;  %v13636_v33 = vand.u32 4294901760, %v13622_v28  ;;  %v5440_v26 = vpop.permute.xlu0 %5439  ;;  %v13646_v3 = vsub.f32 %v5465_v17, %v13628_v5 }
 0xd1f   :  { %11123 = vmatpush3.xpose.msra.mxu0 %v13616_v56  ;;  %v5461_v0 = vsel %vm127_vm0, %v5440_v26, 0 }
 0xd20   :  { %v13640_v42 = vsub.f32 %v5469_v8, %v13631_v50  ;;  %11124 = vmatprep.subr.mxu0 %v13631_v50  ;;  %v5446_v40 = vpop.permute.xlu1 %5445  ;;  %v5589_v24 = vand.u32 4294901760, %v5588_v35  ;;  %v5595_v18 = vsub.f32 %v13622_v28, %v13636_v33  ;;  %v13662_v43 = vand.u32 4294901760, %v5461_v0 }
 0xd21   :  { %v5467_v21 = vsel %vm127_vm0, %v5446_v40, 0  ;;  %v13673_v8 = vand.u32 4294901760, %v13646_v3  ;;  %v13682_v40 = vand.u32 4294901760, %v5457_v45 }
 0xd22   :  { %v13650_v12 = vand.u32 4294901760, %v5467_v21  ;;  %11139 = vmatprep.subr.mxu1 %v5589_v24  ;;  %v5596_v44 = vand.u32 4294901760, %v5595_v18  ;;  %v13653_v1 = vand.u32 4294901760, %v13640_v42 }
 0xd23   :  { %11125 = vmatpush3.xpose.msra.mxu0 %v13631_v50  ;;  %11140 = vmatpush3.xpose.msra.mxu1 %v5589_v24  ;;  %v13685_v24 = vsub.f32 %v5461_v0, %v13662_v43  ;;  %v13698_v0 = vsub.f32 %v5457_v45, %v13682_v40 }
 0xd24   :  { %v13657_v19 = vsub.f32 %v5467_v21, %v13650_v12  ;;  %11126 = vmatprep.subr.mxu0 %v13650_v12  ;;  %11141 = vmatprep.subr.mxu1 %v5596_v44  ;;  %v5442_v25 = vpop.permute.xlu1 %5441  ;;  %v5602_v32 = vsub.f32 %v13640_v42, %v13653_v1 }
 0xd25   :  { %v5463_v15 = vsel %vm127_vm0, %v5442_v25, 0  ;;  %v5616_v25 = vsub.f32 %v13646_v3, %v13673_v8  ;;  %v13704_v13 = vand.u32 4294901760, %v13685_v24 }
 0xd26   :  { %v13667_v62 = vand.u32 4294901760, %v5463_v15  ;;  %v5603_v17 = vand.u32 4294901760, %v5602_v32  ;;  %v13670_v41 = vand.u32 4294901760, %v13657_v19 }
 0xd27   :  { %11127 = vmatpush3.xpose.msra.mxu0 %v13650_v12  ;;  %11142 = vmatpush3.xpose.msra.mxu1 %v5596_v44  ;;  %v5630_v45 = vsub.f32 %v13685_v24, %v13704_v13 }
 0xd28   :  { %v13677_v35 = vsub.f32 %v5463_v15, %v13667_v62  ;;  %11128 = vmatprep.subr.mxu0 %v13628_v5  ;;  %11143 = vmatprep.subr.mxu1 %v5603_v17  ;;  %v5438_v26 = vpop.permute.xlu1 %5437  ;;  %v5609_v36 = vsub.f32 %v13657_v19, %v13670_v41 }
 0xd29   :  { %v5459_v18 = vsel %vm127_vm0, %v5438_v26, 0  ;;  %v5617_v26 = vand.u32 4294901760, %v5616_v25 }
 0xd2a   :  { %v13688_v21 = vand.u32 4294901760, %v5459_v18  ;;  %v5610_v44 = vand.u32 4294901760, %v5609_v36  ;;  %v13693_v32 = vand.u32 4294901760, %v13677_v35 }
 0xd2b   :  { %11129 = vmatpush3.xpose.msra.mxu0 %v13628_v5  ;;  %11144 = vmatpush3.xpose.msra.mxu1 %v5603_v17  ;;  %v5560_v17 = vand.u32 4294901760, %v13698_v0 }
 0xd2c   :  { %11130 = vmatprep.subr.mxu0 %v13667_v62  ;;  %11145 = vmatprep.subr.mxu1 %v5610_v44  ;;  %v5635_v15 = vsub.f32 %v5459_v18, %v13688_v21  ;;  %v5623_v36 = vsub.f32 %v13677_v35, %v13693_v32 }
 0xd2d   :  { %v5561_v25 = vsub.f32 %v13698_v0, %v5560_v17 }
 0xd2e   :  { %v5624_v46 = vand.u32 4294901760, %v5623_v36  ;;  %v13711_v18 = vand.u32 4294901760, %v5635_v15 }
 0xd2f   :  { %11131 = vmatpush3.xpose.msra.mxu0 %v13667_v62  ;;  %11146 = vmatpush3.xpose.msra.mxu1 %v5610_v44  ;;  %v5631_v44 = vand.u32 4294901760, %v5630_v45  ;;  %v5562_v36 = vand.u32 4294901760, %v5561_v25 }
 0xd30   :  { %11132 = vmatprep.subr.mxu0 %v13662_v43  ;;  %11147 = vmatprep.subr.mxu1 %v5617_v26  ;;  %v5637_v20 = vsub.f32 %v5635_v15, %v13711_v18 }
 0xd32   :  { %v5638_v34 = vand.u32 4294901760, %v5637_v20  ;;  %v14720_v20 = vand.u32 4294901760, %v13574_v38 }
 0xd33   :  { %11133 = vmatpush3.xpose.msra.mxu0 %v13662_v43  ;;  %11148 = vmatpush3.xpose.msra.mxu1 %v5617_v26 }
 0xd34   :  { %11134 = vmatprep.subr.mxu0 %v13688_v21  ;;  %11149 = vmatprep.subr.mxu1 %v5624_v46 }
 0xd37   :  { %11135 = vmatpush3.xpose.msra.mxu0 %v13688_v21  ;;  %11150 = vmatpush3.xpose.msra.mxu1 %v5624_v46  ;;  %v14725_v46 = vld [vmem:[#allocation30_spill] sm:$0xff] }
 0xd38   :  { %11151 = vmatprep.subr.mxu1 %v5631_v44  ;;  %11158 = vmatprep.subr.mxu0 %v13614_v51 }
 0xd3a   :  { %11137 = vmatmul.mubr.f32.vlgmr.msra.gmra.mxu0 %v5562_v36 }
 0xd3b   :  { %11152 = vmatpush3.xpose.msra.mxu1 %v5631_v44  ;;  %11159 = vmatpush3.xpose.msra.mxu0 %v13614_v51  ;;  %v14728_v51 = vld [vmem:[#allocation15_spill] sm:$0xff] }
 0xd3c   :  { %11174 = vmatprep.mubr.f32.mxu0 %v13574_v38  ;;  %11153 = vmatprep.subr.mxu1 %v5638_v34  ;;  %v14724_v38 = vld [vmem:[#allocation28_spill] sm:$0xff] }
 0xd3d   :  { %11160 = vmatprep.subr.mxu0 %v13622_v28 }
 0xd3f   :  { %11154 = vmatpush3.xpose.msra.mxu1 %v5638_v34  ;;  %11161 = vmatpush3.xpose.msra.mxu0 %v13622_v28  ;;  %v14722_v34 = vld [vmem:[#allocation24_spill] sm:$0xff]  ;;  %v14730_v28 = vld [vmem:[#allocation39_spill] sm:$0xff] }
 0xd40   :  { %11162 = vmatprep.subr.mxu0 %v13640_v42  ;;  %11177 = vmatprep.subr.mxu1 %v13610_v6 }
 0xd42   :  { %11156 = vmatmul.mubr.f32.vlgmr.msra.gmra.mxu1 %v13682_v40 }
 0xd43   :  { %11163 = vmatpush3.xpose.msra.mxu0 %v13640_v42  ;;  %11178 = vmatpush3.xpose.msra.mxu1 %v13610_v6 }
 0xd44   :  { %11193 = vmatprep.mubr.f32.mxu1 %v14720_v20  ;;  %11164 = vmatprep.subr.mxu0 %v13657_v19 }
 0xd45   :  { %11179 = vmatprep.subr.mxu1 %v13616_v56 }
 0xd47   :  { %11165 = vmatpush3.xpose.msra.mxu0 %v13657_v19  ;;  %11180 = vmatpush3.xpose.msra.mxu1 %v13616_v56 }
 0xd48   :  { %11166 = vmatprep.subr.mxu0 %v13646_v3  ;;  %11181 = vmatprep.subr.mxu1 %v13631_v50 }
 0xd4b   :  { %11167 = vmatpush3.xpose.msra.mxu0 %v13646_v3  ;;  %11182 = vmatpush3.xpose.msra.mxu1 %v13631_v50 }
 0xd4c   :  { %11168 = vmatprep.subr.mxu0 %v13677_v35  ;;  %11183 = vmatprep.subr.mxu1 %v13650_v12 }
 0xd4f   :  { %11169 = vmatpush3.xpose.msra.mxu0 %v13677_v35  ;;  %11184 = vmatpush3.xpose.msra.mxu1 %v13650_v12 }
 0xd50   :  { %11170 = vmatprep.subr.mxu0 %v13685_v24  ;;  %11185 = vmatprep.subr.mxu1 %v13628_v5 }
 0xd53   :  { %11171 = vmatpush3.xpose.msra.mxu0 %v13685_v24  ;;  %11186 = vmatpush3.xpose.msra.mxu1 %v13628_v5 }
 0xd54   :  { %11172 = vmatprep.subr.mxu0 %v5635_v15  ;;  %11187 = vmatprep.subr.mxu1 %v13667_v62 }
 0xd57   :  { %11173 = vmatpush3.xpose.msra.mxu0 %v5635_v15  ;;  %11188 = vmatpush3.xpose.msra.mxu1 %v13667_v62 }
 0xd58   :  { %11189 = vmatprep.subr.mxu1 %v13662_v43  ;;  %11196 = vmatprep.subr.mxu0 %v13626_v39 }
 0xd5a   :  { %11175 = vmatmul.mubr.f32.vlgmr.msra.gmra.mxu0 %v13698_v0 }
 0xd5b   :  { %11190 = vmatpush3.xpose.msra.mxu1 %v13662_v43  ;;  %11197 = vmatpush3.xpose.msra.mxu0 %v13626_v39  ;;  %v14731_v39 = vld [vmem:[#allocation40_spill] sm:$0xff] }
 0xd5c   :  { %11212 = vmatprep.mubr.f32.mxu0 %v13564_v4  ;;  %11191 = vmatprep.subr.mxu1 %v13688_v21 }
 0xd5d   :  { %11198 = vmatprep.subr.mxu0 %v13636_v33 }
 0xd5f   :  { %11192 = vmatpush3.xpose.msra.mxu1 %v13688_v21  ;;  %11199 = vmatpush3.xpose.msra.mxu0 %v13636_v33 }
 0xd60   :  { %11200 = vmatprep.subr.mxu0 %v13653_v1  ;;  %11215 = vmatprep.subr.mxu1 %v13610_v6 }
 0xd62   :  { %11194 = vmatmul.mubr.f32.vlgmr.msra.gmra.mxu1 %v5560_v17 }
 0xd63   :  { %11201 = vmatpush3.xpose.msra.mxu0 %v13653_v1  ;;  %11216 = vmatpush3.xpose.msra.mxu1 %v13610_v6  ;;  %v14727_v6 = vld [vmem:[#allocation36_spill] sm:$0xff] }
 0xd64   :  { %11231 = vmatprep.mubr.f32.mxu1 %v13564_v4  ;;  %11202 = vmatprep.subr.mxu0 %v13670_v41  ;;  %v14723_v4 = vld [vmem:[#allocation26_spill] sm:$0xff] }
 0xd65   :  { %11217 = vmatprep.subr.mxu1 %v13616_v56 }
 0xd67   :  { %11203 = vmatpush3.xpose.msra.mxu0 %v13670_v41  ;;  %11218 = vmatpush3.xpose.msra.mxu1 %v13616_v56  ;;  %v14729_v56 = vld [vmem:[#allocation37_spill] sm:$0xff] }
 0xd68   :  { %11204 = vmatprep.subr.mxu0 %v13673_v8  ;;  %11219 = vmatprep.subr.mxu1 %v13631_v50 }
 0xd6b   :  { %11205 = vmatpush3.xpose.msra.mxu0 %v13673_v8  ;;  %11220 = vmatpush3.xpose.msra.mxu1 %v13631_v50 }
 0xd6c   :  { %11206 = vmatprep.subr.mxu0 %v13693_v32  ;;  %11221 = vmatprep.subr.mxu1 %v13650_v12 }
 0xd6f   :  { %11207 = vmatpush3.xpose.msra.mxu0 %v13693_v32  ;;  %11222 = vmatpush3.xpose.msra.mxu1 %v13650_v12  ;;  %v11823_v12 = vld [vmem:[#allocation8 + $0x8] sm:$0xff] }
 0xd70   :  { %11208 = vmatprep.subr.mxu0 %v13704_v13  ;;  %11223 = vmatprep.subr.mxu1 %v13628_v5 }
 0xd73   :  { %11209 = vmatpush3.xpose.msra.mxu0 %v13704_v13  ;;  %11224 = vmatpush3.xpose.msra.mxu1 %v13628_v5  ;;  %v14721_v13 = vld [vmem:[#allocation22_spill] sm:$0xff] }
 0xd74   :  { %11210 = vmatprep.subr.mxu0 %v13711_v18  ;;  %11225 = vmatprep.subr.mxu1 %v13667_v62 }
 0xd77   :  { %11211 = vmatpush3.xpose.msra.mxu0 %v13711_v18  ;;  %11226 = vmatpush3.xpose.msra.mxu1 %v13667_v62  ;;  %v11824_v62 = vld [vmem:[#allocation8] sm:$0xff] }
 0xd78   :  { %11227 = vmatprep.subr.mxu1 %v13662_v43  ;;  %11234 = vmatprep.subr.mxu0 %v12424_v30 }
 0xd7a   :  { %11213 = vmatmul.mubr.f32.vlgmr.msra.gmra.mxu0 %v13682_v40 }
 0xd7b   :  { %11228 = vmatpush3.xpose.msra.mxu1 %v13662_v43  ;;  %11235 = vmatpush3.msra.mxu0 %v12424_v30 }
 0xd7c   :  { %11229 = vmatprep.subr.mxu1 %v13688_v21  ;;  %11236 = vmatprep.subr.mxu0 %v12432_v37 }
 0xd7d   :  { %11237 = vmatpush3.msra.mxu0 %v12432_v37 }
 0xd7e   :  { %11238 = vmatprep.subr.mxu0 %v12445_v47 }
 0xd7f   :  { %11230 = vmatpush3.xpose.msra.mxu1 %v13688_v21  ;;  %11239 = vmatpush3.msra.mxu0 %v12445_v47 }
 0xd80   :  { %11253 = vmatprep.subr.mxu1 %v12469_v57  ;;  %11240 = vmatprep.subr.mxu0 %v12460_v49 }
 0xd81   :  { %11241 = vmatpush3.msra.mxu0 %v12460_v49 }
 0xd82   :  { %11232 = vmatmul.mubr.f32.vlgmr.msra.gmra.mxu1 %v13682_v40  ;;  %11242 = vmatprep.subr.mxu0 %v12480_v10 }
 0xd83   :  { %11254 = vmatpush3.msra.mxu1 %v12469_v57  ;;  %11243 = vmatpush3.msra.mxu0 %v12480_v10  ;;  %v14726_v57 = vld [vmem:[#allocation33_spill] sm:$0xff] }
 0xd84   :  { %11255 = vmatprep.subr.mxu1 %v14721_v13  ;;  %11244 = vmatprep.subr.mxu0 %v14722_v34 }
 0xd85   :  { %11256 = vmatpush3.msra.mxu1 %v14721_v13  ;;  %11245 = vmatpush3.msra.mxu0 %v14722_v34 }
 0xd86   :  { %11257 = vmatprep.subr.mxu1 %v14723_v4  ;;  %11246 = vmatprep.subr.mxu0 %v14724_v38 }
 0xd87   :  { %11258 = vmatpush3.msra.mxu1 %v14723_v4  ;;  %11247 = vmatpush3.msra.mxu0 %v14724_v38 }
 0xd88   :  { %11259 = vmatprep.subr.mxu1 %v14725_v46  ;;  %11248 = vmatprep.subr.mxu0 %v14726_v57 }
 0xd89   :  { %11260 = vmatpush3.msra.mxu1 %v14725_v46  ;;  %11249 = vmatpush3.msra.mxu0 %v14726_v57 }
 0xd8a   :  { %11261 = vmatprep.subr.mxu1 %v14727_v6  ;;  %11272 = vmatprep.subr.mxu0 %v14728_v51 }
 0xd8b   :  { %11262 = vmatpush3.msra.mxu1 %v14727_v6 }
 0xd8c   :  { %11263 = vmatprep.subr.mxu1 %v14729_v56 }
 0xd8d   :  { %11264 = vmatpush3.msra.mxu1 %v14729_v56 }
 0xd8e   :  { %11265 = vmatprep.subr.mxu1 %v14730_v28 }
 0xd8f   :  { %11266 = vmatpush3.msra.mxu1 %v14730_v28 }
 0xd90   :  { %11267 = vmatprep.subr.mxu1 %v14731_v39 }
 0xd91   :  { %11268 = vmatpush3.msra.mxu1 %v14731_v39 }
 0xd92   :  { %11291 = vmatprep.subr.mxu1 %v12424_v30 }
 0xdfa   :  { %v11138_v5 = vpop.f32.mrf.mxu0 }
 0xdfb   :  { %v5565_v1 = vadd.f32 %v11823_v12, %v11138_v5  ;;  %v14733_v12 = vld [vmem:[#allocation19_spill] sm:$0xff] }
 0xdfc   :  { %v5554_v50 = vpop.f32.mrf.mxu0 }
 0xdfd   :  { %v5555_v41 = vadd.f32 %v11824_v62, %v5554_v50 }
 0xe02   :  { %v11157_v33 = vpop.f32.mrf.mxu1 }
 0xe03   :  { %v5682_v8 = vadd.f32 %v11157_v33, %v5565_v1 }
 0xe04   :  { %v5675_v3 = vpop.f32.mrf.mxu1 }
 0xe05   :  { %v5676_v40 = vadd.f32 %v5675_v3, %v5555_v41 }
 0xe1a   :  { %v11176_v42 = vpop.f32.mrf.mxu0 }
 0xe1b   :  { %v5777_v24 = vadd.f32 %v11176_v42, %v5682_v8  ;;  %v14732_v42 = vld [vmem:[#allocation17_spill] sm:$0xff]  ;;  %v14736_v8 = vld [vmem:[#allocation27_spill] sm:$0xff] }
 0xe1c   :  { %v5769_v19 = vpop.f32.mrf.mxu0 }
 0xe1d   :  { %v5770_v32 = vadd.f32 %v5769_v19, %v5676_v40  ;;  %v14735_v19 = vld [vmem:[#allocation25_spill] sm:$0xff] }
 0xe22   :  { %v11195_v43 = vpop.f32.mrf.mxu1 }
 0xe23   :  { %v5866_v0 = vadd.f32 %v11195_v43, %v5777_v24 }
 0xe24   :  { %v5857_v21 = vpop.f32.mrf.mxu1 }
 0xe25   :  { %v5858_v26 = vadd.f32 %v5857_v21, %v5770_v32  ;;  %v14737_v21 = vld [vmem:[#allocation32_spill] sm:$0xff] }
 0xe3a   :  { %v11214_v35 = vpop.f32.mrf.mxu0 }
 0xe3b   :  { %v5967_v17 = vadd.f32 %v11214_v35, %v5866_v0 }
 0xe3c   :  { %v5960_v15 = vpop.f32.mrf.mxu0 }
 0xe3d   :  { %v5961_v18 = vadd.f32 %v5960_v15, %v5858_v26  ;;  %v14738_v15 = vld [vmem:[#allocation35_spill] sm:$0xff] }
 0xe42   :  { %v11233_v45 = vpop.f32.mrf.mxu1 }
 0xe43   :  { %v6052_v25 = vadd.f32 %v11233_v45, %v5967_v17  ;;  %v14739_v45 = vld [vmem:[#allocation16_spill] sm:$0xff] }
 0xe44   :  { %v6045_v44 = vpop.f32.mrf.mxu1 }
 0xe45   :  { %v6046_v36 = vadd.f32 %v6045_v44, %v5961_v18  ;;  %v6058_v20 = vsel %vm1367_vm1, %v6052_v25, -inf  ;;  %v14740_v44 = vld [vmem:[#allocation18_spill] sm:$0xff] }
 0xe46   :  { %6059 = vmax.xlane.f32.xlu1 %v6058_v20 }
 0xe47   :  { %v6055_v13 = vsel %vm1367_vm1, %v6046_v36, -inf }
 0xe48   :  { %6056 = vmax.xlane.f32.xlu0 %v6055_v13 }
 0xe57   :  { %6669 = vrot.lane.b32.xlu1 %v13561_v9, %s11946_s11 }
 0xe5b   :  { %6665 = vrot.lane.b32.xlu1 %v13595_v61, %s11946_s11 }
 0xe5e   :  { %6671 = vrot.lane.b32.xlu0 %v13556_v11, %s11946_s11 }
 0xe5f   :  { %6661 = vrot.lane.b32.xlu1 %v13600_v60, %s11946_s11 }
 0xe62   :  { %6667 = vrot.lane.b32.xlu0 %v13580_v22, %s11946_s11 }
 0xe63   :  { %6657 = vrot.lane.b32.xlu1 %v13605_v59, %s11946_s11 }
 0xe66   :  { %6663 = vrot.lane.b32.xlu0 %v13570_v54, %s11946_s11 }
 0xe67   :  { %7279 = vrot.lane.b32.xlu1 %v13447_v2, %s11944_s9 }
 0xe6a   :  { %6659 = vrot.lane.b32.xlu0 %v13587_v48, %s11946_s11 }
 0xe6b   :  { %7275 = vrot.lane.b32.xlu1 %v13460_v7, %s11944_s9 }
 0xe6e   :  { %7281 = vrot.lane.b32.xlu0 %v13445_v29, %s11944_s9 }
 0xe72   :  { %7277 = vrot.lane.b32.xlu0 %v13449_v55, %s11944_s9 }
 0xecf   :  { %v6060_v11 = vpop.xlane.xlu1 %6059 }
 0xed0   :  { %v6062_v9 = vsub.f32 %v6052_v25, %v6060_v11 }
 0xed1   :  { %v6057_v22 = vpop.xlane.xlu0 %6056 }
 0xed2   :  { %v6065_v61 = vmul.f32 1.442695, %v6062_v9  ;;  %v6061_v54 = vsub.f32 %v6046_v36, %v6057_v22 }
 0xed3   :  { %v6670_v3 = vpop.permute.xlu1 %6669 }
 0xed4   :  { %11808 = vpow2.f32 %v6065_v61  ;;  %v6063_v60 = vmul.f32 1.442695, %v6061_v54  ;;  %v13897_v41 = vand.u32 4294901760, %v6670_v3 }
 0xed5   :  { %v6672_v33 = vpop.permute.xlu0 %6671 }
 0xed6   :  { %11810 = vpow2.f32 %v6063_v60  ;;  %v13892_v43 = vand.u32 4294901760, %v6672_v33 }
 0xed7   :  { %v6666_v62 = vpop.permute.xlu1 %6665 }
 0xed8   :  { %v13904_v35 = vsub.f32 %v6672_v33, %v13892_v43  ;;  %v13915_v32 = vand.u32 4294901760, %v6666_v62  ;;  %v14745_v33 = vld [vmem:[#allocation34_spill] sm:$0xff] }
 0xed9   :  { %v6668_v1 = vpop.permute.xlu0 %6667 }
 0xeda   :  { %v13906_v40 = vand.u32 4294901760, %v6668_v1  ;;  %v13927_v26 = vand.u32 4294901760, %v13904_v35 }
 0xedb   :  { %v6662_v0 = vpop.permute.xlu1 %6661 }
 0xedc   :  { %v13941_v25 = vand.u32 4294901760, %v6662_v0  ;;  %v6800_v20 = vsub.f32 %v13904_v35, %v13927_v26 }
 0xedd   :  { %v6664_v24 = vpop.permute.xlu0 %6663 }
 0xede   :  { %v13929_v17 = vand.u32 4294901760, %v6664_v24  ;;  %v13967_v54 = vsub.f32 %v6662_v0, %v13941_v25 }
 0xedf   :  { %v6658_v36 = vpop.permute.xlu1 %6657 }
 0xee0   :  { %v13953_v11 = vsub.f32 %v6664_v24, %v13929_v17  ;;  %v13969_v60 = vand.u32 4294901760, %v6658_v36 }
 0xee1   :  { %v13849_v2 = vpop.eup %11808  ;;  %v6660_v18 = vpop.permute.xlu0 %6659 }
 0xee2   :  { %v6071_v48 = vsel %vm1367_vm1, %v13849_v2, 0  ;;  %v13955_v9 = vand.u32 4294901760, %v6660_v18 }
 0xee3   :  { %v13853_v7 = vpop.eup %11810  ;;  %v13855_v59 = vand.u32 4294901760, %v6071_v48 }
 0xee4   :  { %v6068_v29 = vsel %vm1367_vm1, %v13853_v7, 0 }
 0xee5   :  { %v13859_v55 = vand.u32 4294901760, %v6068_v29  ;;  %v13862_v4 = vsub.f32 %v6071_v48, %v13855_v59  ;;  %v6801_v48 = vand.u32 4294901760, %v6800_v20 }
 0xee7   :  { %11269 = vmatprep.mubr.f32.mxu1 %v13859_v55  ;;  %v6147_v46 = vsub.f32 %v6068_v29, %v13859_v55  ;;  %v6158_v6 = vand.u32 4294901760, %v13862_v4 }
 0xee8   :  { %11270 = vmatmul.mubr.f32.vlgmr.msra.gmra.mxu1 %v13855_v59 }
 0xee9   :  { %11292 = vmatpush3.msra.mxu1 %v12424_v30  ;;  %v6148_v56 = vand.u32 4294901760, %v6147_v46  ;;  %v6159_v28 = vsub.f32 %v13862_v4, %v6158_v6 }
 0xeea   :  { %11293 = vmatprep.subr.mxu1 %v12432_v37 }
 0xeeb   :  { %11294 = vmatpush3.msra.mxu1 %v12432_v37  ;;  %11307 = vmatprep.mubr.f32.mxu1 %v6148_v56  ;;  %v6149_v39 = vsub.f32 %v6147_v46, %v6148_v56  ;;  %v6160_v50 = vand.u32 4294901760, %v6159_v28  ;;  %v13989_v56 = vsub.f32 %v6658_v36, %v13969_v60  ;;  %v14744_v28 = vld [vmem:[#allocation31_spill] sm:$0xff] }
 0xeec   :  { %11295 = vmatprep.subr.mxu1 %v12445_v47 }
 0xeed   :  { %11296 = vmatpush3.msra.mxu1 %v12445_v47  ;;  %v6150_v5 = vand.u32 4294901760, %v6149_v39 }
 0xeee   :  { %11297 = vmatprep.subr.mxu1 %v12460_v49 }
 0xeef   :  { %11298 = vmatpush3.msra.mxu1 %v12460_v49  ;;  %11250 = vmatprep.mubr.f32.mxu0 %v6150_v5 }
 0xef0   :  { %11299 = vmatprep.subr.mxu1 %v12480_v10  ;;  %11251 = vmatmul.mubr.f32.vlgmr.msra.gmra.mxu0 %v6160_v50 }
 0xef1   :  { %11273 = vmatpush3.msra.mxu0 %v14728_v51  ;;  %11300 = vmatpush3.msra.mxu1 %v12480_v10  ;;  %v14734_v51 = vld [vmem:[#allocation21_spill] sm:$0xff] }
 0xef2   :  { %11274 = vmatprep.subr.mxu0 %v14732_v42  ;;  %11288 = vmatprep.mubr.f32.mxu0 %v6147_v46  ;;  %v13983_v46 = vand.u32 4294901760, %v13953_v11 }
 0xef3   :  { %11301 = vmatprep.subr.mxu1 %v14722_v34  ;;  %11275 = vmatpush3.msra.mxu0 %v14732_v42 }
 0xef4   :  { %11302 = vmatpush3.msra.mxu1 %v14722_v34  ;;  %11276 = vmatprep.subr.mxu0 %v14733_v12  ;;  %v6828_v5 = vsub.f32 %v13953_v11, %v13983_v46 }
 0xef5   :  { %11303 = vmatprep.subr.mxu1 %v14724_v38  ;;  %11277 = vmatpush3.msra.mxu0 %v14733_v12  ;;  %v14007_v12 = vand.u32 4294901760, %v13989_v56 }
 0xef6   :  { %11304 = vmatpush3.msra.mxu1 %v14724_v38  ;;  %11278 = vmatprep.subr.mxu0 %v14734_v51 }
 0xef7   :  { %11305 = vmatprep.subr.mxu1 %v14726_v57  ;;  %11279 = vmatpush3.msra.mxu0 %v14734_v51  ;;  %v14746_v51 = vld [vmem:[#allocation38_spill] sm:$0xff] }
 0xef8   :  { %11306 = vmatpush3.msra.mxu1 %v14726_v57  ;;  %11280 = vmatprep.subr.mxu0 %v14735_v19 }
 0xef9   :  { %11308 = vmatmul.mubr.f32.vlgmr.msra.gmra.mxu1 %v6158_v6  ;;  %11329 = vmatprep.subr.mxu1 %v12424_v30 }
 0xefa   :  { %11281 = vmatpush3.msra.mxu0 %v14735_v19  ;;  %11330 = vmatpush3.msra.mxu1 %v12424_v30  ;;  %v13913_v30 = vsub.f32 %v6670_v3, %v13897_v41 }
 0xefb   :  { %11345 = vmatprep.mubr.f32.mxu1 %v13859_v55  ;;  %11282 = vmatprep.subr.mxu0 %v14736_v8 }
 0xefc   :  { %11331 = vmatprep.subr.mxu1 %v12432_v37  ;;  %11283 = vmatpush3.msra.mxu0 %v14736_v8  ;;  %v6849_v8 = vsub.f32 %v13989_v56, %v14007_v12 }
 0xefd   :  { %11332 = vmatpush3.msra.mxu1 %v12432_v37  ;;  %11284 = vmatprep.subr.mxu0 %v14737_v21  ;;  %v13922_v37 = vsub.f32 %v6668_v1, %v13906_v40  ;;  %v6829_v1 = vand.u32 4294901760, %v6828_v5 }
 0xefe   :  { %11333 = vmatprep.subr.mxu1 %v12445_v47  ;;  %11285 = vmatpush3.msra.mxu0 %v14737_v21 }
 0xeff   :  { %11334 = vmatpush3.msra.mxu1 %v12445_v47  ;;  %11286 = vmatprep.subr.mxu0 %v14738_v15  ;;  %v13934_v47 = vsub.f32 %v6666_v62, %v13915_v32  ;;  %v13950_v13 = vand.u32 4294901760, %v13922_v37 }
 0xf00   :  { %11335 = vmatprep.subr.mxu1 %v12460_v49  ;;  %11287 = vmatpush3.msra.mxu0 %v14738_v15 }
 0xf01   :  { %11336 = vmatpush3.msra.mxu1 %v12460_v49  ;;  %11289 = vmatmul.mubr.f32.vlgmr.msra.gmra.mxu0 %v13862_v4  ;;  %v13939_v49 = vand.u32 4294901760, %v13913_v30  ;;  %v13964_v61 = vand.u32 4294901760, %v13934_v47  ;;  %v6814_v29 = vsub.f32 %v13922_v37, %v13950_v13  ;;  %v14743_v4 = vld [vmem:[#allocation29_spill] sm:$0xff] }
 0xf02   :  { %11310 = vmatprep.subr.mxu0 %v14739_v45  ;;  %11337 = vmatprep.subr.mxu1 %v12480_v10 }
 0xf03   :  { %11311 = vmatpush3.msra.mxu0 %v14739_v45  ;;  %11326 = vmatprep.mubr.f32.mxu0 %v13859_v55  ;;  %v6807_v22 = vsub.f32 %v13913_v30, %v13939_v49  ;;  %v13978_v55 = vsub.f32 %v6660_v18, %v13955_v9  ;;  %v6821_v6 = vsub.f32 %v13934_v47, %v13964_v61  ;;  %v6815_v39 = vand.u32 4294901760, %v6814_v29 }
 0xf04   :  { %11338 = vmatpush3.msra.mxu1 %v12480_v10  ;;  %11312 = vmatprep.subr.mxu0 %v14740_v44  ;;  %v14741_v10 = vld [vmem:[#allocation20_spill] sm:$0xff] }
 0xf05   :  { %11339 = vmatprep.subr.mxu1 %v14722_v34  ;;  %11313 = vmatpush3.msra.mxu0 %v14740_v44  ;;  %v14000_v50 = vand.u32 4294901760, %v13978_v55  ;;  %v6822_v42 = vand.u32 4294901760, %v6821_v6 }
 0xf06   :  { %11340 = vmatpush3.msra.mxu1 %v14722_v34  ;;  %11314 = vmatprep.subr.mxu0 %v14741_v10  ;;  %v14742_v34 = vld [vmem:[#allocation23_spill] sm:$0xff] }
 0xf07   :  { %11341 = vmatprep.subr.mxu1 %v14724_v38  ;;  %11315 = vmatpush3.msra.mxu0 %v14741_v10  ;;  %v6842_v19 = vsub.f32 %v13978_v55, %v14000_v50 }
 0xf08   :  { %11342 = vmatpush3.msra.mxu1 %v14724_v38  ;;  %11316 = vmatprep.subr.mxu0 %v14742_v34  ;;  %v6808_v38 = vand.u32 4294901760, %v6807_v22 }
 0xf09   :  { %11343 = vmatprep.subr.mxu1 %v14726_v57  ;;  %11317 = vmatpush3.msra.mxu0 %v14742_v34  ;;  %v6843_v24 = vand.u32 4294901760, %v6842_v19 }
 0xf0a   :  { %11344 = vmatpush3.msra.mxu1 %v14726_v57  ;;  %11318 = vmatprep.subr.mxu0 %v14743_v4  ;;  %v13993_v57 = vand.u32 4294901760, %v13967_v54 }
 0xf0b   :  { %11346 = vmatmul.mubr.f32.vlgmr.msra.gmra.mxu1 %v13855_v59  ;;  %11367 = vmatprep.subr.mxu1 %v6801_v48 }
 0xf0c   :  { %11319 = vmatpush3.msra.mxu0 %v14743_v4  ;;  %11368 = vmatpush3.msra.mxu1 %v6801_v48  ;;  %v6835_v3 = vsub.f32 %v13967_v54, %v13993_v57 }
 0xf0d   :  { %11320 = vmatprep.subr.mxu0 %v14744_v28  ;;  %11369 = vmatprep.subr.mxu1 %v6808_v38 }
 0xf0e   :  { %11321 = vmatpush3.msra.mxu0 %v14744_v28  ;;  %11370 = vmatpush3.msra.mxu1 %v6808_v38  ;;  %v6836_v62 = vand.u32 4294901760, %v6835_v3 }
 0xf0f   :  { %11322 = vmatprep.subr.mxu0 %v14745_v33  ;;  %11371 = vmatprep.subr.mxu1 %v6815_v39 }
 0xf10   :  { %11323 = vmatpush3.msra.mxu0 %v14745_v33  ;;  %11372 = vmatpush3.msra.mxu1 %v6815_v39 }
 0xf11   :  { %11324 = vmatprep.subr.mxu0 %v14746_v51  ;;  %11373 = vmatprep.subr.mxu1 %v6822_v42 }
 0xf12   :  { %11325 = vmatpush3.msra.mxu0 %v14746_v51  ;;  %11374 = vmatpush3.msra.mxu1 %v6822_v42 }
 0xf13   :  { %11327 = vmatmul.mubr.f32.vlgmr.msra.gmra.mxu0 %v13855_v59  ;;  %11348 = vmatprep.subr.mxu0 %v13892_v43  ;;  %v6850_v59 = vand.u32 4294901760, %v6849_v8 }
 0xf14   :  { %11375 = vmatprep.subr.mxu1 %v6829_v1  ;;  %11349 = vmatpush3.msra.mxu0 %v13892_v43 }
 0xf15   :  { %11376 = vmatpush3.msra.mxu1 %v6829_v1  ;;  %11350 = vmatprep.subr.mxu0 %v13897_v41 }
 0xf16   :  { %11377 = vmatprep.subr.mxu1 %v6836_v62  ;;  %11351 = vmatpush3.msra.mxu0 %v13897_v41 }
 0xf17   :  { %11378 = vmatpush3.msra.mxu1 %v6836_v62  ;;  %11352 = vmatprep.subr.mxu0 %v13906_v40 }
 0xf18   :  { %11379 = vmatprep.subr.mxu1 %v6843_v24  ;;  %11353 = vmatpush3.msra.mxu0 %v13906_v40 }
 0xf19   :  { %11380 = vmatpush3.msra.mxu1 %v6843_v24  ;;  %11354 = vmatprep.subr.mxu0 %v13915_v32 }
 0xf1a   :  { %11381 = vmatprep.subr.mxu1 %v6850_v59  ;;  %11355 = vmatpush3.msra.mxu0 %v13915_v32 }
 0xf1b   :  { %11382 = vmatpush3.msra.mxu1 %v6850_v59  ;;  %11356 = vmatprep.subr.mxu0 %v13929_v17 }
 0xf1c   :  { %11405 = vmatprep.subr.mxu1 %v13892_v43  ;;  %11357 = vmatpush3.msra.mxu0 %v13929_v17 }
 0xf1d   :  { %11358 = vmatprep.subr.mxu0 %v13941_v25 }
 0xf1e   :  { %11359 = vmatpush3.msra.mxu0 %v13941_v25 }
 0xf1f   :  { %11360 = vmatprep.subr.mxu0 %v13955_v9 }
 0xf20   :  { %11361 = vmatpush3.msra.mxu0 %v13955_v9 }
 0xf21   :  { %11362 = vmatprep.subr.mxu0 %v13969_v60 }
 0xf22   :  { %11363 = vmatpush3.msra.mxu0 %v13969_v60 }
 0xf23   :  { %11386 = vmatprep.subr.mxu0 %v13904_v35 }
 0xfa8   :  { %v11271_v0 = vpop.f32.mrf.mxu1 }
 0xfaa   :  { %v6273_v18 = vpop.f32.mrf.mxu1 }
 0xfb0   :  { %v11252_v21 = vpop.f32.mrf.mxu0 }
 0xfb1   :  { %v6280_v44 = vadd.f32 %v11271_v0, %v11252_v21 }
 0xfb2   :  { %v6152_v15 = vpop.f32.mrf.mxu0 }
 0xfb3   :  { %v6274_v10 = vadd.f32 %v6273_v18, %v6152_v15 }
 0xfb9   :  { %v11309_v36 = vpop.f32.mrf.mxu1 }
 0xfbb   :  { %v6455_v48 = vpop.f32.mrf.mxu1 }
 0xfc1   :  { %v11290_v45 = vpop.f32.mrf.mxu0 }
 0xfc2   :  { %v6375_v22 = vadd.f32 %v11290_v45, %v6280_v44 }
 0xfc3   :  { %v6367_v20 = vpop.f32.mrf.mxu0 }
 0xfc4   :  { %v6368_v34 = vadd.f32 %v6367_v20, %v6274_v10  ;;  %v6464_v29 = vadd.f32 %v11309_v36, %v6375_v22 }
 0xfc6   :  { %v6456_v28 = vadd.f32 %v6455_v48, %v6368_v34 }
 0xfcb   :  { %v11347_v4 = vpop.f32.mrf.mxu1 }
 0xfcd   :  { %v6643_v42 = vpop.f32.mrf.mxu1 }
 0xfd3   :  { %v11328_v38 = vpop.f32.mrf.mxu0 }
 0xfd4   :  { %v6565_v6 = vadd.f32 %v11328_v38, %v6464_v29 }
 0xfd5   :  { %v6558_v39 = vpop.f32.mrf.mxu0 }
 0xfd6   :  { %v6650_v5 = vadd.f32 %v11347_v4, %v6565_v6  ;;  %v6559_v33 = vadd.f32 %v6558_v39, %v6456_v28 }
 0xfd8   :  { %11812 = vrcp.f32 %v6650_v5  ;;  %v6644_v3 = vadd.f32 %v6643_v42, %v6559_v33 }
 0xfda   :  { %11814 = vrcp.f32 %v6644_v3 }
 0xfe5   :  { %v11813_v51 = vpop.eup %11812 }
 0xfe6   :  { %v6656_v1 = vmul.f32 %v11813_v51, %v13849_v2 }
 0xfe7   :  { %v11815_v19 = vpop.eup %11814 }
 0xfe8   :  { %v6685_v62 = vsel %vm1367_vm1, %v6656_v1, 0  ;;  %v6654_v8 = vmul.f32 %v11815_v19, %v13853_v7 }
 0xfe9   :  { %v14037_v24 = vand.u32 4294901760, %v6685_v62 }
 0xfea   :  { %v6682_v59 = vsel %vm1367_vm1, %v6654_v8, 0 }
 0xfeb   :  { %v14040_v21 = vand.u32 4294901760, %v6682_v59  ;;  %v14043_v0 = vsub.f32 %v6685_v62, %v14037_v24 }
 0xfed   :  { %11383 = vmatprep.mubr.f32.mxu1 %v14040_v21  ;;  %v14047_v15 = vsub.f32 %v6682_v59, %v14040_v21  ;;  %v14050_v2 = vand.u32 4294901760, %v14043_v0 }
 0xfee   :  { %11384 = vmatmul.mubr.f32.vlgmr.msra.gmra.mxu1 %v14037_v24 }
 0xfef   :  { %11406 = vmatpush3.msra.mxu1 %v13892_v43  ;;  %v14055_v7 = vand.u32 4294901760, %v14047_v15  ;;  %v6773_v45 = vsub.f32 %v14043_v0, %v14050_v2 }
 0xff0   :  { %11407 = vmatprep.subr.mxu1 %v13897_v41 }
 0xff1   :  { %11408 = vmatpush3.msra.mxu1 %v13897_v41  ;;  %11421 = vmatprep.mubr.f32.mxu1 %v14055_v7  ;;  %v6763_v18 = vsub.f32 %v14047_v15, %v14055_v7  ;;  %v14069_v36 = vand.u32 4294901760, %v6773_v45 }
 0xff2   :  { %11409 = vmatprep.subr.mxu1 %v13906_v40 }
 0xff3   :  { %11410 = vmatpush3.msra.mxu1 %v13906_v40  ;;  %v14066_v44 = vand.u32 4294901760, %v6763_v18 }
 0xff4   :  { %11411 = vmatprep.subr.mxu1 %v13915_v32 }
 0xff5   :  { %11412 = vmatpush3.msra.mxu1 %v13915_v32  ;;  %11364 = vmatprep.mubr.f32.mxu0 %v14066_v44 }
 0xff6   :  { %11413 = vmatprep.subr.mxu1 %v13929_v17  ;;  %11365 = vmatmul.mubr.f32.vlgmr.msra.gmra.mxu0 %v14069_v36 }
 0xff7   :  { %11387 = vmatpush3.msra.mxu0 %v13904_v35  ;;  %11414 = vmatpush3.msra.mxu1 %v13929_v17  ;;  %v7280_v35 = vpop.permute.xlu1 %7279 }
 0xff8   :  { %11388 = vmatprep.subr.mxu0 %v13913_v30  ;;  %11402 = vmatprep.mubr.f32.mxu0 %v14047_v15 }
 0xff9   :  { %11415 = vmatprep.subr.mxu1 %v13941_v25  ;;  %11389 = vmatpush3.msra.mxu0 %v13913_v30  ;;  %v14141_v30 = vand.u32 4294901760, %v7280_v35 }
 0xffa   :  { %11416 = vmatpush3.msra.mxu1 %v13941_v25  ;;  %11390 = vmatprep.subr.mxu0 %v13922_v37 }
 0xffb   :  { %11417 = vmatprep.subr.mxu1 %v13955_v9  ;;  %11391 = vmatpush3.msra.mxu0 %v13922_v37  ;;  %v14146_v37 = vsub.f32 %v7280_v35, %v14141_v30 }
 0xffc   :  { %11418 = vmatpush3.msra.mxu1 %v13955_v9  ;;  %11392 = vmatprep.subr.mxu0 %v13934_v47 }
 0xffd   :  { %11419 = vmatprep.subr.mxu1 %v13969_v60  ;;  %11393 = vmatpush3.msra.mxu0 %v13934_v47 }
 0xffe   :  { %11420 = vmatpush3.msra.mxu1 %v13969_v60  ;;  %11394 = vmatprep.subr.mxu0 %v13953_v11 }
 0xfff   :  { %11422 = vmatmul.mubr.f32.vlgmr.msra.gmra.mxu1 %v14050_v2  ;;  %11443 = vmatprep.subr.mxu1 %v13892_v43 }
0x1000   :  { %11395 = vmatpush3.msra.mxu0 %v13953_v11  ;;  %11444 = vmatpush3.msra.mxu1 %v13892_v43  ;;  %v7282_v43 = vpop.permute.xlu0 %7281 }
0x1001   :  { %11459 = vmatprep.mubr.f32.mxu1 %v14040_v21  ;;  %11396 = vmatprep.subr.mxu0 %v13967_v54 }
0x1002   :  { %11445 = vmatprep.subr.mxu1 %v13897_v41  ;;  %11397 = vmatpush3.msra.mxu0 %v13967_v54 }
0x1003   :  { %11446 = vmatpush3.msra.mxu1 %v13897_v41  ;;  %11398 = vmatprep.subr.mxu0 %v13978_v55  ;;  %v14136_v41 = vand.u32 4294901760, %v7282_v43 }
0x1004   :  { %11447 = vmatprep.subr.mxu1 %v13906_v40  ;;  %11399 = vmatpush3.msra.mxu0 %v13978_v55 }
0x1005   :  { %11448 = vmatpush3.msra.mxu1 %v13906_v40  ;;  %11400 = vmatprep.subr.mxu0 %v13989_v56  ;;  %v14139_v40 = vsub.f32 %v7282_v43, %v14136_v41 }
0x1006   :  { %11449 = vmatprep.subr.mxu1 %v13915_v32  ;;  %11401 = vmatpush3.msra.mxu0 %v13989_v56 }
0x1007   :  { %11450 = vmatpush3.msra.mxu1 %v13915_v32  ;;  %11403 = vmatmul.mubr.f32.vlgmr.msra.gmra.mxu0 %v14043_v0  ;;  %v7278_v32 = vpop.permute.xlu0 %7277 }
0x1008   :  { %11424 = vmatprep.subr.mxu0 %v13927_v26  ;;  %11451 = vmatprep.subr.mxu1 %v13929_v17 }
0x1009   :  { %11425 = vmatpush3.msra.mxu0 %v13927_v26  ;;  %11440 = vmatprep.mubr.f32.mxu0 %v14040_v21  ;;  %v14148_v26 = vand.u32 4294901760, %v7278_v32 }
0x100a   :  { %11452 = vmatpush3.msra.mxu1 %v13929_v17  ;;  %11426 = vmatprep.subr.mxu0 %v13939_v49  ;;  %v7276_v17 = vpop.permute.xlu1 %7275 }
0x100b   :  { %11453 = vmatprep.subr.mxu1 %v13941_v25  ;;  %11427 = vmatpush3.msra.mxu0 %v13939_v49  ;;  %v14153_v47 = vsub.f32 %v7278_v32, %v14148_v26  ;;  %v14155_v49 = vand.u32 4294901760, %v7276_v17 }
0x100c   :  { %11454 = vmatpush3.msra.mxu1 %v13941_v25  ;;  %11428 = vmatprep.subr.mxu0 %v13950_v13  ;;  %v14158_v25 = vand.u32 4294901760, %v14139_v40 }
0x100d   :  { %11455 = vmatprep.subr.mxu1 %v13955_v9  ;;  %11429 = vmatpush3.msra.mxu0 %v13950_v13  ;;  %v14163_v13 = vsub.f32 %v7276_v17, %v14155_v49 }
0x100e   :  { %11456 = vmatpush3.msra.mxu1 %v13955_v9  ;;  %11430 = vmatprep.subr.mxu0 %v13964_v61  ;;  %v7410_v11 = vsub.f32 %v14139_v40, %v14158_v25  ;;  %v14168_v9 = vand.u32 4294901760, %v14146_v37 }
0x100f   :  { %11457 = vmatprep.subr.mxu1 %v13969_v60  ;;  %11431 = vmatpush3.msra.mxu0 %v13964_v61  ;;  %v14181_v56 = vand.u32 4294901760, %v14163_v13 }
0x1010   :  { %11458 = vmatpush3.msra.mxu1 %v13969_v60  ;;  %11432 = vmatprep.subr.mxu0 %v13983_v46  ;;  %v7411_v61 = vand.u32 4294901760, %v7410_v11  ;;  %v7417_v54 = vsub.f32 %v14146_v37, %v14168_v9  ;;  %v14175_v60 = vand.u32 4294901760, %v14153_v47 }
0x1011   :  { %11460 = vmatmul.mubr.f32.vlgmr.msra.gmra.mxu1 %v14037_v24  ;;  %11433 = vmatpush3.msra.mxu0 %v13983_v46 }
0x1012   :  { %11434 = vmatprep.subr.mxu0 %v13993_v57  ;;  %11473 = vmatprep.subr.mxu1 %v7411_v61  ;;  %v7418_v55 = vand.u32 4294901760, %v7417_v54  ;;  %v7424_v46 = vsub.f32 %v14153_v47, %v14175_v60 }
0x1013   :  { %11435 = vmatpush3.msra.mxu0 %v13993_v57  ;;  %11474 = vmatpush3.msra.mxu1 %v7411_v61 }
0x1014   :  { %11436 = vmatprep.subr.mxu0 %v14000_v50  ;;  %11475 = vmatprep.subr.mxu1 %v7418_v55  ;;  %v7425_v57 = vand.u32 4294901760, %v7424_v46 }
0x1015   :  { %11437 = vmatpush3.msra.mxu0 %v14000_v50  ;;  %v7431_v50 = vsub.f32 %v14163_v13, %v14181_v56  ;;  %11476 = vmatpush3.msra.mxu1 %v7418_v55 }
0x1016   :  { %11438 = vmatprep.subr.mxu0 %v14007_v12  ;;  %11477 = vmatprep.subr.mxu1 %v7425_v57 }
0x1017   :  { %11439 = vmatpush3.msra.mxu0 %v14007_v12  ;;  %v7432_v12 = vand.u32 4294901760, %v7431_v50  ;;  %11478 = vmatpush3.msra.mxu1 %v7425_v57 }
0x1018   :  { %11441 = vmatmul.mubr.f32.vlgmr.msra.gmra.mxu0 %v14037_v24  ;;  %11462 = vmatprep.subr.mxu0 %v14136_v41 }
0x1019   :  { %11463 = vmatpush3.msra.mxu0 %v14136_v41  ;;  %11479 = vmatprep.subr.mxu1 %v7432_v12 }
0x101a   :  { %11464 = vmatprep.subr.mxu0 %v14141_v30  ;;  %11480 = vmatpush3.msra.mxu1 %v7432_v12 }
0x101b   :  { %11465 = vmatpush3.msra.mxu0 %v14141_v30  ;;  %11495 = vmatprep.subr.mxu1 %v14136_v41 }
0x101c   :  { %11466 = vmatprep.subr.mxu0 %v14148_v26 }
0x101d   :  { %11467 = vmatpush3.msra.mxu0 %v14148_v26 }
0x101e   :  { %11468 = vmatprep.subr.mxu0 %v14155_v49 }
0x101f   :  { %11469 = vmatpush3.msra.mxu0 %v14155_v49 }
0x1020   :  { %11484 = vmatprep.subr.mxu0 %v14139_v40 }
0x10ae   :  { %v11385_v10 = vpop.f32.mrf.mxu1 }
0x10b0   :  { %v6887_v48 = vpop.f32.mrf.mxu1 }
0x10b6   :  { %v11366_v20 = vpop.f32.mrf.mxu0 }
0x10b7   :  { %v6894_v29 = vadd.f32 %v11385_v10, %v11366_v20 }
0x10b8   :  { %v6766_v22 = vpop.f32.mrf.mxu0 }
0x10b9   :  { %v6888_v6 = vadd.f32 %v6887_v48, %v6766_v22 }
0x10bf   :  { %v11423_v4 = vpop.f32.mrf.mxu1 }
0x10c1   :  { %v7069_v5 = vpop.f32.mrf.mxu1 }
0x10c7   :  { %v11404_v34 = vpop.f32.mrf.mxu0 }
0x10c8   :  { %v6989_v28 = vadd.f32 %v11404_v34, %v6894_v29 }
0x10c9   :  { %v6981_v38 = vpop.f32.mrf.mxu0 }
0x10ca   :  { %v6982_v39 = vadd.f32 %v6981_v38, %v6888_v6  ;;  %v7078_v33 = vadd.f32 %v11423_v4, %v6989_v28 }
0x10cc   :  { %v7070_v1 = vadd.f32 %v7069_v5, %v6982_v39 }
0x10d1   :  { %v11461_v42 = vpop.f32.mrf.mxu1 }
0x10d3   :  { %v7257_v59 = vpop.f32.mrf.mxu1 }
0x10d8   :  { %v11442_v3 = vpop.f32.mrf.mxu0 }
0x10d9   :  { %v7179_v51 = vadd.f32 %v11442_v3, %v7078_v33 }
0x10da   :  { %v7172_v19 = vpop.f32.mrf.mxu0 }
0x10db   :  { %v7264_v62 = vadd.f32 %v11461_v42, %v7179_v51  ;;  %v7173_v8 = vadd.f32 %v7172_v19, %v7070_v1 }
0x10dd   :  { %v7291_v45 = vsel %vm127_vm0, %v7264_v62, 0  ;;  %v7258_v18 = vadd.f32 %v7257_v59, %v7173_v8 }
0x10de   :  { %v7372_v43 = vand.u32 4294901760, %v7291_v45 }
0x10df   :  { %v7288_v35 = vsel %vm127_vm0, %v7258_v18, 0 }
0x10e0   :  { %v7373_v32 = vsub.f32 %v7291_v45, %v7372_v43  ;;  %v7362_v17 = vand.u32 4294901760, %v7288_v35  ;;  %v14772_v45 = vld [vmem:[#allocation69_spill] sm:$0xff] }
0x10e2   :  { %v7363_v11 = vsub.f32 %v7288_v35, %v7362_v17  ;;  %11481 = vmatprep.mubr.f32.mxu1 %v7362_v17  ;;  %v7374_v61 = vand.u32 4294901760, %v7373_v32  ;;  %v14773_v35 = vld [vmem:[#allocation70_spill] sm:$0xff] }
0x10e3   :  { %11482 = vmatmul.mubr.f32.vlgmr.msra.gmra.mxu1 %v7372_v43 }
0x10e4   :  { %11496 = vmatpush3.msra.mxu1 %v14136_v41  ;;  %v7364_v54 = vand.u32 4294901760, %v7363_v11  ;;  %v7375_v46 = vsub.f32 %v7373_v32, %v7374_v61 }
0x10e5   :  { %11497 = vmatprep.subr.mxu1 %v14141_v30 }
0x10e6   :  { %11498 = vmatpush3.msra.mxu1 %v14141_v30  ;;  %11503 = vmatprep.mubr.f32.mxu1 %v7364_v54  ;;  %v7365_v55 = vsub.f32 %v7363_v11, %v7364_v54  ;;  %v7376_v50 = vand.u32 4294901760, %v7375_v46 }
0x10e7   :  { %11499 = vmatprep.subr.mxu1 %v14148_v26 }
0x10e8   :  { %11500 = vmatpush3.msra.mxu1 %v14148_v26  ;;  %v7366_v57 = vand.u32 4294901760, %v7365_v55 }
0x10e9   :  { %11501 = vmatprep.subr.mxu1 %v14155_v49 }
0x10ea   :  { %11502 = vmatpush3.msra.mxu1 %v14155_v49  ;;  %11470 = vmatprep.mubr.f32.mxu0 %v7366_v57 }
0x10eb   :  { %11504 = vmatmul.mubr.f32.vlgmr.msra.gmra.mxu1 %v7374_v61  ;;  %11517 = vmatprep.subr.mxu1 %v14136_v41  ;;  %v14774_v61 = vld [vmem:[#allocation66_spill] sm:$0xff] }
0x10ec   :  { %11471 = vmatmul.mubr.f32.vlgmr.msra.gmra.mxu0 %v7376_v50  ;;  %11518 = vmatpush3.msra.mxu1 %v14136_v41  ;;  %v14754_v41 = vld [vmem:[#allocation56_spill] sm:$0xff] }
0x10ed   :  { %11485 = vmatpush3.msra.mxu0 %v14139_v40  ;;  %11525 = vmatprep.mubr.f32.mxu1 %v7362_v17  ;;  %v14756_v40 = vld [vmem:[#allocation43_spill] sm:$0xff] }
0x10ee   :  { %11486 = vmatprep.subr.mxu0 %v14146_v37  ;;  %11492 = vmatprep.mubr.f32.mxu0 %v7363_v11 }
0x10ef   :  { %11519 = vmatprep.subr.mxu1 %v14141_v30  ;;  %11487 = vmatpush3.msra.mxu0 %v14146_v37  ;;  %v14760_v37 = vld [vmem:[#allocation55_spill] sm:$0xff] }
0x10f0   :  { %11520 = vmatpush3.msra.mxu1 %v14141_v30  ;;  %11488 = vmatprep.subr.mxu0 %v14153_v47  ;;  %v14757_v30 = vld [vmem:[#allocation46_spill] sm:$0xff] }
0x10f1   :  { %11521 = vmatprep.subr.mxu1 %v14148_v26  ;;  %11489 = vmatpush3.msra.mxu0 %v14153_v47  ;;  %v14765_v47 = vld [vmem:[#allocation51_spill] sm:$0xff] }
0x10f2   :  { %11522 = vmatpush3.msra.mxu1 %v14148_v26  ;;  %11490 = vmatprep.subr.mxu0 %v14163_v13  ;;  %v14761_v26 = vld [vmem:[#allocation58_spill] sm:$0xff] }
0x10f3   :  { %11523 = vmatprep.subr.mxu1 %v14155_v49  ;;  %11491 = vmatpush3.msra.mxu0 %v14163_v13  ;;  %v14770_v13 = vld [vmem:[#allocation62_spill] sm:$0xff] }
0x10f4   :  { %11524 = vmatpush3.msra.mxu1 %v14155_v49  ;;  %11493 = vmatmul.mubr.f32.vlgmr.msra.gmra.mxu0 %v7373_v32  ;;  %v14768_v49 = vld [vmem:[#allocation59_spill] sm:$0xff] }
0x10f5   :  { %11506 = vmatprep.subr.mxu0 %v14158_v25  ;;  %11526 = vmatmul.mubr.f32.vlgmr.msra.gmra.mxu1 %v7372_v43 }
0x10f6   :  { %11547 = vmatprep.subr.mxu1 %v13041_v63  ;;  %11507 = vmatpush3.msra.mxu0 %v14158_v25  ;;  %v14769_v25 = vld [vmem:[#allocation61_spill] sm:$0xff] }
0x10f7   :  { %11514 = vmatprep.mubr.f32.mxu0 %v7362_v17  ;;  %11548 = vmatpush3.msra.mxu1 %v13041_v63  ;;  %v14747_v63 = vld [vmem:[#allocation42_spill] sm:$0xff] }
0x10f8   :  { %11563 = vmatprep.mubr.f32.mxu1 %v14040_v21  ;;  %11508 = vmatprep.subr.mxu0 %v14168_v9 }
0x10f9   :  { %11549 = vmatprep.subr.mxu1 %v13062_v52  ;;  %11509 = vmatpush3.msra.mxu0 %v14168_v9 }
0x10fa   :  { %11550 = vmatpush3.msra.mxu1 %v13062_v52  ;;  %11510 = vmatprep.subr.mxu0 %v14175_v60  ;;  %v14748_v52 = vld [vmem:[#allocation63_spill] sm:$0xff] }
0x10fb   :  { %11551 = vmatprep.subr.mxu1 %v13076_v14  ;;  %11511 = vmatpush3.msra.mxu0 %v14175_v60  ;;  %v14329_v60 = vld [vmem:[%s14546_s2 + $0x8] sm:$0x3f]  ;;  %s11947_s2 = smov [#allocation10]  }
0x10fc   :  { %11552 = vmatpush3.msra.mxu1 %v13076_v14  ;;  %11512 = vmatprep.subr.mxu0 %v14181_v56  ;;  %v14749_v14 = vld [vmem:[#allocation44_spill] sm:$0xff] }
0x10fd   :  { %11553 = vmatprep.subr.mxu1 %v13087_v58  ;;  %11513 = vmatpush3.msra.mxu0 %v14181_v56  ;;  %v14771_v56 = vsub.s32 2, %v12121_v53 }
0x10fe   :  { %11554 = vmatpush3.msra.mxu1 %v13087_v58  ;;  %11515 = vmatmul.mubr.f32.vlgmr.msra.gmra.mxu0 %v7372_v43  ;;  %v14750_v58 = vld [vmem:[#allocation64_spill] sm:$0xff] }
0x10ff   :  { %11528 = vmatprep.subr.mxu0 %v12953_v16  ;;  %11555 = vmatprep.subr.mxu1 %v13098_v27  ;;  %v7270_v12 = vrot.slane %v14329_v60, %v14771_v56 }
0x1100   :  { %11529 = vmatpush3.msra.mxu0 %v12953_v16  ;;  %11544 = vmatprep.mubr.f32.mxu0 %v14066_v44  ;;  %v14753_v44 = vld [vmem:[#allocation53_spill] sm:$0xff] }
0x1101   :  { %11556 = vmatpush3.msra.mxu1 %v13098_v27  ;;  %11530 = vmatprep.subr.mxu0 %v12964_v23  ;;  %v14751_v27 = vld [vmem:[#allocation47_spill] sm:$0xff] }
0x1102   :  { %11557 = vmatprep.subr.mxu1 %v13108_v31  ;;  %11531 = vmatpush3.msra.mxu0 %v12964_v23 }
0x1103   :  { %11558 = vmatpush3.msra.mxu1 %v13108_v31  ;;  %11532 = vmatprep.subr.mxu0 %v14747_v63  ;;  %v14752_v31 = vld [vmem:[#allocation50_spill] sm:$0xff] }
0x1104   :  { %11559 = vmatprep.subr.mxu1 %v14748_v52  ;;  %11533 = vmatpush3.msra.mxu0 %v14747_v63 }
0x1105   :  { %11560 = vmatpush3.msra.mxu1 %v14748_v52  ;;  %11534 = vmatprep.subr.mxu0 %v14749_v14 }
0x1106   :  { %11561 = vmatprep.subr.mxu1 %v14750_v58  ;;  %11535 = vmatpush3.msra.mxu0 %v14749_v14 }
0x1107   :  { %11562 = vmatpush3.msra.mxu1 %v14750_v58  ;;  %11536 = vmatprep.subr.mxu0 %v14751_v27 }
0x1108   :  { %11564 = vmatmul.mubr.f32.vlgmr.msra.gmra.mxu1 %v14037_v24  ;;  %11585 = vmatprep.subr.mxu1 %v12953_v16 }
0x1109   :  { %11537 = vmatpush3.msra.mxu0 %v14751_v27  ;;  %11586 = vmatpush3.msra.mxu1 %v12953_v16 }
0x110a   :  { %11601 = vmatprep.mubr.f32.mxu1 %v14055_v7  ;;  %11538 = vmatprep.subr.mxu0 %v14752_v31  ;;  %v14755_v7 = vld [vmem:[#allocation41_spill] sm:$0xff] }
0x110b   :  { %11587 = vmatprep.subr.mxu1 %v12964_v23  ;;  %11539 = vmatpush3.msra.mxu0 %v14752_v31 }
0x110c   :  { %11588 = vmatpush3.msra.mxu1 %v12964_v23  ;;  %11540 = vmatprep.subr.mxu0 %v14753_v44 }
0x110d   :  { %11589 = vmatprep.subr.mxu1 %v14747_v63  ;;  %11541 = vmatpush3.msra.mxu0 %v14753_v44 }
0x110e   :  { %11590 = vmatpush3.msra.mxu1 %v14747_v63  ;;  %11542 = vmatprep.subr.mxu0 %v14754_v41 }
0x110f   :  { %11591 = vmatprep.subr.mxu1 %v14749_v14  ;;  %11543 = vmatpush3.msra.mxu0 %v14754_v41 }
0x1110   :  { %11592 = vmatpush3.msra.mxu1 %v14749_v14  ;;  %11545 = vmatmul.mubr.f32.vlgmr.msra.gmra.mxu0 %v14069_v36  ;;  %v14758_v36 = vld [vmem:[#allocation49_spill] sm:$0xff] }
0x1111   :  { %11566 = vmatprep.subr.mxu0 %v14755_v7  ;;  %11593 = vmatprep.subr.mxu1 %v14751_v27 }
0x1112   :  { %11567 = vmatpush3.msra.mxu0 %v14755_v7  ;;  %11582 = vmatprep.mubr.f32.mxu0 %v14047_v15  ;;  %v14759_v15 = vld [vmem:[#allocation52_spill] sm:$0xff] }
0x1113   :  { %11594 = vmatpush3.msra.mxu1 %v14751_v27  ;;  %11568 = vmatprep.subr.mxu0 %v14756_v40 }
0x1114   :  { %11595 = vmatprep.subr.mxu1 %v14752_v31  ;;  %11569 = vmatpush3.msra.mxu0 %v14756_v40 }
0x1115   :  { %11596 = vmatpush3.msra.mxu1 %v14752_v31  ;;  %11570 = vmatprep.subr.mxu0 %v14757_v30 }
0x1116   :  { %11597 = vmatprep.subr.mxu1 %v14753_v44  ;;  %11571 = vmatpush3.msra.mxu0 %v14757_v30 }
0x1117   :  { %11598 = vmatpush3.msra.mxu1 %v14753_v44  ;;  %11572 = vmatprep.subr.mxu0 %v14758_v36 }
0x1118   :  { %11599 = vmatprep.subr.mxu1 %v14754_v41  ;;  %11573 = vmatpush3.msra.mxu0 %v14758_v36 }
0x1119   :  { %11600 = vmatpush3.msra.mxu1 %v14754_v41  ;;  %11574 = vmatprep.subr.mxu0 %v14759_v15 }
0x111a   :  { %11602 = vmatmul.mubr.f32.vlgmr.msra.gmra.mxu1 %v14050_v2  ;;  %11623 = vmatprep.subr.mxu1 %v12953_v16  ;;  %v14762_v2 = vld [vmem:[#allocation60_spill] sm:$0xff] }
0x111b   :  { %11575 = vmatpush3.msra.mxu0 %v14759_v15  ;;  %11624 = vmatpush3.msra.mxu1 %v12953_v16  ;;  %v14763_v16 = vld [vmem:[#allocation45_spill] sm:$0xff] }
0x111c   :  { %11639 = vmatprep.mubr.f32.mxu1 %v14040_v21  ;;  %11576 = vmatprep.subr.mxu0 %v14760_v37 }
0x111d   :  { %11625 = vmatprep.subr.mxu1 %v12964_v23  ;;  %11577 = vmatpush3.msra.mxu0 %v14760_v37 }
0x111e   :  { %11626 = vmatpush3.msra.mxu1 %v12964_v23  ;;  %11578 = vmatprep.subr.mxu0 %v14761_v26  ;;  %v14764_v23 = vld [vmem:[#allocation48_spill] sm:$0xff] }
0x111f   :  { %11627 = vmatprep.subr.mxu1 %v14747_v63  ;;  %11579 = vmatpush3.msra.mxu0 %v14761_v26 }
0x1120   :  { %11628 = vmatpush3.msra.mxu1 %v14747_v63  ;;  %11580 = vmatprep.subr.mxu0 %v14762_v2 }
0x1121   :  { %11629 = vmatprep.subr.mxu1 %v14749_v14  ;;  %11581 = vmatpush3.msra.mxu0 %v14762_v2 }
0x1122   :  { %11630 = vmatpush3.msra.mxu1 %v14749_v14  ;;  %11583 = vmatmul.mubr.f32.vlgmr.msra.gmra.mxu0 %v14043_v0  ;;  %v14766_v0 = vld [vmem:[#allocation54_spill] sm:$0xff] }
0x1123   :  { %11604 = vmatprep.subr.mxu0 %v14763_v16  ;;  %11631 = vmatprep.subr.mxu1 %v14751_v27 }
0x1124   :  { %11605 = vmatpush3.msra.mxu0 %v14763_v16  ;;  %11620 = vmatprep.mubr.f32.mxu0 %v14040_v21  ;;  %v14767_v21 = vld [vmem:[#allocation57_spill] sm:$0xff] }
0x1125   :  { %11632 = vmatpush3.msra.mxu1 %v14751_v27  ;;  %11606 = vmatprep.subr.mxu0 %v14764_v23 }
0x1126   :  { %11633 = vmatprep.subr.mxu1 %v14752_v31  ;;  %11607 = vmatpush3.msra.mxu0 %v14764_v23 }
0x1127   :  { %11634 = vmatpush3.msra.mxu1 %v14752_v31  ;;  %11608 = vmatprep.subr.mxu0 %v14765_v47 }
0x1128   :  { %11635 = vmatprep.subr.mxu1 %v14753_v44  ;;  %11609 = vmatpush3.msra.mxu0 %v14765_v47 }
0x1129   :  { %11636 = vmatpush3.msra.mxu1 %v14753_v44  ;;  %11610 = vmatprep.subr.mxu0 %v14766_v0 }
0x112a   :  { %11637 = vmatprep.subr.mxu1 %v14754_v41  ;;  %11611 = vmatpush3.msra.mxu0 %v14766_v0 }
0x112b   :  { %11638 = vmatpush3.msra.mxu1 %v14754_v41  ;;  %11612 = vmatprep.subr.mxu0 %v14767_v21 }
0x112c   :  { %11640 = vmatmul.mubr.f32.vlgmr.msra.gmra.mxu1 %v14037_v24  ;;  %11613 = vmatpush3.msra.mxu0 %v14767_v21 }
0x112d   :  { %11614 = vmatprep.subr.mxu0 %v14768_v49 }
0x112e   :  { %11615 = vmatpush3.msra.mxu0 %v14768_v49 }
0x112f   :  { %11616 = vmatprep.subr.mxu0 %v14769_v25 }
0x1130   :  { %11617 = vmatpush3.msra.mxu0 %v14769_v25 }
0x1131   :  { %11618 = vmatprep.subr.mxu0 %v14770_v13 }
0x1132   :  { %11619 = vmatpush3.msra.mxu0 %v14770_v13 }
0x1133   :  { %11621 = vmatmul.mubr.f32.vlgmr.msra.gmra.mxu0 %v14037_v24 }
0x11a3   :  { %v11483_v20 = vpop.f32.mrf.mxu1 }
0x11a5   :  { %v7469_v29 = vpop.f32.mrf.mxu1 }
0x11ab   :  { %v11505_v38 = vpop.f32.mrf.mxu1 }
0x11ac   :  { %v11472_v9 = vpop.f32.mrf.mxu0 }
0x11ad   :  { %v7379_v22 = vadd.f32 %v11472_v9, %v7270_v12  ;;  %v7639_v5 = vpop.f32.mrf.mxu1 }
0x11ae   :  { %v7368_v10 = vpop.f32.mrf.mxu0 }
0x11af   :  { %v7369_v48 = vadd.f32 %v7368_v10, %v7270_v12  ;;  %v7476_v4 = vadd.f32 %v11483_v20, %v7379_v22  ;;  %v4843_v20 = vld [vmem:[#allocation5 + $0xb0] sm:$0xff]  ;;  %v4840_v10 = vld [vmem:[#allocation5 + $0x98] sm:$0xff]  ;;  %v4837_v22 = vld [vmem:[#allocation5 + $0x80] sm:$0xff] }
0x11b1   :  { %v7470_v28 = vadd.f32 %v7469_v29, %v7369_v48  ;;  %v14358_v48 = vand.u32 4294901760, %v4840_v10  ;;  %v14360_v29 = vand.u32 4294901760, %v4837_v22 }
0x11b4   :  { %v11494_v34 = vpop.f32.mrf.mxu0 }
0x11b5   :  { %v7563_v24 = vadd.f32 %v11494_v34, %v7476_v4  ;;  %v11527_v42 = vpop.f32.mrf.mxu1  ;;  %v14356_v34 = vand.u32 4294901760, %v4843_v20  ;;  %v14775_v4 = vld [vmem:[#allocation65_spill] sm:$0xff] }
0x11b6   :  { %v7555_v6 = vpop.f32.mrf.mxu0 }
0x11b7   :  { %v7556_v39 = vadd.f32 %v7555_v6, %v7470_v28  ;;  %v7648_v33 = vadd.f32 %v11505_v38, %v7563_v24  ;;  %v7811_v59 = vpop.f32.mrf.mxu1  ;;  %v14776_v38 = vld [vmem:[#allocation67_spill] sm:$0xff]  ;;  %v14365_v24 = vsub.f32 %v4843_v20, %v14356_v34  ;;  %v14368_v28 = vsub.f32 %v4840_v10, %v14358_v48  ;;  %11642 = vmatprep.subr.mxu0 %v14356_v34 }
0x11b8   :  { %v3622_v6 = vadd.f32 %v14776_v38, %v14775_v4  ;;  %11643 = vmatpush3.msra.mxu0 %v14356_v34  ;;  %v4838_v38 = vld [vmem:[#allocation5 + $0x88] sm:$0xff] }
0x11b9   :  { %v7640_v1 = vadd.f32 %v7639_v5, %v7556_v39  ;;  %v14371_v39 = vsub.f32 %v4837_v22, %v14360_v29  ;;  %v14376_v5 = vand.u32 4294901760, %v14365_v24  ;;  %11644 = vmatprep.subr.mxu0 %v14358_v48  ;;  %v4841_v22 = vld [vmem:[#allocation5 + $0xa0] sm:$0xff] }
0x11ba   :  { %11645 = vmatpush3.msra.mxu0 %v14358_v48 }
0x11bb   :  { %11646 = vmatprep.subr.mxu0 %v14360_v29 }
0x11bc   :  { %11647 = vmatpush3.msra.mxu0 %v14360_v29 }
0x11be   :  { %v11516_v3 = vpop.f32.mrf.mxu0 }
0x11bf   :  { %v7737_v51 = vadd.f32 %v11516_v3, %v7648_v33  ;;  %v14379_v33 = vand.u32 4294901760, %v14368_v28  ;;  %v14777_v3 = vld [vmem:[#allocation68_spill] sm:$0xff] }
0x11c0   :  { %v7730_v19 = vpop.f32.mrf.mxu0 }
0x11c1   :  { %v7818_v62 = vadd.f32 %v11527_v42, %v7737_v51  ;;  %v7731_v8 = vadd.f32 %v7730_v19, %v7640_v1  ;;  %v14382_v42 = vand.u32 4294901760, %v14371_v39  ;;  %v3707_v51 = vadd.f32 %v14777_v3, %v3622_v6 }
0x11c2   :  { %v8570_v1 = vsub.f32 %v14365_v24, %v14376_v5  ;;  %v8577_v19 = vsub.f32 %v14368_v28, %v14379_v33 }
0x11c3   :  { %v14335_v18 = vadd.f32 %v7818_v62, %v14772_v45  ;;  %v7812_v43 = vadd.f32 %v7811_v59, %v7731_v8  ;;  %v8584_v62 = vsub.f32 %v14371_v39, %v14382_v42 }
0x11c4   :  { %v8571_v8 = vand.u32 4294901760, %v8570_v1  ;;  %v8578_v59 = vand.u32 4294901760, %v8577_v19 }
0x11c5   :  { %v14338_v32 = vadd.f32 %v7812_v43, %v14773_v35  ;;  %v8406_v17 = vsel %vm127_vm0, %v14335_v18, 0.0  ;;  %v8585_v45 = vand.u32 4294901760, %v8584_v62  ;;  %v4834_v43 = vld [vmem:[#allocation5 + $0x68] sm:$0xff] }
0x11c6   :  { %8407 = vadd.xlane.f32.xlu1 %v8406_v17  ;;  %11653 = vmatprep.subr.mxu1 %v8571_v8  ;;  %v14396_v35 = vand.u32 4294901760, %v4834_v43 }
0x11c7   :  { %v8403_v11 = vsel %vm127_vm0, %v14338_v32, 0.0  ;;  %11654 = vmatpush3.msra.mxu1 %v8571_v8 }
0x11c8   :  { %8404 = vadd.xlane.f32.xlu0 %v8403_v11  ;;  %v11565_v55 = vpop.f32.mrf.mxu1  ;;  %11655 = vmatprep.subr.mxu1 %v8578_v59  ;;  %v14399_v17 = vsub.f32 %v4834_v43, %v14396_v35 }
0x11c9   :  { %11656 = vmatpush3.msra.mxu1 %v8578_v59  ;;  %11648 = vmatprep.subr.mxu0 %v14396_v35 }
0x11ca   :  { %v8023_v50 = vpop.f32.mrf.mxu1  ;;  %11657 = vmatprep.subr.mxu1 %v8585_v45  ;;  %11649 = vmatpush3.msra.mxu0 %v14396_v35  ;;  %v14404_v11 = vand.u32 4294901760, %v14399_v17 }
0x11cb   :  { %11658 = vmatpush3.msra.mxu1 %v8585_v45  ;;  %11664 = vmatprep.subr.mxu0 %v14365_v24 }
0x11d0   :  { %v11546_v54 = vpop.f32.mrf.mxu0 }
0x11d1   :  { %v8030_v58 = vadd.f32 %v11565_v55, %v11546_v54 }
0x11d2   :  { %v7902_v46 = vpop.f32.mrf.mxu0 }
0x11d3   :  { %v8024_v14 = vadd.f32 %v8023_v50, %v7902_v46 }
0x11d7   :  { %9523 = vrot.lane.b32.xlu1 %v14774_v61, %s11944_s9  ;;  %v8591_v61 = vsub.f32 %v14399_v17, %v14404_v11 }
0x11d9   :  { %v8592_v54 = vand.u32 4294901760, %v8591_v61 }
0x11da   :  { %v11603_v63 = vpop.f32.mrf.mxu1 }
0x11db   :  { %11659 = vmatprep.subr.mxu1 %v8592_v54 }
0x11dc   :  { %v8205_v31 = vpop.f32.mrf.mxu1  ;;  %11660 = vmatpush3.msra.mxu1 %v8592_v54 }
0x11dd   :  { %11675 = vmatprep.subr.mxu1 %v14356_v34 }
0x11e2   :  { %v11584_v57 = vpop.f32.mrf.mxu0 }
0x11e3   :  { %v8125_v44 = vadd.f32 %v11584_v57, %v8030_v58 }
0x11e4   :  { %v8117_v52 = vpop.f32.mrf.mxu0 }
0x11e5   :  { %v8118_v27 = vadd.f32 %v8117_v52, %v8024_v14  ;;  %v8214_v36 = vadd.f32 %v11603_v63, %v8125_v44  ;;  %v14778_v14 = vsub.s32 3, %v12121_v53  ;;  %v14779_v44 = vsub.s32 4, %v12121_v53 }
0x11e7   :  { %v8206_v40 = vadd.f32 %v8205_v31, %v8118_v27  ;;  %v8432_v58 = vrot.slane %v14329_v60, %v14778_v14 }
0x11ec   :  { %v11641_v41 = vpop.f32.mrf.mxu1 }
0x11ee   :  { %v8393_v37 = vpop.f32.mrf.mxu1 }
0x11f3   :  { %v11622_v7 = vpop.f32.mrf.mxu0 }
0x11f4   :  { %v8315_v26 = vadd.f32 %v11622_v7, %v8214_v36 }
0x11f5   :  { %v8308_v30 = vpop.f32.mrf.mxu0 }
0x11f6   :  { %v8309_v15 = vadd.f32 %v8308_v30, %v8206_v40  ;;  %v8400_v16 = vadd.f32 %v11641_v41, %v8315_v26  ;;  %v8438_v41 = vrot.slane %v14329_v60, %v14779_v44 }
0x11f8   :  { %v8394_v2 = vadd.f32 %v8393_v37, %v8309_v15 }
0x11fa   :  { %9529 = vrot.lane.b32.xlu1 %v8394_v2, %s11946_s11 }
0x11fe   :  { %9531 = vrot.lane.b32.xlu1 %v8400_v16, %s11946_s11 }
0x124f   :  { %v8408_v23 = vpop.xlane.xlu1 %8407 }
0x1250   :  { %v8410_v47 = vmul.f32 0.03125, %v8408_v23 }
0x1251   :  { %v8405_v0 = vpop.xlane.xlu0 %8404 }
0x1252   :  { %v8409_v21 = vmul.f32 0.03125, %v8405_v0  ;;  %v14349_v49 = vsub.f32 %v14335_v18, %v8410_v47 }
0x1254   :  { %v8411_v25 = vsub.f32 %v14338_v32, %v8409_v21  ;;  %v8414_v56 = vmul.f32 %v14349_v49, %v14349_v49 }
0x1256   :  { %v8413_v13 = vmul.f32 %v8411_v25, %v8411_v25  ;;  %v8418_v12 = vsel %vm127_vm0, %v8414_v56, 0.0 }
0x1258   :  { %v8415_v9 = vsel %vm127_vm0, %v8413_v13, 0.0 }
0x1259   :  { %8416 = vadd.xlane.f32.xlu0 %v8415_v9 }
0x125d   :  { %8419 = vadd.xlane.f32.xlu0 %v8418_v12  ;;  %v4844_v12 = vld [vmem:[#allocation5 + $0xb8] sm:$0xff] }
0x125e   :  { %v14449_v20 = vand.u32 4294901760, %v4844_v12 }
0x1260   :  { %v14452_v10 = vsub.f32 %v4844_v12, %v14449_v20 }
0x1273   :  { %9521 = vrot.lane.b32.xlu0 %v3707_v51, %s11944_s9  ;;  %s9549_s9 = sshll.u32 %s11947_s2, 4  ;;  %s9550_s9 = int_to_ptr.vmem [resolvable:$true] %s9549_s9 }
0x1274   :  { %s11906_s11 = scalar_lea.vmem %s9550_s9, 256  ;;  %p11911_p7 = scmp.lt.s32.totalorder %s9550_s9, %s9550_s9 }
0x1275   :  { %p11907_p6 = scmp.ne.s32.totalorder %s9550_s9, %s11906_s11  ;;  %p11912_p8 = scmp.lt.s32.totalorder %s11906_s11, %s11906_s11 }
0x1277   :  { %p11913_p9 = por %p11912_p8, %p11911_p7 }
0x1279   :  { %p11914_p10 = pnand %p11913_p9, %p11907_p6 }
0x12e2   :  { %v8417_v55 = vpop.xlane.xlu0 %8416 }
0x12e3   :  { %v8421_v46 = vmul.f32 0.03125, %v8417_v55 }
0x12e5   :  { %v8423_v57 = vadd.f32 1e-05, %v8421_v46 }
0x12e6   :  { %v8420_v50 = vpop.xlane.xlu0 %8419 }
0x12e7   :  { %11816 = vrsqrt.f32 %v8423_v57  ;;  %v8422_v63 = vmul.f32 0.03125, %v8420_v50 }
0x12e9   :  { %v8424_v52 = vadd.f32 1e-05, %v8422_v63 }
0x12eb   :  { %11818 = vrsqrt.f32 %v8424_v52 }
0x12f4   :  { %v11817_v27 = vpop.eup %11816 }
0x12f5   :  { %v8427_v31 = vmul.f32 %v11817_v27, %v8411_v25 }
0x12f7   :  { %v8433_v7 = vmul.f32 %v8432_v58, %v8427_v31 }
0x12f8   :  { %v11819_v40 = vpop.eup %11818 }
0x12f9   :  { %v8439_v30 = vadd.f32 %v8438_v41, %v8433_v7  ;;  %v8428_v36 = vmul.f32 %v11819_v40, %v14349_v49 }
0x12fb   :  { %v8448_v15 = vsel %vm127_vm0, %v8439_v30, 0  ;;  %v8434_v37 = vmul.f32 %v8432_v58, %v8428_v36 }
0x12fc   :  { %v8522_v26 = vand.u32 4294901760, %v8448_v15 }
0x12fd   :  { %v8440_v2 = vadd.f32 %v8438_v41, %v8434_v37 }
0x12fe   :  { %11661 = vmatprep.mubr.f32.mxu1 %v8522_v26  ;;  %v8523_v16 = vsub.f32 %v8448_v15, %v8522_v26 }
0x12ff   :  { %v8451_v23 = vsel %vm127_vm0, %v8440_v2, 0 }
0x1300   :  { %v8532_v47 = vand.u32 4294901760, %v8451_v23  ;;  %v8524_v0 = vand.u32 4294901760, %v8523_v16 }
0x1302   :  { %v8533_v21 = vsub.f32 %v8451_v23, %v8532_v47  ;;  %11662 = vmatmul.mubr.f32.vlgmr.msra.gmra.mxu1 %v8532_v47  ;;  %v8525_v25 = vsub.f32 %v8523_v16, %v8524_v0 }
0x1303   :  { %11676 = vmatpush3.msra.mxu1 %v14356_v34  ;;  %11683 = vmatprep.mubr.f32.mxu1 %v8524_v0 }
0x1304   :  { %11677 = vmatprep.subr.mxu1 %v14358_v48  ;;  %v8526_v49 = vand.u32 4294901760, %v8525_v25  ;;  %v8534_v13 = vand.u32 4294901760, %v8533_v21 }
0x1305   :  { %11678 = vmatpush3.msra.mxu1 %v14358_v48 }
0x1306   :  { %11679 = vmatprep.subr.mxu1 %v14360_v29  ;;  %11650 = vmatprep.mubr.f32.mxu0 %v8526_v49  ;;  %v8535_v9 = vsub.f32 %v8533_v21, %v8534_v13 }
0x1307   :  { %11680 = vmatpush3.msra.mxu1 %v14360_v29 }
0x1308   :  { %11681 = vmatprep.subr.mxu1 %v14396_v35  ;;  %v8536_v56 = vand.u32 4294901760, %v8535_v9 }
0x1309   :  { %11682 = vmatpush3.msra.mxu1 %v14396_v35 }
0x130a   :  { %11684 = vmatmul.mubr.f32.vlgmr.msra.gmra.mxu1 %v8534_v13  ;;  %11697 = vmatprep.subr.mxu1 %v14356_v34 }
0x130b   :  { %11651 = vmatmul.mubr.f32.vlgmr.msra.gmra.mxu0 %v8536_v56  ;;  %11698 = vmatpush3.msra.mxu1 %v14356_v34  ;;  %v14457_v34 = vand.u32 4294901760, %v14452_v10 }
0x130c   :  { %11665 = vmatpush3.msra.mxu0 %v14365_v24  ;;  %11705 = vmatprep.mubr.f32.mxu1 %v8522_v26 }
0x130d   :  { %11666 = vmatprep.subr.mxu0 %v14368_v28  ;;  %11672 = vmatprep.mubr.f32.mxu0 %v8523_v16 }
0x130e   :  { %11699 = vmatprep.subr.mxu1 %v14358_v48  ;;  %11667 = vmatpush3.msra.mxu0 %v14368_v28  ;;  %v14471_v28 = vand.u32 4294901760, %v4838_v38 }
0x130f   :  { %11700 = vmatpush3.msra.mxu1 %v14358_v48  ;;  %11668 = vmatprep.subr.mxu0 %v14371_v39  ;;  %v14459_v48 = vand.u32 4294901760, %v4841_v22 }
0x1310   :  { %11701 = vmatprep.subr.mxu1 %v14360_v29  ;;  %11669 = vmatpush3.msra.mxu0 %v14371_v39 }
0x1311   :  { %11702 = vmatpush3.msra.mxu1 %v14360_v29  ;;  %11670 = vmatprep.subr.mxu0 %v14399_v17  ;;  %v9100_v29 = vsub.f32 %v14452_v10, %v14457_v34  ;;  %v14464_v4 = vsub.f32 %v4841_v22, %v14459_v48 }
0x1312   :  { %11703 = vmatprep.subr.mxu1 %v14396_v35  ;;  %11671 = vmatpush3.msra.mxu0 %v14399_v17 }
0x1313   :  { %11704 = vmatpush3.msra.mxu1 %v14396_v35  ;;  %11673 = vmatmul.mubr.f32.vlgmr.msra.gmra.mxu0 %v8533_v21  ;;  %v9101_v6 = vand.u32 4294901760, %v9100_v29  ;;  %v14469_v24 = vand.u32 4294901760, %v14464_v4  ;;  %v9565_v35 = vld [vmem:[#allocation7 + $0x1] ss:$0 sm:$0xff] }
0x1314   :  { %11686 = vmatprep.subr.mxu0 %v14376_v5  ;;  %11706 = vmatmul.mubr.f32.vlgmr.msra.gmra.mxu1 %v8532_v47 }
0x1315   :  { %11687 = vmatpush3.msra.mxu0 %v14376_v5  ;;  %11694 = vmatprep.mubr.f32.mxu0 %v8522_v26  ;;  %v9107_v39 = vsub.f32 %v14464_v4, %v14469_v24  ;;  %v14476_v5 = vsub.f32 %v4838_v38, %v14471_v28 }
0x1316   :  { %11688 = vmatprep.subr.mxu0 %v14379_v33  ;;  %11719 = vmatprep.subr.mxu1 %v9101_v6 }
0x1317   :  { %11689 = vmatpush3.msra.mxu0 %v14379_v33  ;;  %11720 = vmatpush3.xpose.msra.mxu1 %v9101_v6  ;;  %v4835_v33 = vld [vmem:[#allocation5 + $0x70] sm:$0xff]  ;;  %v14481_v3 = vand.u32 4294901760, %v14476_v5 }
0x1318   :  { %11690 = vmatprep.subr.mxu0 %v14382_v42  ;;  %v14483_v51 = vand.u32 4294901760, %v4835_v33 }
0x1319   :  { %11691 = vmatpush3.msra.mxu0 %v14382_v42  ;;  %v9108_v42 = vand.u32 4294901760, %v9107_v39  ;;  %v9114_v1 = vsub.f32 %v14476_v5, %v14481_v3 }
0x131a   :  { %11692 = vmatprep.subr.mxu0 %v14404_v11  ;;  %v14488_v19 = vsub.f32 %v4835_v33, %v14483_v51 }
0x131b   :  { %11693 = vmatpush3.msra.mxu0 %v14404_v11  ;;  %11721 = vmatprep.subr.mxu1 %v9108_v42  ;;  %v9115_v62 = vand.u32 4294901760, %v9114_v1 }
0x131c   :  { %11695 = vmatmul.mubr.f32.vlgmr.msra.gmra.mxu0 %v8532_v47  ;;  %11708 = vmatprep.subr.mxu0 %v14449_v20  ;;  %v14493_v8 = vand.u32 4294901760, %v14488_v19 }
0x131d   :  { %11709 = vmatpush3.xpose.msra.mxu0 %v14449_v20  ;;  %11722 = vmatpush3.xpose.msra.mxu1 %v9108_v42 }
0x131e   :  { %11710 = vmatprep.subr.mxu0 %v14459_v48  ;;  %11723 = vmatprep.subr.mxu1 %v9115_v62  ;;  %v9121_v59 = vsub.f32 %v14488_v19, %v14493_v8 }
0x1320   :  { %v9122_v45 = vand.u32 4294901760, %v9121_v59  ;;  %v14780_v59 = vsub.s32 5, %v12121_v53 }
0x1321   :  { %11711 = vmatpush3.xpose.msra.mxu0 %v14459_v48  ;;  %11724 = vmatpush3.xpose.msra.mxu1 %v9115_v62 }
0x1322   :  { %11712 = vmatprep.subr.mxu0 %v14471_v28  ;;  %11725 = vmatprep.subr.mxu1 %v9122_v45 }
0x1325   :  { %11713 = vmatpush3.xpose.msra.mxu0 %v14471_v28  ;;  %11726 = vmatpush3.xpose.msra.mxu1 %v9122_v45  ;;  %v9516_v45 = vrot.slane %v14329_v60, %v14780_v59 }
0x1326   :  { %11714 = vmatprep.subr.mxu0 %v14483_v51  ;;  %11741 = vmatprep.subr.mxu1 %v14449_v20 }
0x1329   :  { %11715 = vmatpush3.xpose.msra.mxu0 %v14483_v51 }
0x132a   :  { %11730 = vmatprep.subr.mxu0 %v14452_v10 }
0x13c2   :  { %v11663_v17 = vpop.f32.mrf.mxu1 }
0x13c4   :  { %v8629_v46 = vpop.f32.mrf.mxu1 }
0x13ca   :  { %v11685_v50 = vpop.f32.mrf.mxu1 }
0x13cb   :  { %v11652_v43 = vpop.f32.mrf.mxu0 }
0x13cc   :  { %v8539_v61 = vadd.f32 %v11652_v43, %v9565_v35  ;;  %v8799_v27 = vpop.f32.mrf.mxu1 }
0x13cd   :  { %v8528_v11 = vpop.f32.mrf.mxu0 }
0x13ce   :  { %v8529_v54 = vadd.f32 %v9565_v35, %v8528_v11  ;;  %v8636_v57 = vadd.f32 %v11663_v17, %v8539_v61 }
0x13d0   :  { %v8630_v14 = vadd.f32 %v8629_v46, %v8529_v54 }
0x13d3   :  { %v11674_v55 = vpop.f32.mrf.mxu0 }
0x13d4   :  { %v8723_v52 = vadd.f32 %v11674_v55, %v8636_v57  ;;  %v11707_v44 = vpop.f32.mrf.mxu1 }
0x13d5   :  { %v8715_v63 = vpop.f32.mrf.mxu0 }
0x13d6   :  { %v8716_v58 = vadd.f32 %v8715_v63, %v8630_v14  ;;  %v8808_v31 = vadd.f32 %v11685_v50, %v8723_v52  ;;  %v8971_v37 = vpop.f32.mrf.mxu1  ;;  %v9522_v50 = vpop.permute.xlu0 %9521 }
0x13d8   :  { %v8800_v40 = vadd.f32 %v8799_v27, %v8716_v58 }
0x13dc   :  { %v11696_v41 = vpop.f32.mrf.mxu0 }
0x13dd   :  { %v8897_v7 = vadd.f32 %v11696_v41, %v8808_v31 }
0x13de   :  { %v8890_v30 = vpop.f32.mrf.mxu0 }
0x13df   :  { %v8978_v36 = vadd.f32 %v11707_v44, %v8897_v7  ;;  %v8891_v15 = vadd.f32 %v8890_v30, %v8800_v40 }
0x13e1   :  { %v8982_v26 = vmax.f32 %v8978_v36, 0.0  ;;  %v8972_v2 = vadd.f32 %v8971_v37, %v8891_v15 }
0x13e3   :  { %v9062_v16 = vand.u32 4294901760, %v8982_v26  ;;  %v8981_v23 = vmax.f32 %v8972_v2, 0.0 }
0x13e5   :  { %v9063_v47 = vsub.f32 %v8982_v26, %v9062_v16  ;;  %v9052_v0 = vand.u32 4294901760, %v8981_v23 }
0x13e7   :  { %v9064_v21 = vand.u32 4294901760, %v9063_v47  ;;  %v9053_v25 = vsub.f32 %v8981_v23, %v9052_v0  ;;  %11727 = vmatprep.mubr.f32.mxu1 %v9052_v0 }
0x13e8   :  { %11728 = vmatmul.mubr.f32.vlgmr.msra.gmra.mxu1 %v9062_v16 }
0x13e9   :  { %11742 = vmatpush3.xpose.msra.mxu1 %v14449_v20  ;;  %v9054_v49 = vand.u32 4294901760, %v9053_v25  ;;  %v9065_v13 = vsub.f32 %v9063_v47, %v9064_v21 }
0x13ea   :  { %11743 = vmatprep.subr.mxu1 %v14459_v48 }
0x13eb   :  { %11749 = vmatprep.mubr.f32.mxu1 %v9054_v49  ;;  %v9055_v9 = vsub.f32 %v9053_v25, %v9054_v49  ;;  %v9066_v12 = vand.u32 4294901760, %v9065_v13 }
0x13ed   :  { %11744 = vmatpush3.xpose.msra.mxu1 %v14459_v48  ;;  %v9056_v56 = vand.u32 4294901760, %v9055_v9 }
0x13ee   :  { %11745 = vmatprep.subr.mxu1 %v14471_v28 }
0x13ef   :  { %11716 = vmatprep.mubr.f32.mxu0 %v9056_v56 }
0x13f0   :  { %11717 = vmatmul.mubr.f32.vlgmr.msra.gmra.mxu0 %v9066_v12 }
0x13f1   :  { %11731 = vmatpush3.xpose.msra.mxu0 %v14452_v10  ;;  %11746 = vmatpush3.xpose.msra.mxu1 %v14471_v28 }
0x13f2   :  { %11738 = vmatprep.mubr.f32.mxu0 %v9053_v25  ;;  %11732 = vmatprep.subr.mxu0 %v14464_v4 }
0x13f3   :  { %11747 = vmatprep.subr.mxu1 %v14483_v51 }
0x13f5   :  { %11733 = vmatpush3.xpose.msra.mxu0 %v14464_v4  ;;  %11748 = vmatpush3.xpose.msra.mxu1 %v14483_v51 }
0x13f6   :  { %11734 = vmatprep.subr.mxu0 %v14476_v5  ;;  %11763 = vmatprep.subr.mxu1 %v14449_v20 }
0x13f8   :  { %11750 = vmatmul.mubr.f32.vlgmr.msra.gmra.mxu1 %v9064_v21 }
0x13f9   :  { %11735 = vmatpush3.xpose.msra.mxu0 %v14476_v5  ;;  %11764 = vmatpush3.xpose.msra.mxu1 %v14449_v20  ;;  %v9524_v5 = vpop.permute.xlu1 %9523 }
0x13fa   :  { %11771 = vmatprep.mubr.f32.mxu1 %v9052_v0  ;;  %11736 = vmatprep.subr.mxu0 %v14488_v19 }
0x13fb   :  { %11765 = vmatprep.subr.mxu1 %v14459_v48 }
0x13fd   :  { %11737 = vmatpush3.xpose.msra.mxu0 %v14488_v19  ;;  %11766 = vmatpush3.xpose.msra.mxu1 %v14459_v48  ;;  %v9530_v62 = vpop.permute.xlu1 %9529 }
0x13fe   :  { %11752 = vmatprep.subr.mxu0 %v14457_v34  ;;  %11767 = vmatprep.subr.mxu1 %v14471_v28 }
0x1400   :  { %11739 = vmatmul.mubr.f32.vlgmr.msra.gmra.mxu0 %v9063_v47 }
0x1401   :  { %11753 = vmatpush3.xpose.msra.mxu0 %v14457_v34  ;;  %11760 = vmatprep.mubr.f32.mxu0 %v9052_v0  ;;  %v9532_v55 = vpop.permute.xlu1 %9531 }
0x1402   :  { %11768 = vmatpush3.xpose.msra.mxu1 %v14471_v28  ;;  %11754 = vmatprep.subr.mxu0 %v14469_v24 }
0x1403   :  { %11769 = vmatprep.subr.mxu1 %v14483_v51 }
0x1405   :  { %11755 = vmatpush3.xpose.msra.mxu0 %v14469_v24 }
0x1406   :  { %11770 = vmatpush3.xpose.msra.mxu1 %v14483_v51  ;;  %11756 = vmatprep.subr.mxu0 %v14481_v3 }
0x1409   :  { %11772 = vmatmul.mubr.f32.vlgmr.msra.gmra.mxu1 %v9062_v16  ;;  %11757 = vmatpush3.xpose.msra.mxu0 %v14481_v3 }
0x140a   :  { %11758 = vmatprep.subr.mxu0 %v14493_v8 }
0x140d   :  { %11759 = vmatpush3.xpose.msra.mxu0 %v14493_v8 }
0x1410   :  { %11761 = vmatmul.mubr.f32.vlgmr.msra.gmra.mxu0 %v9062_v16 }
0x14a8   :  { %v11729_v10 = vpop.f32.mrf.mxu1 }
0x14aa   :  { %v9159_v48 = vpop.f32.mrf.mxu1 }
0x14b0   :  { %v11718_v20 = vpop.f32.mrf.mxu0 }
0x14b1   :  { %v9166_v29 = vadd.f32 %v11729_v10, %v11718_v20 }
0x14b2   :  { %v9058_v22 = vpop.f32.mrf.mxu0 }
0x14b3   :  { %v9160_v6 = vadd.f32 %v9159_v48, %v9058_v22 }
0x14b8   :  { %v11751_v4 = vpop.f32.mrf.mxu1 }
0x14ba   :  { %v9329_v39 = vpop.f32.mrf.mxu1 }
0x14c0   :  { %v11740_v34 = vpop.f32.mrf.mxu0 }
0x14c1   :  { %v9253_v24 = vadd.f32 %v11740_v34, %v9166_v29 }
0x14c2   :  { %v9245_v38 = vpop.f32.mrf.mxu0 }
0x14c3   :  { %v9246_v28 = vadd.f32 %v9245_v38, %v9160_v6  ;;  %v9338_v33 = vadd.f32 %v11751_v4, %v9253_v24 }
0x14c5   :  { %v9330_v1 = vadd.f32 %v9329_v39, %v9246_v28 }
0x14c9   :  { %v11773_v42 = vpop.f32.mrf.mxu1 }
0x14cb   :  { %v9501_v35 = vpop.f32.mrf.mxu1 }
0x14d0   :  { %v11762_v3 = vpop.f32.mrf.mxu0 }
0x14d1   :  { %v9427_v51 = vadd.f32 %v11762_v3, %v9338_v33 }
0x14d2   :  { %v9420_v19 = vpop.f32.mrf.mxu0 }
0x14d3   :  { %v9508_v8 = vadd.f32 %v11773_v42, %v9427_v51  ;;  %v9421_v43 = vadd.f32 %v9420_v19, %v9330_v1 }
0x14d5   :  { %v9512_v17 = vadd.f32 %v9508_v8, %v14335_v18  ;;  %v9502_v11 = vadd.f32 %v9501_v35, %v9421_v43 }
0x14d7   :  { %v9518_v61 = vadd.f32 %v9516_v45, %v9512_v17  ;;  %v9511_v54 = vadd.f32 %v9502_v11, %v14338_v32 }
0x14d9   :  { %v9517_v46 = vadd.f32 %v9516_v45, %v9511_v54  ;;  %v9536_v57 = vsel %vm127_vm0, %v9518_v61, %v9524_v5 }
0x14da   :  { %v9538_v53 = vsel %vm1367_vm1, %v9536_v57, %v9532_v55 }
0x14db   :  { %v9535_v60 = vsel %vm127_vm0, %v9517_v46, %v9522_v50  ;;  %v9541_v63 = vsel %vm9539_vm2, %v9538_v53, 0.0 }
0x14dc   :  { %v9537_v52 = vsel %vm1367_vm1, %v9535_v60, %v9530_v62  ;;  %9543 = vst [vmem:[#allocation10 + $0x8] sm:$0xff] %v9541_v63 }
0x14dd   :  { %v9540_v18 = vsel %vm9539_vm2, %v9537_v52, 0.0 }
0x14de   :  { %9542 = vst [vmem:[#allocation10] sm:$0xff] %v9540_v18 }
0x14df   :  { %11917 = shalt.err (!%p11914_p10)
}
0x14e0   :  { %9555 = dma.vmem_to_hbm [thread:$0]  %s9550_s9, 256, %s14552_s8, [#allocation4], %s11938_s15, %s11938_s15, %s11939_s16  }
0x14e1   :  { %11932 = dma.done.wait [#allocation4], 256  }
0x14e2   :  { %11933 = vsyncadd [#allocation4], 4294967040 }
0x14e3   :  { %9559 = vsyncpa [#allocation3], 1 }
0x14e4   :  { %9560 = vsyncpa [#allocation6], 1 }
0x14e5   :  { %9561 = vsyncpa [#allocation9], 1 }
0x14e6   :  { %9562 = vsyncpa [#allocation4], 1 }

</bundles_post_ra>
